<compile_context>
chip_gen: v5e
topology: v5e:2x2
jax: 0.10.0
libtpu: 0.0.40
codegen_flags: <defaults>
</compile_context>

<pallas_src>
import functools

import jax
import jax.numpy as jnp
import numpy as np
from jax.experimental import pallas as pl
from jax.experimental.pallas import tpu as pltpu


# ----------------------------- Pallas kernels ------------------------------ #

def _conv1_pool_kernel(p_ref, w_ref, b_ref, o_ref):
    """Fused conv1 + BN + ReLU + MaxPool(4,1)/(4,1).

    p_ref: (tm, 4*128) bf16 -- four 128-wide conv patches per pooled output row
           (lane slices at 128-aligned offsets).
    w_ref: (128, 128) bf16 (rows >= 65 and cols >= 64 are zero).
    b_ref: (1, 128) f32.   o_ref: (tm, 128) bf16.
    """
    w = w_ref[...]
    b = b_ref[...]
    out = None
    for j in range(4):
        pj = p_ref[:, j * 128:(j + 1) * 128]
        hj = jnp.dot(pj, w, preferred_element_type=jnp.float32) + b
        hj = jnp.maximum(hj, 0.0)                       # ReLU before the pool
        out = hj if out is None else jnp.maximum(out, hj)
    o_ref[...] = out.astype(o_ref.dtype)


def _block_kernel(xr_ref, w1_ref, w2_ref, wd_ref, b1_ref, b2_ref, bd_ref,
                  o_ref, h1s_ref):
    """One fused ResNet BasicBlock (stride 4, projection shortcut), one batch el.

    xr_ref : (1, L1, 4*Cin) bf16 -- stride-phase layout of the zero-padded
             input: columns [p*Cin:(p+1)*Cin] of row l hold x_pad[4l+p, :].
    w1_ref : (4*Cin, Cm) bf16  -- conv1 taps stacked per phase (phase 3 = 0).
    w2_ref : (3, Cm, Cm) bf16  -- conv2 taps.
    wd_ref : (Cin, Cm) bf16    -- 1x1 stride-4 projection shortcut.
    b*_ref : (1, Cm) f32.      o_ref: (1, L1, Cm) bf16.
    h1s_ref: (L1+2, Cm) f32 scratch; zero border rows = conv2's zero padding.
    """
    L1 = o_ref.shape[1]
    Cin = wd_ref.shape[0]

    xr = xr_ref[0]                                                # (L1, 4*Cin)

    # conv1 (k=3, stride=4, pad=1) + folded BN + ReLU as a single matmul.
    h1 = jnp.dot(xr, w1_ref[...], preferred_element_type=jnp.float32)
    h1 = jnp.maximum(h1 + b1_ref[...], 0.0)

    # conv2 (k=3, stride=1, pad=1): 3 shifted matmuls off a zero-bordered scratch.
    h1s_ref[...] = jnp.zeros(h1s_ref.shape, h1s_ref.dtype)
    h1s_ref[pl.ds(1, L1), :] = h1
    acc = jnp.dot(h1s_ref[pl.ds(0, L1), :].astype(jnp.bfloat16), w2_ref[0],
                  preferred_element_type=jnp.float32)
    acc = acc + jnp.dot(h1.astype(jnp.bfloat16), w2_ref[1],
                        preferred_element_type=jnp.float32)
    acc = acc + jnp.dot(h1s_ref[pl.ds(2, L1), :].astype(jnp.bfloat16), w2_ref[2],
                        preferred_element_type=jnp.float32)
    acc = acc + b2_ref[...]

    # projection shortcut: x[4l] is exactly the phase-1 rows of xr.
    res = jnp.dot(xr[:, Cin:2 * Cin], wd_ref[...],
                  preferred_element_type=jnp.float32) + bd_ref[...]

    o_ref[0] = jnp.maximum(acc + res, 0.0).astype(o_ref.dtype)


# ------------------------------ stage wrappers ------------------------------ #

def conv1_maxpool(x, w, b, *, tm=256):
    """Fused Conv2d(1,64,(65,1),stride=4)+BN+ReLU+MaxPool((4,1),(4,1)).

    x: (N, HS) f32.  Returns (N, L2, 128) bf16 (channels 64..127 are zero).
    """
    N, HS = x.shape
    K, S = 65, 4
    L1 = (HS - K) // S + 1
    L2 = (L1 - 4) // 4 + 1
    nq = (K + S - 1) // S                       # 17 phase taps
    T = L1 + nq - 1
    # stride-phase reshape: xr[n, t, p] = x[n, 4t + p]   (static slices, no gather)
    xr = jnp.pad(x, ((0, 0), (0, 4 * T - HS))).reshape(N, T, 4)
    # patch column 4q + p == conv tap k = 4q + p (k >= 65 hits zero weights)
    pat = jnp.concatenate([xr[:, q:q + L1, :] for q in range(nq)], axis=-1)
    pat = jnp.pad(pat, ((0, 0), (0, 0), (0, 128 - 4 * nq)))        # K -> 128
    pat = pat[:, :4 * L2, :].reshape(N * L2, 4 * 128).astype(jnp.bfloat16)

    M = N * L2
    tm = min(tm, M)
    out = pl.pallas_call(
        _conv1_pool_kernel,
        out_shape=jax.ShapeDtypeStruct((M, 128), jnp.bfloat16),
        grid=(pl.cdiv(M, tm),),
        in_specs=[
            pl.BlockSpec((tm, 4 * 128), lambda i: (i, 0)),
            pl.BlockSpec((128, 128), lambda i: (0, 0)),
            pl.BlockSpec((1, 128), lambda i: (0, 0)),
        ],
        out_specs=pl.BlockSpec((tm, 128), lambda i: (i, 0)),
        compiler_params=pltpu.CompilerParams(dimension_semantics=("parallel",)),
    )(pat, w, b)
    return out.reshape(N, L2, 128)


def basic_block(x, blk):
    """One fused BasicBlock: conv3(s=4)-BN-ReLU-conv3(s=1)-BN + proj shortcut + ReLU."""
    N, L, Cin = x.shape
    Cm = blk["w2"].shape[-1]
    L1 = (L - 1) // 4 + 1                       # conv(k=3, s=4, p=1) output length
    # phase layout of the pad=1 input: xr[n, l, p*Cin:(p+1)*Cin] = x_pad[n, 4l+p, :]
    pad_hi = max(0, 4 * L1 - (L + 1))
    xr = jnp.pad(x, ((0, 0), (1, pad_hi), (0, 0)))[:, :4 * L1, :]
    xr = xr.reshape(N, L1, 4 * Cin)

    return pl.pallas_call(
        _block_kernel,
        out_shape=jax.ShapeDtypeStruct((N, L1, Cm), jnp.bfloat16),
        grid=(N,),
        in_specs=[
            pl.BlockSpec((1, L1, 4 * Cin), lambda n: (n, 0, 0)),
            pl.BlockSpec((4 * Cin, Cm), lambda n: (0, 0)),
            pl.BlockSpec((3, Cm, Cm), lambda n: (0, 0, 0)),
            pl.BlockSpec((Cin, Cm), lambda n: (0, 0)),
            pl.BlockSpec((1, Cm), lambda n: (0, 0)),
            pl.BlockSpec((1, Cm), lambda n: (0, 0)),
            pl.BlockSpec((1, Cm), lambda n: (0, 0)),
        ],
        out_specs=pl.BlockSpec((1, L1, Cm), lambda n: (n, 0, 0)),
        scratch_shapes=[pltpu.VMEM((L1 + 2, Cm), jnp.float32)],
        compiler_params=pltpu.CompilerParams(dimension_semantics=("parallel",)),
    )(xr, blk["w1"], blk["w2"], blk["wd"], blk["b1"], blk["b2"], blk["bd"])


# ------------------------------- parameters --------------------------------- #

def init_params(key, aud_layers=(1, 1, 1)):
    eps = 1e-5
    keys = jax.random.split(key, 64)
    it = iter(range(64))
    nk = lambda: keys[next(it)]

    def conv_w(k, kh, cin, cout):
        return jax.random.normal(k, (kh, cin, cout), jnp.float32) / np.sqrt(kh * cin)

    def bn(kg, kb, c):
        gamma = 1.0 + 0.1 * jax.random.normal(kg, (c,), jnp.float32)
        beta = 0.1 * jax.random.normal(kb, (c,), jnp.float32)
        return gamma, beta

    def fold(w, b, gamma, beta):
        # eval-mode BN (running_mean=0, running_var=1) folded into the conv.
        scale = gamma / jnp.sqrt(1.0 + eps)
        w2 = w * scale[None, None, :]
        b2 = beta if b is None else b * scale + beta
        return w2, b2

    p = {}
    # aud_conv1: Conv2d(1, 64, (65,1), stride=4) + BN(64); C_out zero-padded to 128.
    w = conv_w(nk(), 65, 1, 64)
    b = 0.01 * jax.random.normal(nk(), (64,), jnp.float32)
    g, bt = bn(nk(), nk(), 64)
    wf, bf_ = fold(w, b, g, bt)
    w1 = jnp.zeros((128, 128), jnp.float32).at[:65, :64].set(wf[:, 0, :])
    b1 = jnp.zeros((128,), jnp.float32).at[:64].set(bf_)
    p["conv1_w"] = w1.astype(jnp.bfloat16)
    p["conv1_b"] = b1.reshape(1, 128)

    # residual layers; with aud_layers=(1,1,1) every block has stride 4 + 'B' shortcut.
    inplanes_real, inplanes_pad = 64, 128
    layers = []
    for planes, nblocks in zip((128, 128, 256), aud_layers):
        assert nblocks == 1, "fused-block demo covers aud_layers=(1, 1, 1)"
        blocks = []
        for _ in range(nblocks):
            blk = {}
            wA = conv_w(nk(), 3, inplanes_real, planes)
            gA, btA = bn(nk(), nk(), planes)
            wAf, bA = fold(wA, None, gA, btA)                    # (3, cin_real, planes)
            w1f = jnp.zeros((4 * inplanes_pad, planes), jnp.float32)
            for tap in range(3):
                w1f = w1f.at[tap * inplanes_pad:
                             tap * inplanes_pad + inplanes_real, :].set(wAf[tap])
            blk["w1"] = w1f.astype(jnp.bfloat16)
            blk["b1"] = bA.reshape(1, planes)

            wB = conv_w(nk(), 3, planes, planes)
            gB, btB = bn(nk(), nk(), planes)
            wBf, bB = fold(wB, None, gB, btB)
            blk["w2"] = wBf.astype(jnp.bfloat16)                 # (3, planes, planes)
            blk["b2"] = bB.reshape(1, planes)

            wD = conv_w(nk(), 1, inplanes_real, planes)
            gD, btD = bn(nk(), nk(), planes)
            wDf, bD = fold(wD, None, gD, btD)
            wdp = jnp.zeros((inplanes_pad, planes),
                            jnp.float32).at[:inplanes_real, :].set(wDf[0])
            blk["wd"] = wdp.astype(jnp.bfloat16)
            blk["bd"] = bD.reshape(1, planes)

            blocks.append(blk)
            inplanes_real, inplanes_pad = planes, planes
        layers.append(blocks)
    p["layers"] = layers

    # aud_fc: Conv2d(256, 1, kernel=1) -- applied in plain JAX (8 rows / batch).
    p["fc_w"] = jax.random.normal(nk(), (256, 1), jnp.float32) / np.sqrt(256.0)
    p["fc_b"] = 0.01 * jax.random.normal(nk(), (1,), jnp.float32)
    return p


# --------------------------------- forward ---------------------------------- #

def forward_batched(params, auds, num_frames):
    """auds: (N, HS) f32  ->  (N, num_frames // 4) f32."""
    x = conv1_maxpool(auds, params["conv1_w"], params["conv1_b"])
    for blocks in params["layers"]:
        for blk in blocks:
            x = basic_block(x, blk)

    # Fractional max-pool (deterministic offsets) + 1x1 fc on a tiny tensor:
    # plain JAX -- a pallas_call here (N=1 matmul over a handful of rows) is
    # pure launch overhead.
    N, L, C = x.shape
    ts, k = num_frames // 4, 4
    if ts == 1:
        starts = np.array([0], dtype=np.int64)
    else:
        starts = np.round(np.arange(ts) * (L - k) / (ts - 1)).astype(np.int64)
    xf = x.astype(jnp.float32)
    pooled = jnp.stack([jnp.max(xf[:, s:s + k, :], axis=1) for s in starts], axis=1)
    y = pooled @ params["fc_w"] + params["fc_b"]                 # (N, ts, 1)
    return y[..., 0]


def resnet_a_forward(params, auds1, auds2, num_frames):
    # Batch both audio streams through one forward pass (halves kernel launches).
    B = auds1.shape[0]
    y = forward_batched(params, jnp.concatenate([auds1, auds2], axis=0), num_frames)
    return y[:B], y[B:]


# ----------------------------------- main ------------------------------------ #

if __name__ == "__main__":
    NUM_FRAMES = 16          # -> TS = 4
    B, HS = 2, 7245          # minimal length so every /4 stage stays valid

    key = jax.random.PRNGKey(0)
    kp, ka, kb = jax.random.split(key, 3)
    params = init_params(kp, aud_layers=(1, 1, 1))

    auds1 = jax.random.normal(ka, (B, HS), jnp.float32)
    auds2 = jax.random.normal(kb, (B, HS), jnp.float32)

    fwd = jax.jit(functools.partial(resnet_a_forward, num_frames=NUM_FRAMES))
    out1, out2 = fwd(params, auds1, auds2)
    jax.block_until_ready((out1, out2))

    assert out1.shape == (B, NUM_FRAMES // 4), out1.shape
    assert out2.shape == (B, NUM_FRAMES // 4), out2.shape
    assert bool(jnp.all(jnp.isfinite(out1))) and bool(jnp.all(jnp.isfinite(out2)))
    print("KERNEL_OK")
</pallas_src>

<mosaic_0001>
module attributes {stable_mosaic.version = 11 : i64} {
  func.func @_conv1_pool_kernel(%arg0: i32, %arg1: memref<256x512xbf16, #tpu.memory_space<vmem>>, %arg2: memref<128x128xbf16, #tpu.memory_space<vmem>>, %arg3: memref<1x128xf32, #tpu.memory_space<vmem>>, %arg4: memref<256x128xbf16, #tpu.memory_space<vmem>>) attributes {dimension_semantics = [#tpu.dimension_semantics<parallel>], iteration_bounds = array<i64: 8>, scalar_prefetch = 0 : i64, scratch_operands = 0 : i64, tpu.core_type = #tpu.core_type<tc>, window_params = [{transform_indices = @transform_0, window_bounds = array<i64: 256, 512>}, {pipeline_mode = #tpu.pipeline_mode<synchronous>, transform_indices = @transform_1, window_bounds = array<i64: 128, 128>}, {pipeline_mode = #tpu.pipeline_mode<synchronous>, transform_indices = @transform_2, window_bounds = array<i64: 1, 128>}, {transform_indices = @transform_3, window_bounds = array<i64: 256, 128>}]} {
    %c0 = arith.constant 0 : index
    %c0_0 = arith.constant 0 : index
    %0 = vector.load %arg2[%c0, %c0_0] : memref<128x128xbf16, #tpu.memory_space<vmem>>, vector<128x128xbf16>
    %c0_1 = arith.constant 0 : index
    %c0_2 = arith.constant 0 : index
    %1 = vector.load %arg3[%c0_1, %c0_2] : memref<1x128xf32, #tpu.memory_space<vmem>>, vector<1x128xf32>
    %c0_3 = arith.constant 0 : index
    %c0_4 = arith.constant 0 : index
    %2 = vector.load %arg1[%c0_3, %c0_4] : memref<256x512xbf16, #tpu.memory_space<vmem>>, vector<256x128xbf16>
    %cst = arith.constant dense<0.000000e+00> : vector<256x128xf32>
    %3 = tpu.matmul %2, %0, %cst {dimension_numbers = #tpu.dot_dimension_numbers<[1], [0], [0], [1], [0, 0, 1, 1], [], []>} : vector<256x128xbf16>, vector<128x128xbf16>, vector<256x128xf32> -> vector<256x128xf32>
    %4 = vector.broadcast %1 : vector<1x128xf32> to vector<256x128xf32>
    %5 = arith.addf %3, %4 : vector<256x128xf32>
    %cst_5 = arith.constant 0.000000e+00 : f32
    %6 = vector.broadcast %cst_5 : f32 to vector<256x128xf32>
    %7 = arith.maximumf %5, %6 : vector<256x128xf32>
    %c0_6 = arith.constant 0 : index
    %c128 = arith.constant 128 : index
    %8 = vector.load %arg1[%c0_6, %c128] : memref<256x512xbf16, #tpu.memory_space<vmem>>, vector<256x128xbf16>
    %cst_7 = arith.constant dense<0.000000e+00> : vector<256x128xf32>
    %9 = tpu.matmul %8, %0, %cst_7 {dimension_numbers = #tpu.dot_dimension_numbers<[1], [0], [0], [1], [0, 0, 1, 1], [], []>} : vector<256x128xbf16>, vector<128x128xbf16>, vector<256x128xf32> -> vector<256x128xf32>
    %10 = vector.broadcast %1 : vector<1x128xf32> to vector<256x128xf32>
    %11 = arith.addf %9, %10 : vector<256x128xf32>
    %cst_8 = arith.constant 0.000000e+00 : f32
    %12 = vector.broadcast %cst_8 : f32 to vector<256x128xf32>
    %13 = arith.maximumf %11, %12 : vector<256x128xf32>
    %14 = arith.maximumf %7, %13 : vector<256x128xf32>
    %c0_9 = arith.constant 0 : index
    %c256 = arith.constant 256 : index
    %15 = vector.load %arg1[%c0_9, %c256] : memref<256x512xbf16, #tpu.memory_space<vmem>>, vector<256x128xbf16>
    %cst_10 = arith.constant dense<0.000000e+00> : vector<256x128xf32>
    %16 = tpu.matmul %15, %0, %cst_10 {dimension_numbers = #tpu.dot_dimension_numbers<[1], [0], [0], [1], [0, 0, 1, 1], [], []>} : vector<256x128xbf16>, vector<128x128xbf16>, vector<256x128xf32> -> vector<256x128xf32>
    %17 = vector.broadcast %1 : vector<1x128xf32> to vector<256x128xf32>
    %18 = arith.addf %16, %17 : vector<256x128xf32>
    %cst_11 = arith.constant 0.000000e+00 : f32
    %19 = vector.broadcast %cst_11 : f32 to vector<256x128xf32>
    %20 = arith.maximumf %18, %19 : vector<256x128xf32>
    %21 = arith.maximumf %14, %20 : vector<256x128xf32>
    %c0_12 = arith.constant 0 : index
    %c384 = arith.constant 384 : index
    %22 = vector.load %arg1[%c0_12, %c384] : memref<256x512xbf16, #tpu.memory_space<vmem>>, vector<256x128xbf16>
    %cst_13 = arith.constant dense<0.000000e+00> : vector<256x128xf32>
    %23 = tpu.matmul %22, %0, %cst_13 {dimension_numbers = #tpu.dot_dimension_numbers<[1], [0], [0], [1], [0, 0, 1, 1], [], []>} : vector<256x128xbf16>, vector<128x128xbf16>, vector<256x128xf32> -> vector<256x128xf32>
    %24 = vector.broadcast %1 : vector<1x128xf32> to vector<256x128xf32>
    %25 = arith.addf %23, %24 : vector<256x128xf32>
    %cst_14 = arith.constant 0.000000e+00 : f32
    %26 = vector.broadcast %cst_14 : f32 to vector<256x128xf32>
    %27 = arith.maximumf %25, %26 : vector<256x128xf32>
    %28 = arith.maximumf %21, %27 : vector<256x128xf32>
    %29 = arith.truncf %28 : vector<256x128xf32> to vector<256x128xbf16>
    %c0_15 = arith.constant 0 : index
    %c0_16 = arith.constant 0 : index
    %30 = vector.load %arg4[%c0_15, %c0_16] : memref<256x128xbf16, #tpu.memory_space<vmem>>, vector<256x128xbf16>
    tpu.vector_store %arg4[%c0_15, %c0_16], %29 {strides = array<i32>} : memref<256x128xbf16, #tpu.memory_space<vmem>>, vector<256x128xbf16>,
    return
  }
  func.func @transform_0(%arg0: i32) -> (i32, i32) {
    %c0_i32 = arith.constant 0 : i32
    %c0_i32_0 = arith.constant 0 : i32
    return %arg0, %c0_i32 : i32, i32
  }
  func.func @transform_1(%arg0: i32) -> (i32, i32) {
    %c0_i32 = arith.constant 0 : i32
    %c0_i32_0 = arith.constant 0 : i32
    %c0_i32_1 = arith.constant 0 : i32
    return %c0_i32, %c0_i32_0 : i32, i32
  }
  func.func @transform_2(%arg0: i32) -> (i32, i32) {
    %c0_i32 = arith.constant 0 : i32
    %c0_i32_0 = arith.constant 0 : i32
    %c0_i32_1 = arith.constant 0 : i32
    return %c0_i32, %c0_i32_0 : i32, i32
  }
  func.func @transform_3(%arg0: i32) -> (i32, i32) {
    %c0_i32 = arith.constant 0 : i32
    %c0_i32_0 = arith.constant 0 : i32
    return %arg0, %c0_i32 : i32, i32
  }
}

module attributes {stable_mosaic.version = 11 : i64} {
  func.func @_block_kernel(%arg0: i32, %arg1: memref<1x113x512xbf16, #tpu.memory_space<vmem>>, %arg2: memref<512x128xbf16, #tpu.memory_space<vmem>>, %arg3: memref<3x128x128xbf16, #tpu.memory_space<vmem>>, %arg4: memref<128x128xbf16, #tpu.memory_space<vmem>>, %arg5: memref<1x128xf32, #tpu.memory_space<vmem>>, %arg6: memref<1x128xf32, #tpu.memory_space<vmem>>, %arg7: memref<1x128xf32, #tpu.memory_space<vmem>>, %arg8: memref<1x113x128xbf16, #tpu.memory_space<vmem>>, %arg9: memref<115x128xf32, #tpu.memory_space<vmem>>) attributes {dimension_semantics = [#tpu.dimension_semantics<parallel>], iteration_bounds = array<i64: 4>, scalar_prefetch = 0 : i64, scratch_operands = 1 : i64, tpu.core_type = #tpu.core_type<tc>, window_params = [{transform_indices = @transform_0, window_bounds = array<i64: 1, 113, 512>}, {pipeline_mode = #tpu.pipeline_mode<synchronous>, transform_indices = @transform_1, window_bounds = array<i64: 512, 128>}, {pipeline_mode = #tpu.pipeline_mode<synchronous>, transform_indices = @transform_2, window_bounds = array<i64: 3, 128, 128>}, {pipeline_mode = #tpu.pipeline_mode<synchronous>, transform_indices = @transform_3, window_bounds = array<i64: 128, 128>}, {pipeline_mode = #tpu.pipeline_mode<synchronous>, transform_indices = @transform_4, window_bounds = array<i64: 1, 128>}, {pipeline_mode = #tpu.pipeline_mode<synchronous>, transform_indices = @transform_5, window_bounds = array<i64: 1, 128>}, {pipeline_mode = #tpu.pipeline_mode<synchronous>, transform_indices = @transform_6, window_bounds = array<i64: 1, 128>}, {transform_indices = @transform_7, window_bounds = array<i64: 1, 113, 128>}]} {
    %c0 = arith.constant 0 : index
    %c0_0 = arith.constant 0 : index
    %c0_1 = arith.constant 0 : index
    %0 = vector.load %arg1[%c0, %c0_0, %c0_1] : memref<1x113x512xbf16, #tpu.memory_space<vmem>>, vector<1x113x512xbf16>
    %1 = vector.shape_cast %0 : vector<1x113x512xbf16> to vector<113x512xbf16>
    %c0_2 = arith.constant 0 : index
    %c0_3 = arith.constant 0 : index
    %2 = vector.load %arg2[%c0_2, %c0_3] : memref<512x128xbf16, #tpu.memory_space<vmem>>, vector<512x128xbf16>
    %cst = arith.constant dense<0.000000e+00> : vector<113x128xf32>
    %3 = tpu.matmul %1, %2, %cst {dimension_numbers = #tpu.dot_dimension_numbers<[1], [0], [0], [1], [0, 0, 1, 1], [], []>} : vector<113x512xbf16>, vector<512x128xbf16>, vector<113x128xf32> -> vector<113x128xf32>
    %c0_4 = arith.constant 0 : index
    %c0_5 = arith.constant 0 : index
    %4 = vector.load %arg5[%c0_4, %c0_5] : memref<1x128xf32, #tpu.memory_space<vmem>>, vector<1x128xf32>
    %5 = vector.broadcast %4 : vector<1x128xf32> to vector<113x128xf32>
    %6 = arith.addf %3, %5 : vector<113x128xf32>
    %cst_6 = arith.constant 0.000000e+00 : f32
    %7 = vector.broadcast %cst_6 : f32 to vector<113x128xf32>
    %8 = arith.maximumf %6, %7 : vector<113x128xf32>
    %cst_7 = arith.constant 0.000000e+00 : f32
    %9 = vector.broadcast %cst_7 : f32 to vector<115x128xf32>
    %c0_8 = arith.constant 0 : index
    %c0_9 = arith.constant 0 : index
    %10 = vector.load %arg9[%c0_8, %c0_9] : memref<115x128xf32, #tpu.memory_space<vmem>>, vector<115x128xf32>
    tpu.vector_store %arg9[%c0_8, %c0_9], %9 {strides = array<i32>} : memref<115x128xf32, #tpu.memory_space<vmem>>, vector<115x128xf32>,
    %c1 = arith.constant 1 : index
    %c0_10 = arith.constant 0 : index
    %11 = vector.load %arg9[%c1, %c0_10] : memref<115x128xf32, #tpu.memory_space<vmem>>, vector<113x128xf32>
    tpu.vector_store %arg9[%c1, %c0_10], %8 {strides = array<i32>} : memref<115x128xf32, #tpu.memory_space<vmem>>, vector<113x128xf32>,
    %c0_11 = arith.constant 0 : index
    %c0_12 = arith.constant 0 : index
    %12 = vector.load %arg9[%c0_11, %c0_12] : memref<115x128xf32, #tpu.memory_space<vmem>>, vector<113x128xf32>
    %13 = arith.truncf %12 : vector<113x128xf32> to vector<113x128xbf16>
    %c0_13 = arith.constant 0 : index
    %c0_14 = arith.constant 0 : index
    %c0_15 = arith.constant 0 : index
    %14 = vector.load %arg3[%c0_13, %c0_14, %c0_15] : memref<3x128x128xbf16, #tpu.memory_space<vmem>>, vector<1x128x128xbf16>
    %15 = vector.shape_cast %14 : vector<1x128x128xbf16> to vector<128x128xbf16>
    %cst_16 = arith.constant dense<0.000000e+00> : vector<113x128xf32>
    %16 = tpu.matmul %13, %15, %cst_16 {dimension_numbers = #tpu.dot_dimension_numbers<[1], [0], [0], [1], [0, 0, 1, 1], [], []>} : vector<113x128xbf16>, vector<128x128xbf16>, vector<113x128xf32> -> vector<113x128xf32>
    %17 = arith.truncf %8 : vector<113x128xf32> to vector<113x128xbf16>
    %c1_17 = arith.constant 1 : index
    %c0_18 = arith.constant 0 : index
    %c0_19 = arith.constant 0 : index
    %18 = vector.load %arg3[%c1_17, %c0_18, %c0_19] : memref<3x128x128xbf16, #tpu.memory_space<vmem>>, vector<1x128x128xbf16>
    %19 = vector.shape_cast %18 : vector<1x128x128xbf16> to vector<128x128xbf16>
    %cst_20 = arith.constant dense<0.000000e+00> : vector<113x128xf32>
    %20 = tpu.matmul %17, %19, %cst_20 {dimension_numbers = #tpu.dot_dimension_numbers<[1], [0], [0], [1], [0, 0, 1, 1], [], []>} : vector<113x128xbf16>, vector<128x128xbf16>, vector<113x128xf32> -> vector<113x128xf32>
    %21 = arith.addf %16, %20 : vector<113x128xf32>
    %c2 = arith.constant 2 : index
    %c0_21 = arith.constant 0 : index
    %22 = vector.load %arg9[%c2, %c0_21] : memref<115x128xf32, #tpu.memory_space<vmem>>, vector<113x128xf32>
    %23 = arith.truncf %22 : vector<113x128xf32> to vector<113x128xbf16>
    %c2_22 = arith.constant 2 : index
    %c0_23 = arith.constant 0 : index
    %c0_24 = arith.constant 0 : index
    %24 = vector.load %arg3[%c2_22, %c0_23, %c0_24] : memref<3x128x128xbf16, #tpu.memory_space<vmem>>, vector<1x128x128xbf16>
    %25 = vector.shape_cast %24 : vector<1x128x128xbf16> to vector<128x128xbf16>
    %cst_25 = arith.constant dense<0.000000e+00> : vector<113x128xf32>
    %26 = tpu.matmul %23, %25, %cst_25 {dimension_numbers = #tpu.dot_dimension_numbers<[1], [0], [0], [1], [0, 0, 1, 1], [], []>} : vector<113x128xbf16>, vector<128x128xbf16>, vector<113x128xf32> -> vector<113x128xf32>
    %27 = arith.addf %21, %26 : vector<113x128xf32>
    %c0_26 = arith.constant 0 : index
    %c0_27 = arith.constant 0 : index
    %28 = vector.load %arg6[%c0_26, %c0_27] : memref<1x128xf32, #tpu.memory_space<vmem>>, vector<1x128xf32>
    %29 = vector.broadcast %28 : vector<1x128xf32> to vector<113x128xf32>
    %30 = arith.addf %27, %29 : vector<113x128xf32>
    %31 = vector.extract_strided_slice %1 {offsets = [0, 128], sizes = [113, 128], strides = [1, 1]} : vector<113x512xbf16> to vector<113x128xbf16>
    %c0_28 = arith.constant 0 : index
    %c0_29 = arith.constant 0 : index
    %32 = vector.load %arg4[%c0_28, %c0_29] : memref<128x128xbf16, #tpu.memory_space<vmem>>, vector<128x128xbf16>
    %cst_30 = arith.constant dense<0.000000e+00> : vector<113x128xf32>
    %33 = tpu.matmul %31, %32, %cst_30 {dimension_numbers = #tpu.dot_dimension_numbers<[1], [0], [0], [1], [0, 0, 1, 1], [], []>} : vector<113x128xbf16>, vector<128x128xbf16>, vector<113x128xf32> -> vector<113x128xf32>
    %c0_31 = arith.constant 0 : index
    %c0_32 = arith.constant 0 : index
    %34 = vector.load %arg7[%c0_31, %c0_32] : memref<1x128xf32, #tpu.memory_space<vmem>>, vector<1x128xf32>
    %35 = vector.broadcast %34 : vector<1x128xf32> to vector<113x128xf32>
    %36 = arith.addf %33, %35 : vector<113x128xf32>
    %37 = arith.addf %30, %36 : vector<113x128xf32>
    %cst_33 = arith.constant 0.000000e+00 : f32
    %38 = vector.broadcast %cst_33 : f32 to vector<113x128xf32>
    %39 = arith.maximumf %37, %38 : vector<113x128xf32>
    %40 = arith.truncf %39 : vector<113x128xf32> to vector<113x128xbf16>
    %c0_34 = arith.constant 0 : index
    %c0_35 = arith.constant 0 : index
    %c0_36 = arith.constant 0 : index
    %41 = vector.load %arg8[%c0_34, %c0_35, %c0_36] : memref<1x113x128xbf16, #tpu.memory_space<vmem>>, vector<1x113x128xbf16>
    %42 = vector.shape_cast %41 : vector<1x113x128xbf16> to vector<113x128xbf16>
    %43 = vector.shape_cast %40 : vector<113x128xbf16> to vector<1x113x128xbf16>
    tpu.vector_store %arg8[%c0_34, %c0_35, %c0_36], %43 {strides = array<i32>} : memref<1x113x128xbf16, #tpu.memory_space<vmem>>, vector<1x113x128xbf16>,
    return
  }
  func.func @transform_0(%arg0: i32) -> (i32, i32, i32) {
    %c0_i32 = arith.constant 0 : i32
    %c0_i32_0 = arith.constant 0 : i32
    %c0_i32_1 = arith.constant 0 : i32
    return %arg0, %c0_i32, %c0_i32_0 : i32, i32, i32
  }
  func.func @transform_1(%arg0: i32) -> (i32, i32) {
    %c0_i32 = arith.constant 0 : i32
    %c0_i32_0 = arith.constant 0 : i32
    %c0_i32_1 = arith.constant 0 : i32
    return %c0_i32, %c0_i32_0 : i32, i32
  }
  func.func @transform_2(%arg0: i32) -> (i32, i32, i32) {
    %c0_i32 = arith.constant 0 : i32
    %c0_i32_0 = arith.constant 0 : i32
    %c0_i32_1 = arith.constant 0 : i32
    %c0_i32_2 = arith.constant 0 : i32
    return %c0_i32, %c0_i32_0, %c0_i32_1 : i32, i32, i32
  }
  func.func @transform_3(%arg0: i32) -> (i32, i32) {
    %c0_i32 = arith.constant 0 : i32
    %c0_i32_0 = arith.constant 0 : i32
    %c0_i32_1 = arith.constant 0 : i32
    return %c0_i32, %c0_i32_0 : i32, i32
  }
  func.func @transform_4(%arg0: i32) -> (i32, i32) {
    %c0_i32 = arith.constant 0 : i32
    %c0_i32_0 = arith.constant 0 : i32
    %c0_i32_1 = arith.constant 0 : i32
    return %c0_i32, %c0_i32_0 : i32, i32
  }
  func.func @transform_5(%arg0: i32) -> (i32, i32) {
    %c0_i32 = arith.constant 0 : i32
    %c0_i32_0 = arith.constant 0 : i32
    %c0_i32_1 = arith.constant 0 : i32
    return %c0_i32, %c0_i32_0 : i32, i32
  }
  func.func @transform_6(%arg0: i32) -> (i32, i32) {
    %c0_i32 = arith.constant 0 : i32
    %c0_i32_0 = arith.constant 0 : i32
    %c0_i32_1 = arith.constant 0 : i32
    return %c0_i32, %c0_i32_0 : i32, i32
  }
  func.func @transform_7(%arg0: i32) -> (i32, i32, i32) {
    %c0_i32 = arith.constant 0 : i32
    %c0_i32_0 = arith.constant 0 : i32
    %c0_i32_1 = arith.constant 0 : i32
    return %arg0, %c0_i32, %c0_i32_0 : i32, i32, i32
  }
}

module attributes {stable_mosaic.version = 11 : i64} {
  func.func @_block_kernel(%arg0: i32, %arg1: memref<1x29x512xbf16, #tpu.memory_space<vmem>>, %arg2: memref<512x128xbf16, #tpu.memory_space<vmem>>, %arg3: memref<3x128x128xbf16, #tpu.memory_space<vmem>>, %arg4: memref<128x128xbf16, #tpu.memory_space<vmem>>, %arg5: memref<1x128xf32, #tpu.memory_space<vmem>>, %arg6: memref<1x128xf32, #tpu.memory_space<vmem>>, %arg7: memref<1x128xf32, #tpu.memory_space<vmem>>, %arg8: memref<1x29x128xbf16, #tpu.memory_space<vmem>>, %arg9: memref<31x128xf32, #tpu.memory_space<vmem>>) attributes {dimension_semantics = [#tpu.dimension_semantics<parallel>], iteration_bounds = array<i64: 4>, scalar_prefetch = 0 : i64, scratch_operands = 1 : i64, tpu.core_type = #tpu.core_type<tc>, window_params = [{transform_indices = @transform_0, window_bounds = array<i64: 1, 29, 512>}, {pipeline_mode = #tpu.pipeline_mode<synchronous>, transform_indices = @transform_1, window_bounds = array<i64: 512, 128>}, {pipeline_mode = #tpu.pipeline_mode<synchronous>, transform_indices = @transform_2, window_bounds = array<i64: 3, 128, 128>}, {pipeline_mode = #tpu.pipeline_mode<synchronous>, transform_indices = @transform_3, window_bounds = array<i64: 128, 128>}, {pipeline_mode = #tpu.pipeline_mode<synchronous>, transform_indices = @transform_4, window_bounds = array<i64: 1, 128>}, {pipeline_mode = #tpu.pipeline_mode<synchronous>, transform_indices = @transform_5, window_bounds = array<i64: 1, 128>}, {pipeline_mode = #tpu.pipeline_mode<synchronous>, transform_indices = @transform_6, window_bounds = array<i64: 1, 128>}, {transform_indices = @transform_7, window_bounds = array<i64: 1, 29, 128>}]} {
    %c0 = arith.constant 0 : index
    %c0_0 = arith.constant 0 : index
    %c0_1 = arith.constant 0 : index
    %0 = vector.load %arg1[%c0, %c0_0, %c0_1] : memref<1x29x512xbf16, #tpu.memory_space<vmem>>, vector<1x29x512xbf16>
    %1 = vector.shape_cast %0 : vector<1x29x512xbf16> to vector<29x512xbf16>
    %c0_2 = arith.constant 0 : index
    %c0_3 = arith.constant 0 : index
    %2 = vector.load %arg2[%c0_2, %c0_3] : memref<512x128xbf16, #tpu.memory_space<vmem>>, vector<512x128xbf16>
    %cst = arith.constant dense<0.000000e+00> : vector<29x128xf32>
    %3 = tpu.matmul %1, %2, %cst {dimension_numbers = #tpu.dot_dimension_numbers<[1], [0], [0], [1], [0, 0, 1, 1], [], []>} : vector<29x512xbf16>, vector<512x128xbf16>, vector<29x128xf32> -> vector<29x128xf32>
    %c0_4 = arith.constant 0 : index
    %c0_5 = arith.constant 0 : index
    %4 = vector.load %arg5[%c0_4, %c0_5] : memref<1x128xf32, #tpu.memory_space<vmem>>, vector<1x128xf32>
    %5 = vector.broadcast %4 : vector<1x128xf32> to vector<29x128xf32>
    %6 = arith.addf %3, %5 : vector<29x128xf32>
    %cst_6 = arith.constant 0.000000e+00 : f32
    %7 = vector.broadcast %cst_6 : f32 to vector<29x128xf32>
    %8 = arith.maximumf %6, %7 : vector<29x128xf32>
    %cst_7 = arith.constant 0.000000e+00 : f32
    %9 = vector.broadcast %cst_7 : f32 to vector<31x128xf32>
    %c0_8 = arith.constant 0 : index
    %c0_9 = arith.constant 0 : index
    %10 = vector.load %arg9[%c0_8, %c0_9] : memref<31x128xf32, #tpu.memory_space<vmem>>, vector<31x128xf32>
    tpu.vector_store %arg9[%c0_8, %c0_9], %9 {strides = array<i32>} : memref<31x128xf32, #tpu.memory_space<vmem>>, vector<31x128xf32>,
    %c1 = arith.constant 1 : index
    %c0_10 = arith.constant 0 : index
    %11 = vector.load %arg9[%c1, %c0_10] : memref<31x128xf32, #tpu.memory_space<vmem>>, vector<29x128xf32>
    tpu.vector_store %arg9[%c1, %c0_10], %8 {strides = array<i32>} : memref<31x128xf32, #tpu.memory_space<vmem>>, vector<29x128xf32>,
    %c0_11 = arith.constant 0 : index
    %c0_12 = arith.constant 0 : index
    %12 = vector.load %arg9[%c0_11, %c0_12] : memref<31x128xf32, #tpu.memory_space<vmem>>, vector<29x128xf32>
    %13 = arith.truncf %12 : vector<29x128xf32> to vector<29x128xbf16>
    %c0_13 = arith.constant 0 : index
    %c0_14 = arith.constant 0 : index
    %c0_15 = arith.constant 0 : index
    %14 = vector.load %arg3[%c0_13, %c0_14, %c0_15] : memref<3x128x128xbf16, #tpu.memory_space<vmem>>, vector<1x128x128xbf16>
    %15 = vector.shape_cast %14 : vector<1x128x128xbf16> to vector<128x128xbf16>
    %cst_16 = arith.constant dense<0.000000e+00> : vector<29x128xf32>
    %16 = tpu.matmul %13, %15, %cst_16 {dimension_numbers = #tpu.dot_dimension_numbers<[1], [0], [0], [1], [0, 0, 1, 1], [], []>} : vector<29x128xbf16>, vector<128x128xbf16>, vector<29x128xf32> -> vector<29x128xf32>
    %17 = arith.truncf %8 : vector<29x128xf32> to vector<29x128xbf16>
    %c1_17 = arith.constant 1 : index
    %c0_18 = arith.constant 0 : index
    %c0_19 = arith.constant 0 : index
    %18 = vector.load %arg3[%c1_17, %c0_18, %c0_19] : memref<3x128x128xbf16, #tpu.memory_space<vmem>>, vector<1x128x128xbf16>
    %19 = vector.shape_cast %18 : vector<1x128x128xbf16> to vector<128x128xbf16>
    %cst_20 = arith.constant dense<0.000000e+00> : vector<29x128xf32>
    %20 = tpu.matmul %17, %19, %cst_20 {dimension_numbers = #tpu.dot_dimension_numbers<[1], [0], [0], [1], [0, 0, 1, 1], [], []>} : vector<29x128xbf16>, vector<128x128xbf16>, vector<29x128xf32> -> vector<29x128xf32>
    %21 = arith.addf %16, %20 : vector<29x128xf32>
    %c2 = arith.constant 2 : index
    %c0_21 = arith.constant 0 : index
    %22 = vector.load %arg9[%c2, %c0_21] : memref<31x128xf32, #tpu.memory_space<vmem>>, vector<29x128xf32>
    %23 = arith.truncf %22 : vector<29x128xf32> to vector<29x128xbf16>
    %c2_22 = arith.constant 2 : index
    %c0_23 = arith.constant 0 : index
    %c0_24 = arith.constant 0 : index
    %24 = vector.load %arg3[%c2_22, %c0_23, %c0_24] : memref<3x128x128xbf16, #tpu.memory_space<vmem>>, vector<1x128x128xbf16>
    %25 = vector.shape_cast %24 : vector<1x128x128xbf16> to vector<128x128xbf16>
    %cst_25 = arith.constant dense<0.000000e+00> : vector<29x128xf32>
    %26 = tpu.matmul %23, %25, %cst_25 {dimension_numbers = #tpu.dot_dimension_numbers<[1], [0], [0], [1], [0, 0, 1, 1], [], []>} : vector<29x128xbf16>, vector<128x128xbf16>, vector<29x128xf32> -> vector<29x128xf32>
    %27 = arith.addf %21, %26 : vector<29x128xf32>
    %c0_26 = arith.constant 0 : index
    %c0_27 = arith.constant 0 : index
    %28 = vector.load %arg6[%c0_26, %c0_27] : memref<1x128xf32, #tpu.memory_space<vmem>>, vector<1x128xf32>
    %29 = vector.broadcast %28 : vector<1x128xf32> to vector<29x128xf32>
    %30 = arith.addf %27, %29 : vector<29x128xf32>
    %31 = vector.extract_strided_slice %1 {offsets = [0, 128], sizes = [29, 128], strides = [1, 1]} : vector<29x512xbf16> to vector<29x128xbf16>
    %c0_28 = arith.constant 0 : index
    %c0_29 = arith.constant 0 : index
    %32 = vector.load %arg4[%c0_28, %c0_29] : memref<128x128xbf16, #tpu.memory_space<vmem>>, vector<128x128xbf16>
    %cst_30 = arith.constant dense<0.000000e+00> : vector<29x128xf32>
    %33 = tpu.matmul %31, %32, %cst_30 {dimension_numbers = #tpu.dot_dimension_numbers<[1], [0], [0], [1], [0, 0, 1, 1], [], []>} : vector<29x128xbf16>, vector<128x128xbf16>, vector<29x128xf32> -> vector<29x128xf32>
    %c0_31 = arith.constant 0 : index
    %c0_32 = arith.constant 0 : index
    %34 = vector.load %arg7[%c0_31, %c0_32] : memref<1x128xf32, #tpu.memory_space<vmem>>, vector<1x128xf32>
    %35 = vector.broadcast %34 : vector<1x128xf32> to vector<29x128xf32>
    %36 = arith.addf %33, %35 : vector<29x128xf32>
    %37 = arith.addf %30, %36 : vector<29x128xf32>
    %cst_33 = arith.constant 0.000000e+00 : f32
    %38 = vector.broadcast %cst_33 : f32 to vector<29x128xf32>
    %39 = arith.maximumf %37, %38 : vector<29x128xf32>
    %40 = arith.truncf %39 : vector<29x128xf32> to vector<29x128xbf16>
    %c0_34 = arith.constant 0 : index
    %c0_35 = arith.constant 0 : index
    %c0_36 = arith.constant 0 : index
    %41 = vector.load %arg8[%c0_34, %c0_35, %c0_36] : memref<1x29x128xbf16, #tpu.memory_space<vmem>>, vector<1x29x128xbf16>
    %42 = vector.shape_cast %41 : vector<1x29x128xbf16> to vector<29x128xbf16>
    %43 = vector.shape_cast %40 : vector<29x128xbf16> to vector<1x29x128xbf16>
    tpu.vector_store %arg8[%c0_34, %c0_35, %c0_36], %43 {strides = array<i32>} : memref<1x29x128xbf16, #tpu.memory_space<vmem>>, vector<1x29x128xbf16>,
    return
  }
  func.func @transform_0(%arg0: i32) -> (i32, i32, i32) {
    %c0_i32 = arith.constant 0 : i32
    %c0_i32_0 = arith.constant 0 : i32
    %c0_i32_1 = arith.constant 0 : i32
    return %arg0, %c0_i32, %c0_i32_0 : i32, i32, i32
  }
  func.func @transform_1(%arg0: i32) -> (i32, i32) {
    %c0_i32 = arith.constant 0 : i32
    %c0_i32_0 = arith.constant 0 : i32
    %c0_i32_1 = arith.constant 0 : i32
    return %c0_i32, %c0_i32_0 : i32, i32
  }
  func.func @transform_2(%arg0: i32) -> (i32, i32, i32) {
    %c0_i32 = arith.constant 0 : i32
    %c0_i32_0 = arith.constant 0 : i32
    %c0_i32_1 = arith.constant 0 : i32
    %c0_i32_2 = arith.constant 0 : i32
    return %c0_i32, %c0_i32_0, %c0_i32_1 : i32, i32, i32
  }
  func.func @transform_3(%arg0: i32) -> (i32, i32) {
    %c0_i32 = arith.constant 0 : i32
    %c0_i32_0 = arith.constant 0 : i32
    %c0_i32_1 = arith.constant 0 : i32
    return %c0_i32, %c0_i32_0 : i32, i32
  }
  func.func @transform_4(%arg0: i32) -> (i32, i32) {
    %c0_i32 = arith.constant 0 : i32
    %c0_i32_0 = arith.constant 0 : i32
    %c0_i32_1 = arith.constant 0 : i32
    return %c0_i32, %c0_i32_0 : i32, i32
  }
  func.func @transform_5(%arg0: i32) -> (i32, i32) {
    %c0_i32 = arith.constant 0 : i32
    %c0_i32_0 = arith.constant 0 : i32
    %c0_i32_1 = arith.constant 0 : i32
    return %c0_i32, %c0_i32_0 : i32, i32
  }
  func.func @transform_6(%arg0: i32) -> (i32, i32) {
    %c0_i32 = arith.constant 0 : i32
    %c0_i32_0 = arith.constant 0 : i32
    %c0_i32_1 = arith.constant 0 : i32
    return %c0_i32, %c0_i32_0 : i32, i32
  }
  func.func @transform_7(%arg0: i32) -> (i32, i32, i32) {
    %c0_i32 = arith.constant 0 : i32
    %c0_i32_0 = arith.constant 0 : i32
    %c0_i32_1 = arith.constant 0 : i32
    return %arg0, %c0_i32, %c0_i32_0 : i32, i32, i32
  }
}

module attributes {stable_mosaic.version = 11 : i64} {
  func.func @_block_kernel(%arg0: i32, %arg1: memref<1x8x512xbf16, #tpu.memory_space<vmem>>, %arg2: memref<512x256xbf16, #tpu.memory_space<vmem>>, %arg3: memref<3x256x256xbf16, #tpu.memory_space<vmem>>, %arg4: memref<128x256xbf16, #tpu.memory_space<vmem>>, %arg5: memref<1x256xf32, #tpu.memory_space<vmem>>, %arg6: memref<1x256xf32, #tpu.memory_space<vmem>>, %arg7: memref<1x256xf32, #tpu.memory_space<vmem>>, %arg8: memref<1x8x256xbf16, #tpu.memory_space<vmem>>, %arg9: memref<10x256xf32, #tpu.memory_space<vmem>>) attributes {dimension_semantics = [#tpu.dimension_semantics<parallel>], iteration_bounds = array<i64: 4>, scalar_prefetch = 0 : i64, scratch_operands = 1 : i64, tpu.core_type = #tpu.core_type<tc>, window_params = [{transform_indices = @transform_0, window_bounds = array<i64: 1, 8, 512>}, {pipeline_mode = #tpu.pipeline_mode<synchronous>, transform_indices = @transform_1, window_bounds = array<i64: 512, 256>}, {pipeline_mode = #tpu.pipeline_mode<synchronous>, transform_indices = @transform_2, window_bounds = array<i64: 3, 256, 256>}, {pipeline_mode = #tpu.pipeline_mode<synchronous>, transform_indices = @transform_3, window_bounds = array<i64: 128, 256>}, {pipeline_mode = #tpu.pipeline_mode<synchronous>, transform_indices = @transform_4, window_bounds = array<i64: 1, 256>}, {pipeline_mode = #tpu.pipeline_mode<synchronous>, transform_indices = @transform_5, window_bounds = array<i64: 1, 256>}, {pipeline_mode = #tpu.pipeline_mode<synchronous>, transform_indices = @transform_6, window_bounds = array<i64: 1, 256>}, {transform_indices = @transform_7, window_bounds = array<i64: 1, 8, 256>}]} {
    %c0 = arith.constant 0 : index
    %c0_0 = arith.constant 0 : index
    %c0_1 = arith.constant 0 : index
    %0 = vector.load %arg1[%c0, %c0_0, %c0_1] : memref<1x8x512xbf16, #tpu.memory_space<vmem>>, vector<1x8x512xbf16>
    %1 = vector.shape_cast %0 : vector<1x8x512xbf16> to vector<8x512xbf16>
    %c0_2 = arith.constant 0 : index
    %c0_3 = arith.constant 0 : index
    %2 = vector.load %arg2[%c0_2, %c0_3] : memref<512x256xbf16, #tpu.memory_space<vmem>>, vector<512x256xbf16>
    %cst = arith.constant dense<0.000000e+00> : vector<8x256xf32>
    %3 = tpu.matmul %1, %2, %cst {dimension_numbers = #tpu.dot_dimension_numbers<[1], [0], [0], [1], [0, 0, 1, 1], [], []>} : vector<8x512xbf16>, vector<512x256xbf16>, vector<8x256xf32> -> vector<8x256xf32>
    %c0_4 = arith.constant 0 : index
    %c0_5 = arith.constant 0 : index
    %4 = vector.load %arg5[%c0_4, %c0_5] : memref<1x256xf32, #tpu.memory_space<vmem>>, vector<1x256xf32>
    %5 = vector.broadcast %4 : vector<1x256xf32> to vector<8x256xf32>
    %6 = arith.addf %3, %5 : vector<8x256xf32>
    %cst_6 = arith.constant 0.000000e+00 : f32
    %7 = vector.broadcast %cst_6 : f32 to vector<8x256xf32>
    %8 = arith.maximumf %6, %7 : vector<8x256xf32>
    %cst_7 = arith.constant 0.000000e+00 : f32
    %9 = vector.broadcast %cst_7 : f32 to vector<10x256xf32>
    %c0_8 = arith.constant 0 : index
    %c0_9 = arith.constant 0 : index
    %10 = vector.load %arg9[%c0_8, %c0_9] : memref<10x256xf32, #tpu.memory_space<vmem>>, vector<10x256xf32>
    tpu.vector_store %arg9[%c0_8, %c0_9], %9 {strides = array<i32>} : memref<10x256xf32, #tpu.memory_space<vmem>>, vector<10x256xf32>,
    %c1 = arith.constant 1 : index
    %c0_10 = arith.constant 0 : index
    %11 = vector.load %arg9[%c1, %c0_10] : memref<10x256xf32, #tpu.memory_space<vmem>>, vector<8x256xf32>
    tpu.vector_store %arg9[%c1, %c0_10], %8 {strides = array<i32>} : memref<10x256xf32, #tpu.memory_space<vmem>>, vector<8x256xf32>,
    %c0_11 = arith.constant 0 : index
    %c0_12 = arith.constant 0 : index
    %12 = vector.load %arg9[%c0_11, %c0_12] : memref<10x256xf32, #tpu.memory_space<vmem>>, vector<8x256xf32>
    %13 = arith.truncf %12 : vector<8x256xf32> to vector<8x256xbf16>
    %c0_13 = arith.constant 0 : index
    %c0_14 = arith.constant 0 : index
    %c0_15 = arith.constant 0 : index
    %14 = vector.load %arg3[%c0_13, %c0_14, %c0_15] : memref<3x256x256xbf16, #tpu.memory_space<vmem>>, vector<1x256x256xbf16>
    %15 = vector.shape_cast %14 : vector<1x256x256xbf16> to vector<256x256xbf16>
    %cst_16 = arith.constant dense<0.000000e+00> : vector<8x256xf32>
    %16 = tpu.matmul %13, %15, %cst_16 {dimension_numbers = #tpu.dot_dimension_numbers<[1], [0], [0], [1], [0, 0, 1, 1], [], []>} : vector<8x256xbf16>, vector<256x256xbf16>, vector<8x256xf32> -> vector<8x256xf32>
    %17 = arith.truncf %8 : vector<8x256xf32> to vector<8x256xbf16>
    %c1_17 = arith.constant 1 : index
    %c0_18 = arith.constant 0 : index
    %c0_19 = arith.constant 0 : index
    %18 = vector.load %arg3[%c1_17, %c0_18, %c0_19] : memref<3x256x256xbf16, #tpu.memory_space<vmem>>, vector<1x256x256xbf16>
    %19 = vector.shape_cast %18 : vector<1x256x256xbf16> to vector<256x256xbf16>
    %cst_20 = arith.constant dense<0.000000e+00> : vector<8x256xf32>
    %20 = tpu.matmul %17, %19, %cst_20 {dimension_numbers = #tpu.dot_dimension_numbers<[1], [0], [0], [1], [0, 0, 1, 1], [], []>} : vector<8x256xbf16>, vector<256x256xbf16>, vector<8x256xf32> -> vector<8x256xf32>
    %21 = arith.addf %16, %20 : vector<8x256xf32>
    %c2 = arith.constant 2 : index
    %c0_21 = arith.constant 0 : index
    %22 = vector.load %arg9[%c2, %c0_21] : memref<10x256xf32, #tpu.memory_space<vmem>>, vector<8x256xf32>
    %23 = arith.truncf %22 : vector<8x256xf32> to vector<8x256xbf16>
    %c2_22 = arith.constant 2 : index
    %c0_23 = arith.constant 0 : index
    %c0_24 = arith.constant 0 : index
    %24 = vector.load %arg3[%c2_22, %c0_23, %c0_24] : memref<3x256x256xbf16, #tpu.memory_space<vmem>>, vector<1x256x256xbf16>
    %25 = vector.shape_cast %24 : vector<1x256x256xbf16> to vector<256x256xbf16>
    %cst_25 = arith.constant dense<0.000000e+00> : vector<8x256xf32>
    %26 = tpu.matmul %23, %25, %cst_25 {dimension_numbers = #tpu.dot_dimension_numbers<[1], [0], [0], [1], [0, 0, 1, 1], [], []>} : vector<8x256xbf16>, vector<256x256xbf16>, vector<8x256xf32> -> vector<8x256xf32>
    %27 = arith.addf %21, %26 : vector<8x256xf32>
    %c0_26 = arith.constant 0 : index
    %c0_27 = arith.constant 0 : index
    %28 = vector.load %arg6[%c0_26, %c0_27] : memref<1x256xf32, #tpu.memory_space<vmem>>, vector<1x256xf32>
    %29 = vector.broadcast %28 : vector<1x256xf32> to vector<8x256xf32>
    %30 = arith.addf %27, %29 : vector<8x256xf32>
    %31 = vector.extract_strided_slice %1 {offsets = [0, 128], sizes = [8, 128], strides = [1, 1]} : vector<8x512xbf16> to vector<8x128xbf16>
    %c0_28 = arith.constant 0 : index
    %c0_29 = arith.constant 0 : index
    %32 = vector.load %arg4[%c0_28, %c0_29] : memref<128x256xbf16, #tpu.memory_space<vmem>>, vector<128x256xbf16>
    %cst_30 = arith.constant dense<0.000000e+00> : vector<8x256xf32>
    %33 = tpu.matmul %31, %32, %cst_30 {dimension_numbers = #tpu.dot_dimension_numbers<[1], [0], [0], [1], [0, 0, 1, 1], [], []>} : vector<8x128xbf16>, vector<128x256xbf16>, vector<8x256xf32> -> vector<8x256xf32>
    %c0_31 = arith.constant 0 : index
    %c0_32 = arith.constant 0 : index
    %34 = vector.load %arg7[%c0_31, %c0_32] : memref<1x256xf32, #tpu.memory_space<vmem>>, vector<1x256xf32>
    %35 = vector.broadcast %34 : vector<1x256xf32> to vector<8x256xf32>
    %36 = arith.addf %33, %35 : vector<8x256xf32>
    %37 = arith.addf %30, %36 : vector<8x256xf32>
    %cst_33 = arith.constant 0.000000e+00 : f32
    %38 = vector.broadcast %cst_33 : f32 to vector<8x256xf32>
    %39 = arith.maximumf %37, %38 : vector<8x256xf32>
    %40 = arith.truncf %39 : vector<8x256xf32> to vector<8x256xbf16>
    %c0_34 = arith.constant 0 : index
    %c0_35 = arith.constant 0 : index
    %c0_36 = arith.constant 0 : index
    %41 = vector.load %arg8[%c0_34, %c0_35, %c0_36] : memref<1x8x256xbf16, #tpu.memory_space<vmem>>, vector<1x8x256xbf16>
    %42 = vector.shape_cast %41 : vector<1x8x256xbf16> to vector<8x256xbf16>
    %43 = vector.shape_cast %40 : vector<8x256xbf16> to vector<1x8x256xbf16>
    tpu.vector_store %arg8[%c0_34, %c0_35, %c0_36], %43 {strides = array<i32>} : memref<1x8x256xbf16, #tpu.memory_space<vmem>>, vector<1x8x256xbf16>,
    return
  }
  func.func @transform_0(%arg0: i32) -> (i32, i32, i32) {
    %c0_i32 = arith.constant 0 : i32
    %c0_i32_0 = arith.constant 0 : i32
    %c0_i32_1 = arith.constant 0 : i32
    return %arg0, %c0_i32, %c0_i32_0 : i32, i32, i32
  }
  func.func @transform_1(%arg0: i32) -> (i32, i32) {
    %c0_i32 = arith.constant 0 : i32
    %c0_i32_0 = arith.constant 0 : i32
    %c0_i32_1 = arith.constant 0 : i32
    return %c0_i32, %c0_i32_0 : i32, i32
  }
  func.func @transform_2(%arg0: i32) -> (i32, i32, i32) {
    %c0_i32 = arith.constant 0 : i32
    %c0_i32_0 = arith.constant 0 : i32
    %c0_i32_1 = arith.constant 0 : i32
    %c0_i32_2 = arith.constant 0 : i32
    return %c0_i32, %c0_i32_0, %c0_i32_1 : i32, i32, i32
  }
  func.func @transform_3(%arg0: i32) -> (i32, i32) {
    %c0_i32 = arith.constant 0 : i32
    %c0_i32_0 = arith.constant 0 : i32
    %c0_i32_1 = arith.constant 0 : i32
    return %c0_i32, %c0_i32_0 : i32, i32
  }
  func.func @transform_4(%arg0: i32) -> (i32, i32) {
    %c0_i32 = arith.constant 0 : i32
    %c0_i32_0 = arith.constant 0 : i32
    %c0_i32_1 = arith.constant 0 : i32
    return %c0_i32, %c0_i32_0 : i32, i32
  }
  func.func @transform_5(%arg0: i32) -> (i32, i32) {
    %c0_i32 = arith.constant 0 : i32
    %c0_i32_0 = arith.constant 0 : i32
    %c0_i32_1 = arith.constant 0 : i32
    return %c0_i32, %c0_i32_0 : i32, i32
  }
  func.func @transform_6(%arg0: i32) -> (i32, i32) {
    %c0_i32 = arith.constant 0 : i32
    %c0_i32_0 = arith.constant 0 : i32
    %c0_i32_1 = arith.constant 0 : i32
    return %c0_i32, %c0_i32_0 : i32, i32
  }
  func.func @transform_7(%arg0: i32) -> (i32, i32, i32) {
    %c0_i32 = arith.constant 0 : i32
    %c0_i32_0 = arith.constant 0 : i32
    %c0_i32_1 = arith.constant 0 : i32
    return %arg0, %c0_i32, %c0_i32_0 : i32, i32, i32
  }
}

</mosaic_0001>

<bundles_post_ra>
// kernel: resnet_a_forward.4
= control target key start
LH: loop header
LB: loop body
LE: loop exit
PB: predicated region body
PF: predicated region fallthrough
CT: control target
= control target key end

     0   :  { %s2446_s12 = smov 0   ;;  %s2448_s13 = smov 0   ;;  %s2936_s0 = inlined_call_operand.vmem [shape: bf16[1796,512], index: 0, kind: input, shape index: {}]   ;;  %s2937_s1 = inlined_call_operand.vmem [shape: bf16[128,128], index: 1, kind: input, shape index: {}]   ;;  %s2938_s2 = inlined_call_operand.vmem [shape: f32[1,128], index: 2, kind: input, shape index: {}]   ;;  %s2939_s3 = inlined_call_operand.vmem [shape: bf16[1796,128], index: 3, kind: output, shape index: {}]  }
   0x1   :  { %s2450_s14 = smov 0  }
   0x2 LB: > { %s2459_s15 = sadd.s32 4294967295, %s2392_s14   ;;  %s2461_s16 = sadd.s32 1, %s2392_s14   ;;  %s2392_s14 = sphi %s2450_s14, %s2948_s14   ;;  %s2388_s13 = sphi %s2448_s13, %s2947_s13   ;;  %s2384_s12 = sphi %s2446_s12, %s2946_s12  }
   0x3   : > { %s85_s17 = ssub.s32 %s2392_s14, %s2461_s16  ;;  %s88_s18 = sadd.s32 1, %s2388_s13 }
   0x4   : > { %p86_p0 = scmp.eq.s32.totalorder %s85_s17, 0  ;;  %p98_p1 = scmp.ne.s32.totalorder %s2388_s13, %s2384_s12 }
   0x5   : > { %p99_p2 = scmp.eq.s32.totalorder %s2459_s15, 7  ;;  %p1767_p3 = scmp.ge.s32.totalorder %s2392_s14, 1 }
   0x6   : > { %s2469_s19 = scalar_select %p86_p0, %s2388_s13, %s88_s18  }
   0x7   : > { %p2471_p4 = por %p99_p2, %p98_p1  ;;  %p149_p5 = scmp.lt.s32.totalorder %s2392_s14, 9 }
   0x9   : > { %p150_p6 = pnand %p1767_p3, %p149_p5 }
   0xa   : > { %s2485_s27 = sshll.u32 (!%p150_p6), %s2459_s15, 5  ;;  %s175_s24 = sand.u32 (!%p150_p6), 1, %s2384_s12  }
   0xb   : > { %153 = sbr.rel (%p150_p6) target bundleno = 504 (0x1f8), region = 32  ;;  %p184_p7 = scmp.lt.s32.totalorder (!%p150_p6), %s2485_s27, 224 }
   0xc   : > { %s1768_s25 = sshll.u32 (!%p150_p6), %s175_s24, 7 }
   0xd   : > { %s2605_s12 = scalar_lea.vmem (!%p150_p6), [#allocation2], %s1768_s25  }
  0x10   : > { %v2085_v0 = vld [vmem:[%s2937_s1 + $0x38] sm:$0xff]  ;;  %v2084_v1 = vld [vmem:[%s2937_s1 + $0x30] sm:$0xff]  ;;  %v2083_v2 = vld [vmem:[%s2937_s1 + $0x28] sm:$0xff]  ;;  %s185_s5 = scalar_select %p184_p7, %s2485_s27, 224 }
  0x11   : > { %396 = vmatpush.bf16.msra.mxu0 %v2085_v0  ;;  %645 = vmatpush.bf16.msra.mxu1 %v2085_v0  ;;  %v2082_v3 = vld [vmem:[%s2937_s1 + $0x20] sm:$0xff]  ;;  %v2081_v4 = vld [vmem:[%s2937_s1 + $0x18] sm:$0xff]  ;;  %v2080_v5 = vld [vmem:[%s2937_s1 + $0x10] sm:$0xff]  ;;  %s1432_s29 = ssub.s32 (%p2471_p4), 225, %s2485_s27  ;;  %s2150_s30 = sshll.u32 (%p2471_p4), %s2459_s15, 7 }
  0x12   : > { %926 = vmatpush.bf16.msra.mxu2 %v2085_v0  ;;  %1207 = vmatpush.bf16.msra.mxu3 %v2085_v0  ;;  %s2077_s8 = sshll.u32 %s185_s5, 4  ;;  %v2079_v6 = vld [vmem:[%s2937_s1 + $0x8] sm:$0xff]  ;;  %v2078_v7 = vld [vmem:[%s2937_s1] sm:$0xff]  ;;  %p1433_p8 = scmp.lt.s32.totalorder (%p2471_p4), %s1432_s29, 32 }
  0x13   : > { %s2504_s17 = scalar_lea.vmem %s2936_s0, %s2077_s8  ;;  %s2801_s6 = scalar_lea.vmem (%p2471_p4), %s2939_s3, %s2150_s30  }
  0x14   : > { %v1774_v8 = vld [vmem:[%s2504_s17] sm:$0xf]  ;;  %v2086_v9 = vld [vmem:[%s2504_s17 + $0xc] sm:$0xf0]  ;;  %v1870_v10 = vld [vmem:[%s2504_s17 + $0x4] sm:$0xf] }
  0x15   : > { %397 = vmatpush.bf16.msra.mxu0 %v2084_v1  ;;  %646 = vmatpush.bf16.msra.mxu1 %v2084_v1  ;;  %v2102_v11 = vld [vmem:[%s2504_s17 + $0x10] sm:$0xf0]  ;;  %v1934_v12 = vld [vmem:[%s2504_s17 + $0x8] sm:$0xf]  ;;  %v2118_v13 = vld [vmem:[%s2504_s17 + $0x14] sm:$0xf0]  ;;  %v1775_v16 = vor.u32 %v2086_v9, %v1774_v8 }
  0x16   : > { %927 = vmatpush.bf16.msra.mxu2 %v2084_v1  ;;  %1208 = vmatpush.bf16.msra.mxu3 %v2084_v1  ;;  %v1998_v14 = vld [vmem:[%s2504_s17 + $0xc] sm:$0xf]  ;;  %v2134_v15 = vld [vmem:[%s2504_s17 + $0x18] sm:$0xf0]  ;;  %v1871_v17 = vor.u32 %v2102_v11, %v1870_v10  ;;  %v1935_v18 = vor.u32 %v2118_v13, %v1934_v12  ;;  %v1778_v20 = vld [vmem:[%s2504_s17 + $0x20] sm:$0xf] }
  0x17   : > { %v1999_v19 = vor.u32 %v2134_v15, %v1998_v14  ;;  %v2087_v21 = vld [vmem:[%s2504_s17 + $0x2c] sm:$0xf0]  ;;  %v1874_v22 = vld [vmem:[%s2504_s17 + $0x24] sm:$0xf]  ;;  %v2103_v23 = vld [vmem:[%s2504_s17 + $0x30] sm:$0xf0] }
  0x18   : > { %v1938_v24 = vld [vmem:[%s2504_s17 + $0x28] sm:$0xf]  ;;  %v2119_v25 = vld [vmem:[%s2504_s17 + $0x34] sm:$0xf0]  ;;  %v2002_v26 = vld [vmem:[%s2504_s17 + $0x2c] sm:$0xf]  ;;  %v1779_v28 = vor.u32 %v2087_v21, %v1778_v20  ;;  %v1875_v29 = vor.u32 %v2103_v23, %v1874_v22 }
  0x19   : > { %398 = vmatpush.bf16.msra.mxu0 %v2083_v2  ;;  %647 = vmatpush.bf16.msra.mxu1 %v2083_v2  ;;  %v2135_v27 = vld [vmem:[%s2504_s17 + $0x38] sm:$0xf0]  ;;  %v1939_v30 = vor.u32 %v2119_v25, %v1938_v24  ;;  %v1782_v32 = vld [vmem:[%s2504_s17 + $0x40] sm:$0xf]  ;;  %v2088_v33 = vld [vmem:[%s2504_s17 + $0x4c] sm:$0xf0] }
  0x1a   : > { %928 = vmatpush.bf16.msra.mxu2 %v2083_v2  ;;  %1209 = vmatpush.bf16.msra.mxu3 %v2083_v2  ;;  %v2003_v31 = vor.u32 %v2135_v27, %v2002_v26  ;;  %v1878_v34 = vld [vmem:[%s2504_s17 + $0x44] sm:$0xf]  ;;  %v2104_v35 = vld [vmem:[%s2504_s17 + $0x50] sm:$0xf0]  ;;  %v1942_v36 = vld [vmem:[%s2504_s17 + $0x48] sm:$0xf]  ;;  %v1783_v40 = vor.u32 %v2088_v33, %v1782_v32 }
  0x1b   : > { %v2120_v37 = vld [vmem:[%s2504_s17 + $0x54] sm:$0xf0]  ;;  %v2006_v38 = vld [vmem:[%s2504_s17 + $0x4c] sm:$0xf]  ;;  %v2136_v39 = vld [vmem:[%s2504_s17 + $0x58] sm:$0xf0]  ;;  %v1879_v41 = vor.u32 %v2104_v35, %v1878_v34 }
  0x1c   : > { %v1943_v42 = vor.u32 %v2120_v37, %v1942_v36  ;;  %v2007_v43 = vor.u32 %v2136_v39, %v2006_v38  ;;  %v1786_v44 = vld [vmem:[%s2504_s17 + $0x60] sm:$0xf]  ;;  %v2089_v45 = vld [vmem:[%s2504_s17 + $0x6c] sm:$0xf0]  ;;  %v1882_v46 = vld [vmem:[%s2504_s17 + $0x64] sm:$0xf] }
  0x1d   : > { %399 = vmatpush.bf16.msra.mxu0 %v2082_v3  ;;  %648 = vmatpush.bf16.msra.mxu1 %v2082_v3  ;;  %v2105_v47 = vld [vmem:[%s2504_s17 + $0x70] sm:$0xf0]  ;;  %v1946_v48 = vld [vmem:[%s2504_s17 + $0x68] sm:$0xf]  ;;  %v2121_v49 = vld [vmem:[%s2504_s17 + $0x74] sm:$0xf0]  ;;  %v1787_v52 = vor.u32 %v2089_v45, %v1786_v44 }
  0x1e   : > { %929 = vmatpush.bf16.msra.mxu2 %v2082_v3  ;;  %1210 = vmatpush.bf16.msra.mxu3 %v2082_v3  ;;  %v2010_v50 = vld [vmem:[%s2504_s17 + $0x6c] sm:$0xf]  ;;  %v2137_v51 = vld [vmem:[%s2504_s17 + $0x78] sm:$0xf0]  ;;  %v1883_v53 = vor.u32 %v2105_v47, %v1882_v46  ;;  %v1947_v54 = vor.u32 %v2121_v49, %v1946_v48  ;;  %v1790_v56 = vld [vmem:[%s2504_s17 + $0x80] sm:$0xf] }
  0x1f   : > { %v2011_v55 = vor.u32 %v2137_v51, %v2010_v50  ;;  %v2090_v57 = vld [vmem:[%s2504_s17 + $0x8c] sm:$0xf0]  ;;  %v1886_v58 = vld [vmem:[%s2504_s17 + $0x84] sm:$0xf]  ;;  %v2106_v59 = vld [vmem:[%s2504_s17 + $0x90] sm:$0xf0] }
  0x20   : > { %v1950_v60 = vld [vmem:[%s2504_s17 + $0x88] sm:$0xf]  ;;  %v2122_v61 = vld [vmem:[%s2504_s17 + $0x94] sm:$0xf0]  ;;  %v2014_v62 = vld [vmem:[%s2504_s17 + $0x8c] sm:$0xf]  ;;  %v1791_v0 = vor.u32 %v2090_v57, %v1790_v56  ;;  %v1887_v1 = vor.u32 %v2106_v59, %v1886_v58 }
  0x21   : > { %400 = vmatpush.bf16.msra.mxu0 %v2081_v4  ;;  %649 = vmatpush.bf16.msra.mxu1 %v2081_v4  ;;  %v2138_v63 = vld [vmem:[%s2504_s17 + $0x98] sm:$0xf0]  ;;  %v1951_v2 = vor.u32 %v2122_v61, %v1950_v60  ;;  %v1954_v8 = vld [vmem:[%s2504_s17 + $0xa8] sm:$0xf]  ;;  %v2123_v9 = vld [vmem:[%s2504_s17 + $0xb4] sm:$0xf0] }
  0x22   : > { %930 = vmatpush.bf16.msra.mxu2 %v2081_v4  ;;  %1211 = vmatpush.bf16.msra.mxu3 %v2081_v4  ;;  %v2015_v3 = vor.u32 %v2138_v63, %v2014_v62  ;;  %v1794_v4 = vld [vmem:[%s2504_s17 + $0xa0] sm:$0xf]  ;;  %v2018_v10 = vld [vmem:[%s2504_s17 + $0xac] sm:$0xf]  ;;  %v2139_v11 = vld [vmem:[%s2504_s17 + $0xb8] sm:$0xf0]  ;;  %v1955_v14 = vor.u32 %v2123_v9, %v1954_v8 }
  0x23   : > { %v2019_v15 = vor.u32 %v2139_v11, %v2018_v10  ;;  %v1958_v20 = vld [vmem:[%s2504_s17 + $0xc8] sm:$0xf]  ;;  %v2124_v21 = vld [vmem:[%s2504_s17 + $0xd4] sm:$0xf0]  ;;  %v2022_v22 = vld [vmem:[%s2504_s17 + $0xcc] sm:$0xf] }
  0x24   : > { %v2140_v23 = vld [vmem:[%s2504_s17 + $0xd8] sm:$0xf0]  ;;  %v1959_v26 = vor.u32 %v2124_v21, %v1958_v20  ;;  %v1962_v32 = vld [vmem:[%s2504_s17 + $0xe8] sm:$0xf]  ;;  %v2125_v33 = vld [vmem:[%s2504_s17 + $0xf4] sm:$0xf0] }
  0x25   : > { %401 = vmatpush.bf16.msra.mxu0 %v2080_v5  ;;  %650 = vmatpush.bf16.msra.mxu1 %v2080_v5  ;;  %v2023_v27 = vor.u32 %v2140_v23, %v2022_v22  ;;  %v2026_v34 = vld [vmem:[%s2504_s17 + $0xec] sm:$0xf]  ;;  %v2141_v35 = vld [vmem:[%s2504_s17 + $0xf8] sm:$0xf0]  ;;  %v1963_v38 = vor.u32 %v2125_v33, %v1962_v32  ;;  %v1966_v44 = vld [vmem:[%s2504_s17 + $0x108] sm:$0xf] }
  0x26   : > { %931 = vmatpush.bf16.msra.mxu2 %v2080_v5  ;;  %1212 = vmatpush.bf16.msra.mxu3 %v2080_v5  ;;  %v2091_v5 = vld [vmem:[%s2504_s17 + $0xac] sm:$0xf0]  ;;  %v2027_v39 = vor.u32 %v2141_v35, %v2026_v34  ;;  %v2126_v45 = vld [vmem:[%s2504_s17 + $0x114] sm:$0xf0]  ;;  %v2030_v46 = vld [vmem:[%s2504_s17 + $0x10c] sm:$0xf] }
  0x27   : > { %v1795_v12 = vor.u32 %v2091_v5, %v1794_v4  ;;  %v2142_v47 = vld [vmem:[%s2504_s17 + $0x118] sm:$0xf0]  ;;  %v1906_v4 = vld [vmem:[%s2504_s17 + $0x124] sm:$0xf]  ;;  %v2111_v5 = vld [vmem:[%s2504_s17 + $0x130] sm:$0xf0] }
  0x28   : > { %v2127_v8 = vld [vmem:[%s2504_s17 + $0x134] sm:$0xf0]  ;;  %v2034_v9 = vld [vmem:[%s2504_s17 + $0x12c] sm:$0xf]  ;;  %v2143_v10 = vld [vmem:[%s2504_s17 + $0x138] sm:$0xf0] }
  0x29   : > { %402 = vmatpush.bf16.msra.mxu0 %v2079_v6  ;;  %651 = vmatpush.bf16.msra.mxu1 %v2079_v6 }
  0x2a   : > { %932 = vmatpush.bf16.msra.mxu2 %v2079_v6  ;;  %1213 = vmatpush.bf16.msra.mxu3 %v2079_v6  ;;  %v1890_v6 = vld [vmem:[%s2504_s17 + $0xa4] sm:$0xf] }
  0x2d   : > { %403 = vmatpush.bf16.msra.mxu0 %v2078_v7  ;;  %652 = vmatpush.bf16.msra.mxu1 %v2078_v7 }
  0x2e   : > { %933 = vmatpush.bf16.msra.mxu2 %v2078_v7  ;;  %1214 = vmatpush.bf16.msra.mxu3 %v2078_v7  ;;  %v2107_v7 = vld [vmem:[%s2504_s17 + $0xb0] sm:$0xf0] }
  0x2f   : > { %v1891_v13 = vor.u32 %v2107_v7, %v1890_v6  ;;  %v1970_v6 = vld [vmem:[%s2504_s17 + $0x128] sm:$0xf] }
  0x30   : > { %404 = vmatmul.bf16.vlgmr.msra.gmra.mxu0 %v1775_v16  ;;  %653 = vmatmul.bf16.vlgmr.msra.gmra.mxu1 %v1871_v17  ;;  %v1798_v16 = vld [vmem:[%s2504_s17 + $0xc0] sm:$0xf]  ;;  %v2092_v17 = vld [vmem:[%s2504_s17 + $0xcc] sm:$0xf0]  ;;  %v1971_v23 = vor.u32 %v2127_v8, %v1970_v6 }
  0x31   : > { %934 = vmatmul.bf16.vlgmr.msra.gmra.mxu2 %v1935_v18  ;;  %1215 = vmatmul.bf16.vlgmr.msra.gmra.mxu3 %v1999_v19  ;;  %v1894_v18 = vld [vmem:[%s2504_s17 + $0xc4] sm:$0xf]  ;;  %v2108_v19 = vld [vmem:[%s2504_s17 + $0xd0] sm:$0xf0]  ;;  %v1799_v24 = vor.u32 %v2092_v17, %v1798_v16 }
  0x32   : > { %v1895_v25 = vor.u32 %v2108_v19, %v1894_v18  ;;  %v1907_v18 = vor.u32 %v2111_v5, %v1906_v4 }
  0x40   : > { %409 = vmatmul.bf16.gmra.mxu0 %v1779_v28  ;;  %658 = vmatmul.bf16.gmra.mxu1 %v1875_v29  ;;  %v1802_v28 = vld [vmem:[%s2504_s17 + $0xe0] sm:$0xf]  ;;  %v2093_v29 = vld [vmem:[%s2504_s17 + $0xec] sm:$0xf0] }
  0x41   : > { %939 = vmatmul.bf16.gmra.mxu2 %v1939_v30  ;;  %1220 = vmatmul.bf16.gmra.mxu3 %v2003_v31  ;;  %v1898_v30 = vld [vmem:[%s2504_s17 + $0xe4] sm:$0xf]  ;;  %v2109_v31 = vld [vmem:[%s2504_s17 + $0xf0] sm:$0xf0]  ;;  %v1803_v36 = vor.u32 %v2093_v29, %v1802_v28 }
  0x42   : > { %v1899_v37 = vor.u32 %v2109_v31, %v1898_v30 }
  0x50   : > { %414 = vmatmul.bf16.gmra.mxu0 %v1783_v40  ;;  %663 = vmatmul.bf16.gmra.mxu1 %v1879_v41  ;;  %v1806_v40 = vld [vmem:[%s2504_s17 + $0x100] sm:$0xf]  ;;  %v2094_v41 = vld [vmem:[%s2504_s17 + $0x10c] sm:$0xf0] }
  0x51   : > { %944 = vmatmul.bf16.gmra.mxu2 %v1943_v42  ;;  %1225 = vmatmul.bf16.gmra.mxu3 %v2007_v43  ;;  %v1902_v42 = vld [vmem:[%s2504_s17 + $0x104] sm:$0xf]  ;;  %v2110_v43 = vld [vmem:[%s2504_s17 + $0x110] sm:$0xf0]  ;;  %v1807_v48 = vor.u32 %v2094_v41, %v1806_v40 }
  0x52   : > { %v1903_v49 = vor.u32 %v2110_v43, %v1902_v42 }
  0x60   : > { %419 = vmatmul.bf16.gmra.mxu0 %v1787_v52  ;;  %668 = vmatmul.bf16.gmra.mxu1 %v1883_v53  ;;  %v1967_v52 = vor.u32 %v2126_v45, %v1966_v44  ;;  %v2031_v53 = vor.u32 %v2142_v47, %v2030_v46  ;;  %v1814_v45 = vld [vmem:[%s2504_s17 + $0x140] sm:$0xf]  ;;  %v2096_v46 = vld [vmem:[%s2504_s17 + $0x14c] sm:$0xf0]  ;;  %v1910_v47 = vld [vmem:[%s2504_s17 + $0x144] sm:$0xf] }
  0x61   : > { %949 = vmatmul.bf16.gmra.mxu2 %v1947_v54  ;;  %1230 = vmatmul.bf16.gmra.mxu3 %v2011_v55  ;;  %v2584_v54 = vld [vmem:[%s2938_s2] ss:$0 sm:$0xff] }
  0x70   : > { %424 = vmatmul.bf16.gmra.mxu0 %v1791_v0  ;;  %673 = vmatmul.bf16.gmra.mxu1 %v1887_v1 }
  0x71   : > { %954 = vmatmul.bf16.gmra.mxu2 %v1951_v2  ;;  %1235 = vmatmul.bf16.gmra.mxu3 %v2015_v3  ;;  %v1810_v2 = vld [vmem:[%s2504_s17 + $0x120] sm:$0xf]  ;;  %v2095_v3 = vld [vmem:[%s2504_s17 + $0x12c] sm:$0xf0] }
  0x72   : > { %v1811_v17 = vor.u32 %v2095_v3, %v1810_v2 }
  0x80   : > { %429 = vmatmul.bf16.gmra.mxu0 %v1795_v12  ;;  %678 = vmatmul.bf16.gmra.mxu1 %v1891_v13 }
  0x81   : > { %959 = vmatmul.bf16.gmra.mxu2 %v1955_v14  ;;  %1240 = vmatmul.bf16.gmra.mxu3 %v2019_v15 }
  0x90   : > { %434 = vmatmul.bf16.gmra.mxu0 %v1799_v24  ;;  %683 = vmatmul.bf16.gmra.mxu1 %v1895_v25  ;;  %v2035_v24 = vor.u32 %v2143_v10, %v2034_v9 }
  0x91   : > { %964 = vmatmul.bf16.gmra.mxu2 %v1959_v26  ;;  %1245 = vmatmul.bf16.gmra.mxu3 %v2023_v27 }
  0xa0   : > { %439 = vmatmul.bf16.gmra.mxu0 %v1803_v36  ;;  %688 = vmatmul.bf16.gmra.mxu1 %v1899_v37 }
  0xa1   : > { %969 = vmatmul.bf16.gmra.mxu2 %v1963_v38  ;;  %1250 = vmatmul.bf16.gmra.mxu3 %v2027_v39 }
  0xad   : > { %v405_v50 = vpop.f32.mrf.mxu0  ;;  %v654_v51 = vpop.f32.mrf.mxu1 }
  0xae   : > { %v406_v55 = vadd.f32 %v2584_v54, %v405_v50  ;;  %v655_v56 = vadd.f32 %v2584_v54, %v654_v51  ;;  %v2128_v51 = vld [vmem:[%s2504_s17 + $0x154] sm:$0xf0] }
  0xb0   : > { %444 = vmatmul.bf16.gmra.mxu0 %v1807_v48  ;;  %693 = vmatmul.bf16.gmra.mxu1 %v1903_v49  ;;  %v485_v61 = vmax.f32 %v406_v55, 0.0  ;;  %v734_v62 = vmax.f32 %v655_v56, 0.0  ;;  %v2112_v48 = vld [vmem:[%s2504_s17 + $0x150] sm:$0xf0]  ;;  %v1974_v49 = vld [vmem:[%s2504_s17 + $0x148] sm:$0xf] }
  0xb1   : > { %974 = vmatmul.bf16.gmra.mxu2 %v1967_v52  ;;  %1255 = vmatmul.bf16.gmra.mxu3 %v2031_v53  ;;  %v2038_v52 = vld [vmem:[%s2504_s17 + $0x14c] sm:$0xf]  ;;  %v2144_v53 = vld [vmem:[%s2504_s17 + $0x158] sm:$0xf0]  ;;  %v1975_v3 = vor.u32 %v2128_v51, %v1974_v49 }
  0xb2   : > { %v766_v7 = vmax.f32 %v485_v61, %v734_v62  ;;  %v1815_v61 = vor.u32 %v2096_v46, %v1814_v45  ;;  %v1911_v62 = vor.u32 %v2112_v48, %v1910_v47  ;;  %v2039_v4 = vor.u32 %v2144_v53, %v2038_v52 }
  0xb4   : > { %v935_v57 = vpop.f32.mrf.mxu2  ;;  %v1216_v58 = vpop.f32.mrf.mxu3 }
  0xb5   : > { %v407_v59 = vpop.f32.mrf.mxu0  ;;  %v656_v60 = vpop.f32.mrf.mxu1  ;;  %v936_v63 = vadd.f32 %v2584_v54, %v935_v57  ;;  %v1217_v12 = vadd.f32 %v2584_v54, %v1216_v58 }
  0xb6   : > { %v408_v0 = vadd.f32 %v2584_v54, %v407_v59  ;;  %v657_v1 = vadd.f32 %v2584_v54, %v656_v60 }
  0xb7   : > { %v1015_v11 = vmax.f32 %v936_v63, 0.0  ;;  %v1296_v26 = vmax.f32 %v1217_v12, 0.0 }
  0xb8   : > { %v486_v13 = vmax.f32 %v408_v0, 0.0  ;;  %v735_v14 = vmax.f32 %v657_v1, 0.0 }
  0xb9   : > { %v1047_v25 = vmax.f32 %v766_v7, %v1015_v11 }
  0xba   : > { %v767_v27 = vmax.f32 %v486_v13, %v735_v14 }
  0xbb   : > { %v1328_v33 = vmax.f32 %v1047_v25, %v1296_v26  ;;  %v1818_v25 = vld [vmem:[%s2504_s17 + $0x160] sm:$0xf]  ;;  %v2097_v26 = vld [vmem:[%s2504_s17 + $0x16c] sm:$0xf0] }
  0xbc   : > { %v937_v15 = vpop.f32.mrf.mxu2  ;;  %v1218_v16 = vpop.f32.mrf.mxu3 }
  0xbd   : > { %v938_v19 = vadd.f32 %v2584_v54, %v937_v15  ;;  %v1219_v20 = vadd.f32 %v2584_v54, %v1218_v16  ;;  %v410_v21 = vpop.f32.mrf.mxu0  ;;  %v659_v22 = vpop.f32.mrf.mxu1 }
  0xbe   : > { %v411_v31 = vadd.f32 %v2584_v54, %v410_v21  ;;  %v660_v32 = vadd.f32 %v2584_v54, %v659_v22 }
  0xbf   : > { %v1016_v28 = vmax.f32 %v938_v19, 0.0  ;;  %v1297_v30 = vmax.f32 %v1219_v20, 0.0 }
  0xc0   : > { %449 = vmatmul.bf16.gmra.mxu0 %v1811_v17  ;;  %698 = vmatmul.bf16.gmra.mxu1 %v1907_v18  ;;  %v487_v40 = vmax.f32 %v411_v31, 0.0  ;;  %v736_v41 = vmax.f32 %v660_v32, 0.0  ;;  %v2129_v31 = vld [vmem:[%s2504_s17 + $0x174] sm:$0xf0]  ;;  %v2042_v32 = vld [vmem:[%s2504_s17 + $0x16c] sm:$0xf] }
  0xc1   : > { %v1048_v29 = vmax.f32 %v767_v27, %v1016_v28  ;;  %979 = vmatmul.bf16.gmra.mxu2 %v1971_v23  ;;  %1260 = vmatmul.bf16.gmra.mxu3 %v2035_v24  ;;  %v1914_v27 = vld [vmem:[%s2504_s17 + $0x164] sm:$0xf]  ;;  %v2113_v28 = vld [vmem:[%s2504_s17 + $0x170] sm:$0xf0] }
  0xc2   : > { %v768_v50 = vmax.f32 %v487_v40, %v736_v41  ;;  %v1819_v40 = vor.u32 %v2097_v26, %v1818_v25  ;;  %v1915_v41 = vor.u32 %v2113_v28, %v1914_v27 }
  0xc3   : > { %v1329_v34 = vmax.f32 %v1048_v29, %v1297_v30  ;;  %v1978_v29 = vld [vmem:[%s2504_s17 + $0x168] sm:$0xf] }
  0xc4   : > { %v940_v35 = vpop.f32.mrf.mxu2  ;;  %v1221_v36 = vpop.f32.mrf.mxu3  ;;  %v1979_v46 = vor.u32 %v2129_v31, %v1978_v29 }
  0xc5   : > { %v2156_v37 = vpack.c.bf16 %v1329_v34, %v1328_v33  ;;  %v412_v38 = vpop.f32.mrf.mxu0  ;;  %v661_v39 = vpop.f32.mrf.mxu1  ;;  %v941_v42 = vadd.f32 %v2584_v54, %v940_v35  ;;  %v1222_v56 = vadd.f32 %v2584_v54, %v1221_v36  ;;  %v2145_v33 = vld [vmem:[%s2504_s17 + $0x178] sm:$0xf0] }
  0xc6   : > { %v413_v43 = vadd.f32 %v2584_v54, %v412_v38  ;;  %v662_v44 = vadd.f32 %v2584_v54, %v661_v39  ;;  %v2043_v47 = vor.u32 %v2145_v33, %v2042_v32 }
  0xc7   : > { %2157 = vst [vmem:[%s2605_s12] sm:$0xff] %v2156_v37   ;;  %v1017_v55 = vmax.f32 %v941_v42, 0.0  ;;  %v1298_v6 = vmax.f32 %v1222_v56, 0.0 }
  0xc8   : > { %v488_v57 = vmax.f32 %v413_v43, 0.0  ;;  %v737_v58 = vmax.f32 %v662_v44, 0.0 }
  0xc9   : > { %v1049_v5 = vmax.f32 %v768_v50, %v1017_v55 }
  0xca   : > { %v769_v7 = vmax.f32 %v488_v57, %v737_v58 }
  0xcb   : > { %v1330_v13 = vmax.f32 %v1049_v5, %v1298_v6  ;;  %v1822_v5 = vld [vmem:[%s2504_s17 + $0x180] sm:$0xf]  ;;  %v2098_v6 = vld [vmem:[%s2504_s17 + $0x18c] sm:$0xf0] }
  0xcc   : > { %v942_v59 = vpop.f32.mrf.mxu2  ;;  %v1223_v60 = vpop.f32.mrf.mxu3 }
  0xcd   : > { %v943_v63 = vadd.f32 %v2584_v54, %v942_v59  ;;  %v1224_v0 = vadd.f32 %v2584_v54, %v1223_v60  ;;  %v415_v1 = vpop.f32.mrf.mxu0  ;;  %v664_v2 = vpop.f32.mrf.mxu1 }
  0xce   : > { %v416_v11 = vadd.f32 %v2584_v54, %v415_v1  ;;  %v665_v12 = vadd.f32 %v2584_v54, %v664_v2 }
  0xcf   : > { %v1018_v8 = vmax.f32 %v943_v63, 0.0  ;;  %v1299_v10 = vmax.f32 %v1224_v0, 0.0 }
  0xd0   : > { %454 = vmatmul.bf16.gmra.mxu0 %v1815_v61  ;;  %703 = vmatmul.bf16.gmra.mxu1 %v1911_v62  ;;  %v489_v20 = vmax.f32 %v416_v11, 0.0  ;;  %v738_v21 = vmax.f32 %v665_v12, 0.0  ;;  %v2130_v11 = vld [vmem:[%s2504_s17 + $0x194] sm:$0xf0]  ;;  %v2046_v12 = vld [vmem:[%s2504_s17 + $0x18c] sm:$0xf] }
  0xd1   : > { %v1050_v9 = vmax.f32 %v769_v7, %v1018_v8  ;;  %984 = vmatmul.bf16.gmra.mxu2 %v1975_v3  ;;  %1265 = vmatmul.bf16.gmra.mxu3 %v2039_v4  ;;  %v1918_v7 = vld [vmem:[%s2504_s17 + $0x184] sm:$0xf]  ;;  %v2114_v8 = vld [vmem:[%s2504_s17 + $0x190] sm:$0xf0] }
  0xd2   : > { %v770_v30 = vmax.f32 %v489_v20, %v738_v21  ;;  %v1823_v20 = vor.u32 %v2098_v6, %v1822_v5  ;;  %v1919_v21 = vor.u32 %v2114_v8, %v1918_v7 }
  0xd3   : > { %v1331_v14 = vmax.f32 %v1050_v9, %v1299_v10  ;;  %v1982_v9 = vld [vmem:[%s2504_s17 + $0x188] sm:$0xf] }
  0xd4   : > { %v945_v15 = vpop.f32.mrf.mxu2  ;;  %v1226_v16 = vpop.f32.mrf.mxu3  ;;  %v1983_v26 = vor.u32 %v2130_v11, %v1982_v9 }
  0xd5   : > { %v2161_v17 = vpack.c.bf16 %v1331_v14, %v1330_v13  ;;  %v417_v18 = vpop.f32.mrf.mxu0  ;;  %v666_v19 = vpop.f32.mrf.mxu1  ;;  %v946_v22 = vadd.f32 %v2584_v54, %v945_v15  ;;  %v1227_v35 = vadd.f32 %v2584_v54, %v1226_v16  ;;  %v2146_v13 = vld [vmem:[%s2504_s17 + $0x198] sm:$0xf0] }
  0xd6   : > { %v418_v23 = vadd.f32 %v2584_v54, %v417_v18  ;;  %v667_v24 = vadd.f32 %v2584_v54, %v666_v19  ;;  %v2047_v27 = vor.u32 %v2146_v13, %v2046_v12 }
  0xd7   : > { %2233 = vst [vmem:[%s2605_s12 + $0x8] sm:$0xff] %v2161_v17   ;;  %v1019_v34 = vmax.f32 %v946_v22, 0.0  ;;  %v1300_v49 = vmax.f32 %v1227_v35, 0.0 }
  0xd8   : > { %v490_v36 = vmax.f32 %v418_v23, 0.0  ;;  %v739_v37 = vmax.f32 %v667_v24, 0.0 }
  0xd9   : > { %v1051_v48 = vmax.f32 %v770_v30, %v1019_v34 }
  0xda   : > { %v771_v50 = vmax.f32 %v490_v36, %v739_v37 }
  0xdb   : > { %v1332_v57 = vmax.f32 %v1051_v48, %v1300_v49  ;;  %v1826_v48 = vld [vmem:[%s2504_s17 + $0x1a0] sm:$0xf]  ;;  %v2099_v49 = vld [vmem:[%s2504_s17 + $0x1ac] sm:$0xf0] }
  0xdc   : > { %v947_v38 = vpop.f32.mrf.mxu2  ;;  %v1228_v39 = vpop.f32.mrf.mxu3 }
  0xdd   : > { %v948_v42 = vadd.f32 %v2584_v54, %v947_v38  ;;  %v1229_v43 = vadd.f32 %v2584_v54, %v1228_v39  ;;  %v420_v44 = vpop.f32.mrf.mxu0  ;;  %v669_v45 = vpop.f32.mrf.mxu1 }
  0xde   : > { %v421_v55 = vadd.f32 %v2584_v54, %v420_v44  ;;  %v670_v56 = vadd.f32 %v2584_v54, %v669_v45 }
  0xdf   : > { %v1020_v51 = vmax.f32 %v948_v42, 0.0  ;;  %v1301_v53 = vmax.f32 %v1229_v43, 0.0 }
  0xe0   : > { %459 = vmatmul.bf16.gmra.mxu0 %v1819_v40  ;;  %708 = vmatmul.bf16.gmra.mxu1 %v1915_v41  ;;  %v491_v0 = vmax.f32 %v421_v55, 0.0  ;;  %v740_v1 = vmax.f32 %v670_v56, 0.0  ;;  %v2131_v55 = vld [vmem:[%s2504_s17 + $0x1b4] sm:$0xf0]  ;;  %v2050_v56 = vld [vmem:[%s2504_s17 + $0x1ac] sm:$0xf] }
  0xe1   : > { %v1052_v52 = vmax.f32 %v771_v50, %v1020_v51  ;;  %989 = vmatmul.bf16.gmra.mxu2 %v1979_v46  ;;  %1270 = vmatmul.bf16.gmra.mxu3 %v2043_v47  ;;  %v1922_v50 = vld [vmem:[%s2504_s17 + $0x1a4] sm:$0xf]  ;;  %v2115_v51 = vld [vmem:[%s2504_s17 + $0x1b0] sm:$0xf0] }
  0xe2   : > { %v772_v10 = vmax.f32 %v491_v0, %v740_v1  ;;  %v1827_v0 = vor.u32 %v2099_v49, %v1826_v48  ;;  %v1923_v1 = vor.u32 %v2115_v51, %v1922_v50 }
  0xe3   : > { %v1333_v58 = vmax.f32 %v1052_v52, %v1301_v53  ;;  %v1986_v52 = vld [vmem:[%s2504_s17 + $0x1a8] sm:$0xf] }
  0xe4   : > { %v950_v59 = vpop.f32.mrf.mxu2  ;;  %v1231_v60 = vpop.f32.mrf.mxu3  ;;  %v1987_v6 = vor.u32 %v2131_v55, %v1986_v52 }
  0xe5   : > { %v2166_v61 = vpack.c.bf16 %v1333_v58, %v1332_v57  ;;  %v422_v62 = vpop.f32.mrf.mxu0  ;;  %v671_v63 = vpop.f32.mrf.mxu1  ;;  %v951_v2 = vadd.f32 %v2584_v54, %v950_v59  ;;  %v1232_v15 = vadd.f32 %v2584_v54, %v1231_v60  ;;  %v2147_v57 = vld [vmem:[%s2504_s17 + $0x1b8] sm:$0xf0] }
  0xe6   : > { %v423_v3 = vadd.f32 %v2584_v54, %v422_v62  ;;  %v672_v4 = vadd.f32 %v2584_v54, %v671_v63  ;;  %v2051_v7 = vor.u32 %v2147_v57, %v2050_v56 }
  0xe7   : > { %2234 = vst [vmem:[%s2605_s12 + $0x10] sm:$0xff] %v2166_v61   ;;  %v1021_v14 = vmax.f32 %v951_v2, 0.0  ;;  %v1302_v29 = vmax.f32 %v1232_v15, 0.0 }
  0xe8   : > { %v492_v16 = vmax.f32 %v423_v3, 0.0  ;;  %v741_v17 = vmax.f32 %v672_v4, 0.0 }
  0xe9   : > { %v1053_v28 = vmax.f32 %v772_v10, %v1021_v14 }
  0xea   : > { %v773_v30 = vmax.f32 %v492_v16, %v741_v17 }
  0xeb   : > { %v1334_v36 = vmax.f32 %v1053_v28, %v1302_v29  ;;  %v1830_v28 = vld [vmem:[%s2504_s17 + $0x1c0] sm:$0xf]  ;;  %v2100_v29 = vld [vmem:[%s2504_s17 + $0x1cc] sm:$0xf0] }
  0xec   : > { %v952_v18 = vpop.f32.mrf.mxu2  ;;  %v1233_v19 = vpop.f32.mrf.mxu3 }
  0xed   : > { %v953_v22 = vadd.f32 %v2584_v54, %v952_v18  ;;  %v1234_v23 = vadd.f32 %v2584_v54, %v1233_v19  ;;  %v425_v24 = vpop.f32.mrf.mxu0  ;;  %v674_v25 = vpop.f32.mrf.mxu1 }
  0xee   : > { %v426_v34 = vadd.f32 %v2584_v54, %v425_v24  ;;  %v675_v35 = vadd.f32 %v2584_v54, %v674_v25 }
  0xef   : > { %v1022_v31 = vmax.f32 %v953_v22, 0.0  ;;  %v1303_v33 = vmax.f32 %v1234_v23, 0.0 }
  0xf0   : > { %464 = vmatmul.bf16.gmra.mxu0 %v1823_v20  ;;  %713 = vmatmul.bf16.gmra.mxu1 %v1919_v21  ;;  %v493_v43 = vmax.f32 %v426_v34, 0.0  ;;  %v742_v44 = vmax.f32 %v675_v35, 0.0  ;;  %v2132_v34 = vld [vmem:[%s2504_s17 + $0x1d4] sm:$0xf0]  ;;  %v2054_v35 = vld [vmem:[%s2504_s17 + $0x1cc] sm:$0xf] }
  0xf1   : > { %v1054_v32 = vmax.f32 %v773_v30, %v1022_v31  ;;  %994 = vmatmul.bf16.gmra.mxu2 %v1983_v26  ;;  %1275 = vmatmul.bf16.gmra.mxu3 %v2047_v27  ;;  %v1926_v30 = vld [vmem:[%s2504_s17 + $0x1c4] sm:$0xf]  ;;  %v2116_v31 = vld [vmem:[%s2504_s17 + $0x1d0] sm:$0xf0] }
  0xf2   : > { %v774_v53 = vmax.f32 %v493_v43, %v742_v44  ;;  %v1831_v43 = vor.u32 %v2100_v29, %v1830_v28  ;;  %v1927_v44 = vor.u32 %v2116_v31, %v1926_v30 }
  0xf3   : > { %v1335_v37 = vmax.f32 %v1054_v32, %v1303_v33  ;;  %v1990_v32 = vld [vmem:[%s2504_s17 + $0x1c8] sm:$0xf] }
  0xf4   : > { %v955_v38 = vpop.f32.mrf.mxu2  ;;  %v1236_v39 = vpop.f32.mrf.mxu3  ;;  %v1991_v49 = vor.u32 %v2132_v34, %v1990_v32 }
  0xf5   : > { %v2171_v40 = vpack.c.bf16 %v1335_v37, %v1334_v36  ;;  %v427_v41 = vpop.f32.mrf.mxu0  ;;  %v676_v42 = vpop.f32.mrf.mxu1  ;;  %v956_v45 = vadd.f32 %v2584_v54, %v955_v38  ;;  %v1237_v59 = vadd.f32 %v2584_v54, %v1236_v39  ;;  %v2148_v36 = vld [vmem:[%s2504_s17 + $0x1d8] sm:$0xf0] }
  0xf6   : > { %v428_v46 = vadd.f32 %v2584_v54, %v427_v41  ;;  %v677_v47 = vadd.f32 %v2584_v54, %v676_v42  ;;  %v2055_v50 = vor.u32 %v2148_v36, %v2054_v35 }
  0xf7   : > { %2235 = vst [vmem:[%s2605_s12 + $0x18] sm:$0xff] %v2171_v40   ;;  %v1023_v58 = vmax.f32 %v956_v45, 0.0  ;;  %v1304_v9 = vmax.f32 %v1237_v59, 0.0 }
  0xf8   : > { %v494_v60 = vmax.f32 %v428_v46, 0.0  ;;  %v743_v61 = vmax.f32 %v677_v47, 0.0 }
  0xf9   : > { %v1055_v8 = vmax.f32 %v774_v53, %v1023_v58 }
  0xfa   : > { %v775_v10 = vmax.f32 %v494_v60, %v743_v61 }
  0xfb   : > { %v1336_v16 = vmax.f32 %v1055_v8, %v1304_v9  ;;  %v1834_v8 = vld [vmem:[%s2504_s17 + $0x1e0] sm:$0xf]  ;;  %v2101_v9 = vld [vmem:[%s2504_s17 + $0x1ec] sm:$0xf0] }
  0xfc   : > { %v957_v62 = vpop.f32.mrf.mxu2  ;;  %v1238_v63 = vpop.f32.mrf.mxu3 }
  0xfd   : > { %v958_v2 = vadd.f32 %v2584_v54, %v957_v62  ;;  %v1239_v3 = vadd.f32 %v2584_v54, %v1238_v63  ;;  %v430_v4 = vpop.f32.mrf.mxu0  ;;  %v679_v5 = vpop.f32.mrf.mxu1 }
  0xfe   : > { %v431_v14 = vadd.f32 %v2584_v54, %v430_v4  ;;  %v680_v15 = vadd.f32 %v2584_v54, %v679_v5 }
  0xff   : > { %v1024_v11 = vmax.f32 %v958_v2, 0.0  ;;  %v1305_v13 = vmax.f32 %v1239_v3, 0.0 }
 0x100   : > { %469 = vmatmul.bf16.gmra.mxu0 %v1827_v0  ;;  %718 = vmatmul.bf16.gmra.mxu1 %v1923_v1  ;;  %v495_v23 = vmax.f32 %v431_v14, 0.0  ;;  %v744_v24 = vmax.f32 %v680_v15, 0.0  ;;  %v2133_v14 = vld [vmem:[%s2504_s17 + $0x1f4] sm:$0xf0]  ;;  %v2058_v15 = vld [vmem:[%s2504_s17 + $0x1ec] sm:$0xf] }
 0x101   : > { %v1056_v12 = vmax.f32 %v775_v10, %v1024_v11  ;;  %999 = vmatmul.bf16.gmra.mxu2 %v1987_v6  ;;  %1280 = vmatmul.bf16.gmra.mxu3 %v2051_v7  ;;  %v1930_v10 = vld [vmem:[%s2504_s17 + $0x1e4] sm:$0xf]  ;;  %v2117_v11 = vld [vmem:[%s2504_s17 + $0x1f0] sm:$0xf0] }
 0x102   : > { %v776_v33 = vmax.f32 %v495_v23, %v744_v24  ;;  %v1835_v23 = vor.u32 %v2101_v9, %v1834_v8  ;;  %v1931_v24 = vor.u32 %v2117_v11, %v1930_v10 }
 0x103   : > { %v1337_v17 = vmax.f32 %v1056_v12, %v1305_v13  ;;  %v1994_v12 = vld [vmem:[%s2504_s17 + $0x1e8] sm:$0xf] }
 0x104   : > { %v960_v18 = vpop.f32.mrf.mxu2  ;;  %v1241_v19 = vpop.f32.mrf.mxu3  ;;  %v1995_v29 = vor.u32 %v2133_v14, %v1994_v12 }
 0x105   : > { %v2176_v20 = vpack.c.bf16 %v1337_v17, %v1336_v16  ;;  %v432_v21 = vpop.f32.mrf.mxu0  ;;  %v681_v22 = vpop.f32.mrf.mxu1  ;;  %v961_v25 = vadd.f32 %v2584_v54, %v960_v18  ;;  %v1242_v38 = vadd.f32 %v2584_v54, %v1241_v19  ;;  %v2149_v16 = vld [vmem:[%s2504_s17 + $0x1f8] sm:$0xf0] }
 0x106   : > { %v433_v26 = vadd.f32 %v2584_v54, %v432_v21  ;;  %v682_v27 = vadd.f32 %v2584_v54, %v681_v22  ;;  %v2059_v30 = vor.u32 %v2149_v16, %v2058_v15 }
 0x107   : > { %2236 = vst [vmem:[%s2605_s12 + $0x20] sm:$0xff] %v2176_v20   ;;  %v1025_v37 = vmax.f32 %v961_v25, 0.0  ;;  %v1306_v52 = vmax.f32 %v1242_v38, 0.0 }
 0x108   : > { %v496_v39 = vmax.f32 %v433_v26, 0.0  ;;  %v745_v40 = vmax.f32 %v682_v27, 0.0 }
 0x109   : > { %v1057_v51 = vmax.f32 %v776_v33, %v1025_v37 }
 0x10a   : > { %v777_v53 = vmax.f32 %v496_v39, %v745_v40 }
 0x10b   : > { %v1338_v60 = vmax.f32 %v1057_v51, %v1306_v52 }
 0x10c   : > { %v962_v41 = vpop.f32.mrf.mxu2  ;;  %v1243_v42 = vpop.f32.mrf.mxu3 }
 0x10d   : > { %v963_v45 = vadd.f32 %v2584_v54, %v962_v41  ;;  %v1244_v46 = vadd.f32 %v2584_v54, %v1243_v42  ;;  %v435_v47 = vpop.f32.mrf.mxu0  ;;  %v684_v48 = vpop.f32.mrf.mxu1 }
 0x10e   : > { %v436_v58 = vadd.f32 %v2584_v54, %v435_v47  ;;  %v685_v59 = vadd.f32 %v2584_v54, %v684_v48 }
 0x10f   : > { %v1026_v55 = vmax.f32 %v963_v45, 0.0  ;;  %v1307_v57 = vmax.f32 %v1244_v46, 0.0 }
 0x110   : > { %474 = vmatmul.bf16.gmra.mxu0 %v1831_v43  ;;  %723 = vmatmul.bf16.gmra.mxu1 %v1927_v44  ;;  %v497_v3 = vmax.f32 %v436_v58, 0.0  ;;  %v746_v4 = vmax.f32 %v685_v59, 0.0 }
 0x111   : > { %v1058_v56 = vmax.f32 %v777_v53, %v1026_v55  ;;  %1004 = vmatmul.bf16.gmra.mxu2 %v1991_v49  ;;  %1285 = vmatmul.bf16.gmra.mxu3 %v2055_v50 }
 0x112   : > { %v778_v13 = vmax.f32 %v497_v3, %v746_v4 }
 0x113   : > { %v1339_v61 = vmax.f32 %v1058_v56, %v1307_v57 }
 0x114   : > { %v965_v62 = vpop.f32.mrf.mxu2  ;;  %v1246_v63 = vpop.f32.mrf.mxu3 }
 0x115   : > { %v2181_v0 = vpack.c.bf16 %v1339_v61, %v1338_v60  ;;  %v437_v1 = vpop.f32.mrf.mxu0  ;;  %v686_v2 = vpop.f32.mrf.mxu1  ;;  %v966_v5 = vadd.f32 %v2584_v54, %v965_v62  ;;  %v1247_v18 = vadd.f32 %v2584_v54, %v1246_v63 }
 0x116   : > { %v438_v6 = vadd.f32 %v2584_v54, %v437_v1  ;;  %v687_v7 = vadd.f32 %v2584_v54, %v686_v2 }
 0x117   : > { %2237 = vst [vmem:[%s2605_s12 + $0x28] sm:$0xff] %v2181_v0   ;;  %v1027_v17 = vmax.f32 %v966_v5, 0.0  ;;  %v1308_v32 = vmax.f32 %v1247_v18, 0.0 }
 0x118   : > { %v498_v19 = vmax.f32 %v438_v6, 0.0  ;;  %v747_v20 = vmax.f32 %v687_v7, 0.0 }
 0x119   : > { %v1059_v31 = vmax.f32 %v778_v13, %v1027_v17 }
 0x11a   : > { %v779_v33 = vmax.f32 %v498_v19, %v747_v20 }
 0x11b   : > { %v1340_v39 = vmax.f32 %v1059_v31, %v1308_v32 }
 0x11c   : > { %v967_v21 = vpop.f32.mrf.mxu2  ;;  %v1248_v22 = vpop.f32.mrf.mxu3 }
 0x11d   : > { %v968_v25 = vadd.f32 %v2584_v54, %v967_v21  ;;  %v1249_v26 = vadd.f32 %v2584_v54, %v1248_v22  ;;  %v440_v27 = vpop.f32.mrf.mxu0  ;;  %v689_v28 = vpop.f32.mrf.mxu1 }
 0x11e   : > { %v441_v37 = vadd.f32 %v2584_v54, %v440_v27  ;;  %v690_v38 = vadd.f32 %v2584_v54, %v689_v28 }
 0x11f   : > { %v1028_v34 = vmax.f32 %v968_v25, 0.0  ;;  %v1309_v36 = vmax.f32 %v1249_v26, 0.0 }
 0x120   : > { %479 = vmatmul.bf16.gmra.mxu0 %v1835_v23  ;;  %728 = vmatmul.bf16.gmra.mxu1 %v1931_v24  ;;  %v499_v46 = vmax.f32 %v441_v37, 0.0  ;;  %v748_v47 = vmax.f32 %v690_v38, 0.0 }
 0x121   : > { %v1060_v35 = vmax.f32 %v779_v33, %v1028_v34  ;;  %1009 = vmatmul.bf16.gmra.mxu2 %v1995_v29  ;;  %1290 = vmatmul.bf16.gmra.mxu3 %v2059_v30 }
 0x122   : > { %v780_v51 = vmax.f32 %v499_v46, %v748_v47 }
 0x123   : > { %v1341_v40 = vmax.f32 %v1060_v35, %v1309_v36 }
 0x124   : > { %v970_v41 = vpop.f32.mrf.mxu2  ;;  %v1251_v42 = vpop.f32.mrf.mxu3 }
 0x125   : > { %v2186_v43 = vpack.c.bf16 %v1341_v40, %v1340_v39  ;;  %v442_v44 = vpop.f32.mrf.mxu0  ;;  %v691_v45 = vpop.f32.mrf.mxu1  ;;  %v971_v48 = vadd.f32 %v2584_v54, %v970_v41  ;;  %v1252_v53 = vadd.f32 %v2584_v54, %v1251_v42 }
 0x126   : > { %v443_v49 = vadd.f32 %v2584_v54, %v442_v44  ;;  %v692_v50 = vadd.f32 %v2584_v54, %v691_v45 }
 0x127   : > { %2238 = vst [vmem:[%s2605_s12 + $0x30] sm:$0xff] %v2186_v43   ;;  %v1029_v52 = vmax.f32 %v971_v48, 0.0  ;;  %v1310_v0 = vmax.f32 %v1252_v53, 0.0 }
 0x128   : > { %v500_v55 = vmax.f32 %v443_v49, 0.0  ;;  %v749_v56 = vmax.f32 %v692_v50, 0.0 }
 0x129   : > { %v1061_v63 = vmax.f32 %v780_v51, %v1029_v52 }
 0x12a   : > { %v781_v1 = vmax.f32 %v500_v55, %v749_v56 }
 0x12b   : > { %v1342_v7 = vmax.f32 %v1061_v63, %v1310_v0 }
 0x12c   : > { %v972_v57 = vpop.f32.mrf.mxu2  ;;  %v1253_v58 = vpop.f32.mrf.mxu3 }
 0x12d   : > { %v973_v59 = vadd.f32 %v2584_v54, %v972_v57  ;;  %v1254_v60 = vadd.f32 %v2584_v54, %v1253_v58  ;;  %v445_v61 = vpop.f32.mrf.mxu0  ;;  %v694_v62 = vpop.f32.mrf.mxu1 }
 0x12e   : > { %v446_v5 = vadd.f32 %v2584_v54, %v445_v61  ;;  %v695_v6 = vadd.f32 %v2584_v54, %v694_v62 }
 0x12f   : > { %v1030_v2 = vmax.f32 %v973_v59, 0.0  ;;  %v1311_v4 = vmax.f32 %v1254_v60, 0.0 }
 0x130   : > { %v501_v14 = vmax.f32 %v446_v5, 0.0  ;;  %v750_v15 = vmax.f32 %v695_v6, 0.0 }
 0x131   : > { %v1062_v3 = vmax.f32 %v781_v1, %v1030_v2 }
 0x132   : > { %v782_v19 = vmax.f32 %v501_v14, %v750_v15 }
 0x133   : > { %v1343_v8 = vmax.f32 %v1062_v3, %v1311_v4 }
 0x134   : > { %v975_v9 = vpop.f32.mrf.mxu2  ;;  %v1256_v10 = vpop.f32.mrf.mxu3 }
 0x135   : > { %v2191_v11 = vpack.c.bf16 %v1343_v8, %v1342_v7  ;;  %v447_v12 = vpop.f32.mrf.mxu0  ;;  %v696_v13 = vpop.f32.mrf.mxu1  ;;  %v976_v16 = vadd.f32 %v2584_v54, %v975_v9  ;;  %v1257_v21 = vadd.f32 %v2584_v54, %v1256_v10 }
 0x136   : > { %v448_v17 = vadd.f32 %v2584_v54, %v447_v12  ;;  %v697_v18 = vadd.f32 %v2584_v54, %v696_v13 }
 0x137   : > { %2239 = vst [vmem:[%s2605_s12 + $0x38] sm:$0xff] %v2191_v11   ;;  %v1031_v20 = vmax.f32 %v976_v16, 0.0  ;;  %v1312_v31 = vmax.f32 %v1257_v21, 0.0 }
 0x138   : > { %v502_v22 = vmax.f32 %v448_v17, 0.0  ;;  %v751_v23 = vmax.f32 %v697_v18, 0.0 }
 0x139   : > { %v1063_v30 = vmax.f32 %v782_v19, %v1031_v20 }
 0x13a   : > { %v783_v32 = vmax.f32 %v502_v22, %v751_v23 }
 0x13b   : > { %v1344_v38 = vmax.f32 %v1063_v30, %v1312_v31 }
 0x13c   : > { %v977_v24 = vpop.f32.mrf.mxu2  ;;  %v1258_v25 = vpop.f32.mrf.mxu3 }
 0x13d   : > { %v978_v26 = vadd.f32 %v2584_v54, %v977_v24  ;;  %v1259_v27 = vadd.f32 %v2584_v54, %v1258_v25  ;;  %v450_v28 = vpop.f32.mrf.mxu0  ;;  %v699_v29 = vpop.f32.mrf.mxu1 }
 0x13e   : > { %v451_v36 = vadd.f32 %v2584_v54, %v450_v28  ;;  %v700_v37 = vadd.f32 %v2584_v54, %v699_v29 }
 0x13f   : > { %v1032_v33 = vmax.f32 %v978_v26, 0.0  ;;  %v1313_v35 = vmax.f32 %v1259_v27, 0.0 }
 0x140   : > { %v503_v45 = vmax.f32 %v451_v36, 0.0  ;;  %v752_v46 = vmax.f32 %v700_v37, 0.0 }
 0x141   : > { %v1064_v34 = vmax.f32 %v783_v32, %v1032_v33 }
 0x142   : > { %v784_v50 = vmax.f32 %v503_v45, %v752_v46 }
 0x143   : > { %v1345_v39 = vmax.f32 %v1064_v34, %v1313_v35 }
 0x144   : > { %v980_v40 = vpop.f32.mrf.mxu2  ;;  %v1261_v41 = vpop.f32.mrf.mxu3 }
 0x145   : > { %v2196_v42 = vpack.c.bf16 %v1345_v39, %v1344_v38  ;;  %v452_v43 = vpop.f32.mrf.mxu0  ;;  %v701_v44 = vpop.f32.mrf.mxu1  ;;  %v981_v47 = vadd.f32 %v2584_v54, %v980_v40  ;;  %v1262_v52 = vadd.f32 %v2584_v54, %v1261_v41 }
 0x146   : > { %v453_v48 = vadd.f32 %v2584_v54, %v452_v43  ;;  %v702_v49 = vadd.f32 %v2584_v54, %v701_v44 }
 0x147   : > { %2240 = vst [vmem:[%s2605_s12 + $0x40] sm:$0xff] %v2196_v42   ;;  %v1033_v51 = vmax.f32 %v981_v47, 0.0  ;;  %v1314_v63 = vmax.f32 %v1262_v52, 0.0 }
 0x148   : > { %v504_v53 = vmax.f32 %v453_v48, 0.0  ;;  %v753_v55 = vmax.f32 %v702_v49, 0.0 }
 0x149   : > { %v1065_v62 = vmax.f32 %v784_v50, %v1033_v51 }
 0x14a   : > { %v785_v0 = vmax.f32 %v504_v53, %v753_v55 }
 0x14b   : > { %v1346_v6 = vmax.f32 %v1065_v62, %v1314_v63 }
 0x14c   : > { %v982_v56 = vpop.f32.mrf.mxu2  ;;  %v1263_v57 = vpop.f32.mrf.mxu3 }
 0x14d   : > { %v983_v58 = vadd.f32 %v2584_v54, %v982_v56  ;;  %v1264_v59 = vadd.f32 %v2584_v54, %v1263_v57  ;;  %v455_v60 = vpop.f32.mrf.mxu0  ;;  %v704_v61 = vpop.f32.mrf.mxu1 }
 0x14e   : > { %v456_v4 = vadd.f32 %v2584_v54, %v455_v60  ;;  %v705_v5 = vadd.f32 %v2584_v54, %v704_v61 }
 0x14f   : > { %v1034_v1 = vmax.f32 %v983_v58, 0.0  ;;  %v1315_v3 = vmax.f32 %v1264_v59, 0.0 }
 0x150   : > { %v505_v13 = vmax.f32 %v456_v4, 0.0  ;;  %v754_v14 = vmax.f32 %v705_v5, 0.0 }
 0x151   : > { %v1066_v2 = vmax.f32 %v785_v0, %v1034_v1 }
 0x152   : > { %v786_v18 = vmax.f32 %v505_v13, %v754_v14  ;;  %v2758_v14 = vld [vmem:[%s2938_s2] ss:$0 sm:$0xff] }
 0x153   : > { %v1347_v7 = vmax.f32 %v1066_v2, %v1315_v3 }
 0x154   : > { %v985_v8 = vpop.f32.mrf.mxu2  ;;  %v1266_v9 = vpop.f32.mrf.mxu3 }
 0x155   : > { %v2201_v10 = vpack.c.bf16 %v1347_v7, %v1346_v6  ;;  %v457_v11 = vpop.f32.mrf.mxu0  ;;  %v706_v12 = vpop.f32.mrf.mxu1  ;;  %v986_v15 = vadd.f32 %v2584_v54, %v985_v8  ;;  %v1267_v20 = vadd.f32 %v2584_v54, %v1266_v9 }
 0x156   : > { %v458_v16 = vadd.f32 %v2584_v54, %v457_v11  ;;  %v707_v17 = vadd.f32 %v2584_v54, %v706_v12 }
 0x157   : > { %2241 = vst [vmem:[%s2605_s12 + $0x48] sm:$0xff] %v2201_v10   ;;  %v1035_v19 = vmax.f32 %v986_v15, 0.0  ;;  %v1316_v30 = vmax.f32 %v1267_v20, 0.0 }
 0x158   : > { %v506_v21 = vmax.f32 %v458_v16, 0.0  ;;  %v755_v22 = vmax.f32 %v707_v17, 0.0 }
 0x159   : > { %v1067_v29 = vmax.f32 %v786_v18, %v1035_v19 }
 0x15a   : > { %v787_v31 = vmax.f32 %v506_v21, %v755_v22 }
 0x15b   : > { %v1348_v37 = vmax.f32 %v1067_v29, %v1316_v30 }
 0x15c   : > { %v987_v23 = vpop.f32.mrf.mxu2  ;;  %v1268_v24 = vpop.f32.mrf.mxu3 }
 0x15d   : > { %v988_v25 = vadd.f32 %v2584_v54, %v987_v23  ;;  %v1269_v26 = vadd.f32 %v2584_v54, %v1268_v24  ;;  %v460_v27 = vpop.f32.mrf.mxu0  ;;  %v709_v28 = vpop.f32.mrf.mxu1 }
 0x15e   : > { %v461_v35 = vadd.f32 %v2584_v54, %v460_v27  ;;  %v710_v36 = vadd.f32 %v2584_v54, %v709_v28 }
 0x15f   : > { %v1036_v32 = vmax.f32 %v988_v25, 0.0  ;;  %v1317_v34 = vmax.f32 %v1269_v26, 0.0 }
 0x160   : > { %v507_v44 = vmax.f32 %v461_v35, 0.0  ;;  %v756_v45 = vmax.f32 %v710_v36, 0.0 }
 0x161   : > { %v1068_v33 = vmax.f32 %v787_v31, %v1036_v32 }
 0x162   : > { %v788_v49 = vmax.f32 %v507_v44, %v756_v45 }
 0x163   : > { %v1349_v38 = vmax.f32 %v1068_v33, %v1317_v34 }
 0x164   : > { %v990_v39 = vpop.f32.mrf.mxu2  ;;  %v1271_v40 = vpop.f32.mrf.mxu3 }
 0x165   : > { %v2206_v41 = vpack.c.bf16 %v1349_v38, %v1348_v37  ;;  %v462_v42 = vpop.f32.mrf.mxu0  ;;  %v711_v43 = vpop.f32.mrf.mxu1  ;;  %v991_v46 = vadd.f32 %v2584_v54, %v990_v39  ;;  %v1272_v51 = vadd.f32 %v2584_v54, %v1271_v40 }
 0x166   : > { %v463_v47 = vadd.f32 %v2584_v54, %v462_v42  ;;  %v712_v48 = vadd.f32 %v2584_v54, %v711_v43 }
 0x167   : > { %2242 = vst [vmem:[%s2605_s12 + $0x50] sm:$0xff] %v2206_v41   ;;  %v1037_v50 = vmax.f32 %v991_v46, 0.0  ;;  %v1318_v62 = vmax.f32 %v1272_v51, 0.0 }
 0x168   : > { %v508_v52 = vmax.f32 %v463_v47, 0.0  ;;  %v757_v53 = vmax.f32 %v712_v48, 0.0 }
 0x169   : > { %v1069_v61 = vmax.f32 %v788_v49, %v1037_v50 }
 0x16a   : > { %v789_v63 = vmax.f32 %v508_v52, %v757_v53 }
 0x16b   : > { %v1350_v5 = vmax.f32 %v1069_v61, %v1318_v62 }
 0x16c   : > { %v992_v55 = vpop.f32.mrf.mxu2  ;;  %v1273_v56 = vpop.f32.mrf.mxu3 }
 0x16d   : > { %v993_v57 = vadd.f32 %v2584_v54, %v992_v55  ;;  %v1274_v58 = vadd.f32 %v2584_v54, %v1273_v56  ;;  %v465_v59 = vpop.f32.mrf.mxu0  ;;  %v714_v60 = vpop.f32.mrf.mxu1 }
 0x16e   : > { %v466_v3 = vadd.f32 %v2584_v54, %v465_v59  ;;  %v715_v4 = vadd.f32 %v2584_v54, %v714_v60 }
 0x16f   : > { %v1038_v0 = vmax.f32 %v993_v57, 0.0  ;;  %v1319_v2 = vmax.f32 %v1274_v58, 0.0 }
 0x170   : > { %v509_v12 = vmax.f32 %v466_v3, 0.0  ;;  %v758_v13 = vmax.f32 %v715_v4, 0.0 }
 0x171   : > { %v1070_v1 = vmax.f32 %v789_v63, %v1038_v0 }
 0x172   : > { %v790_v17 = vmax.f32 %v509_v12, %v758_v13 }
 0x173   : > { %v1351_v6 = vmax.f32 %v1070_v1, %v1319_v2 }
 0x174   : > { %v995_v7 = vpop.f32.mrf.mxu2  ;;  %v1276_v8 = vpop.f32.mrf.mxu3 }
 0x175   : > { %v2211_v9 = vpack.c.bf16 %v1351_v6, %v1350_v5  ;;  %v467_v10 = vpop.f32.mrf.mxu0  ;;  %v716_v11 = vpop.f32.mrf.mxu1  ;;  %v996_v15 = vadd.f32 %v2758_v14, %v995_v7  ;;  %v1277_v19 = vadd.f32 %v2758_v14, %v1276_v8 }
 0x176   : > { %v468_v16 = vadd.f32 %v2758_v14, %v467_v10  ;;  %v717_v54 = vadd.f32 %v2758_v14, %v716_v11 }
 0x177   : > { %2243 = vst [vmem:[%s2605_s12 + $0x58] sm:$0xff] %v2211_v9   ;;  %v1039_v18 = vmax.f32 %v996_v15, 0.0  ;;  %v1320_v29 = vmax.f32 %v1277_v19, 0.0 }
 0x178   : > { %v510_v20 = vmax.f32 %v468_v16, 0.0  ;;  %v759_v21 = vmax.f32 %v717_v54, 0.0 }
 0x179   : > { %v1071_v28 = vmax.f32 %v790_v17, %v1039_v18 }
 0x17a   : > { %v791_v30 = vmax.f32 %v510_v20, %v759_v21 }
 0x17b   : > { %v1352_v36 = vmax.f32 %v1071_v28, %v1320_v29 }
 0x17c   : > { %v997_v22 = vpop.f32.mrf.mxu2  ;;  %v1278_v23 = vpop.f32.mrf.mxu3 }
 0x17d   : > { %v998_v24 = vadd.f32 %v2758_v14, %v997_v22  ;;  %v1279_v25 = vadd.f32 %v2758_v14, %v1278_v23  ;;  %v470_v26 = vpop.f32.mrf.mxu0  ;;  %v719_v27 = vpop.f32.mrf.mxu1 }
 0x17e   : > { %v471_v34 = vadd.f32 %v2758_v14, %v470_v26  ;;  %v720_v35 = vadd.f32 %v2758_v14, %v719_v27 }
 0x17f   : > { %v1040_v31 = vmax.f32 %v998_v24, 0.0  ;;  %v1321_v33 = vmax.f32 %v1279_v25, 0.0 }
 0x180   : > { %v511_v43 = vmax.f32 %v471_v34, 0.0  ;;  %v760_v44 = vmax.f32 %v720_v35, 0.0 }
 0x181   : > { %v1072_v32 = vmax.f32 %v791_v30, %v1040_v31 }
 0x182   : > { %v792_v48 = vmax.f32 %v511_v43, %v760_v44 }
 0x183   : > { %v1353_v37 = vmax.f32 %v1072_v32, %v1321_v33 }
 0x184   : > { %v1000_v38 = vpop.f32.mrf.mxu2  ;;  %v1281_v39 = vpop.f32.mrf.mxu3 }
 0x185   : > { %v2216_v40 = vpack.c.bf16 %v1353_v37, %v1352_v36  ;;  %v472_v41 = vpop.f32.mrf.mxu0  ;;  %v721_v42 = vpop.f32.mrf.mxu1  ;;  %v1001_v45 = vadd.f32 %v2758_v14, %v1000_v38  ;;  %v1282_v50 = vadd.f32 %v2758_v14, %v1281_v39 }
 0x186   : > { %v473_v46 = vadd.f32 %v2758_v14, %v472_v41  ;;  %v722_v47 = vadd.f32 %v2758_v14, %v721_v42 }
 0x187   : > { %2244 = vst [vmem:[%s2605_s12 + $0x60] sm:$0xff] %v2216_v40   ;;  %v1041_v49 = vmax.f32 %v1001_v45, 0.0  ;;  %v1322_v61 = vmax.f32 %v1282_v50, 0.0 }
 0x188   : > { %v512_v51 = vmax.f32 %v473_v46, 0.0  ;;  %v761_v52 = vmax.f32 %v722_v47, 0.0 }
 0x189   : > { %v1073_v60 = vmax.f32 %v792_v48, %v1041_v49 }
 0x18a   : > { %v793_v62 = vmax.f32 %v512_v51, %v761_v52 }
 0x18b   : > { %v1354_v4 = vmax.f32 %v1073_v60, %v1322_v61 }
 0x18c   : > { %v1002_v53 = vpop.f32.mrf.mxu2  ;;  %v1283_v55 = vpop.f32.mrf.mxu3 }
 0x18d   : > { %v1003_v56 = vadd.f32 %v2758_v14, %v1002_v53  ;;  %v1284_v57 = vadd.f32 %v2758_v14, %v1283_v55  ;;  %v475_v58 = vpop.f32.mrf.mxu0  ;;  %v724_v59 = vpop.f32.mrf.mxu1 }
 0x18e   : > { %v476_v2 = vadd.f32 %v2758_v14, %v475_v58  ;;  %v725_v3 = vadd.f32 %v2758_v14, %v724_v59 }
 0x18f   : > { %v1042_v63 = vmax.f32 %v1003_v56, 0.0  ;;  %v1323_v1 = vmax.f32 %v1284_v57, 0.0 }
 0x190   : > { %v513_v11 = vmax.f32 %v476_v2, 0.0  ;;  %v762_v12 = vmax.f32 %v725_v3, 0.0 }
 0x191   : > { %v1074_v0 = vmax.f32 %v793_v62, %v1042_v63 }
 0x192   : > { %v794_v54 = vmax.f32 %v513_v11, %v762_v12 }
 0x193   : > { %v1355_v5 = vmax.f32 %v1074_v0, %v1323_v1 }
 0x194   : > { %v1005_v6 = vpop.f32.mrf.mxu2  ;;  %v1286_v7 = vpop.f32.mrf.mxu3 }
 0x195   : > { %v2221_v8 = vpack.c.bf16 %v1355_v5, %v1354_v4  ;;  %v477_v9 = vpop.f32.mrf.mxu0  ;;  %v726_v10 = vpop.f32.mrf.mxu1  ;;  %v1006_v13 = vadd.f32 %v2758_v14, %v1005_v6  ;;  %v1287_v18 = vadd.f32 %v2758_v14, %v1286_v7 }
 0x196   : > { %v478_v15 = vadd.f32 %v2758_v14, %v477_v9  ;;  %v727_v16 = vadd.f32 %v2758_v14, %v726_v10 }
 0x197   : > { %2245 = vst [vmem:[%s2605_s12 + $0x68] sm:$0xff] %v2221_v8   ;;  %v1043_v17 = vmax.f32 %v1006_v13, 0.0  ;;  %v1324_v28 = vmax.f32 %v1287_v18, 0.0 }
 0x198   : > { %v514_v19 = vmax.f32 %v478_v15, 0.0  ;;  %v763_v20 = vmax.f32 %v727_v16, 0.0 }
 0x199   : > { %v1075_v27 = vmax.f32 %v794_v54, %v1043_v17 }
 0x19a   : > { %v795_v29 = vmax.f32 %v514_v19, %v763_v20 }
 0x19b   : > { %v1356_v35 = vmax.f32 %v1075_v27, %v1324_v28 }
 0x19c   : > { %v1007_v21 = vpop.f32.mrf.mxu2  ;;  %v1288_v22 = vpop.f32.mrf.mxu3 }
 0x19d   : > { %v1008_v23 = vadd.f32 %v2758_v14, %v1007_v21  ;;  %v1289_v24 = vadd.f32 %v2758_v14, %v1288_v22  ;;  %v480_v25 = vpop.f32.mrf.mxu0  ;;  %v729_v26 = vpop.f32.mrf.mxu1 }
 0x19e   : > { %v481_v33 = vadd.f32 %v2758_v14, %v480_v25  ;;  %v730_v34 = vadd.f32 %v2758_v14, %v729_v26 }
 0x19f   : > { %v1044_v30 = vmax.f32 %v1008_v23, 0.0  ;;  %v1325_v32 = vmax.f32 %v1289_v24, 0.0 }
 0x1a0   : > { %v515_v42 = vmax.f32 %v481_v33, 0.0  ;;  %v764_v43 = vmax.f32 %v730_v34, 0.0 }
 0x1a1   : > { %v1076_v31 = vmax.f32 %v795_v29, %v1044_v30 }
 0x1a2   : > { %v796_v47 = vmax.f32 %v515_v42, %v764_v43 }
 0x1a3   : > { %v1357_v36 = vmax.f32 %v1076_v31, %v1325_v32 }
 0x1a4   : > { %v1010_v37 = vpop.f32.mrf.mxu2  ;;  %v1291_v38 = vpop.f32.mrf.mxu3 }
 0x1a5   : > { %v2226_v39 = vpack.c.bf16 %v1357_v36, %v1356_v35  ;;  %v482_v40 = vpop.f32.mrf.mxu0  ;;  %v731_v41 = vpop.f32.mrf.mxu1  ;;  %v1011_v44 = vadd.f32 %v2758_v14, %v1010_v37  ;;  %v1292_v49 = vadd.f32 %v2758_v14, %v1291_v38 }
 0x1a6   : > { %v483_v45 = vadd.f32 %v2758_v14, %v482_v40  ;;  %v732_v46 = vadd.f32 %v2758_v14, %v731_v41 }
 0x1a7   : > { %2246 = vst [vmem:[%s2605_s12 + $0x70] sm:$0xff] %v2226_v39   ;;  %v1045_v48 = vmax.f32 %v1011_v44, 0.0  ;;  %v1326_v58 = vmax.f32 %v1292_v49, 0.0 }
 0x1a8   : > { %v516_v50 = vmax.f32 %v483_v45, 0.0  ;;  %v765_v51 = vmax.f32 %v732_v46, 0.0 }
 0x1a9   : > { %v1077_v57 = vmax.f32 %v796_v47, %v1045_v48 }
 0x1aa   : > { %v797_v59 = vmax.f32 %v516_v50, %v765_v51 }
 0x1ab   : > { %v1358_v63 = vmax.f32 %v1077_v57, %v1326_v58 }
 0x1ac   : > { %v1012_v52 = vpop.f32.mrf.mxu2  ;;  %v1293_v53 = vpop.f32.mrf.mxu3 }
 0x1ad   : > { %v1013_v55 = vadd.f32 %v2758_v14, %v1012_v52  ;;  %v1294_v56 = vadd.f32 %v2758_v14, %v1293_v53 }
 0x1af   : > { %v1046_v60 = vmax.f32 %v1013_v55, 0.0  ;;  %v1327_v62 = vmax.f32 %v1294_v56, 0.0 }
 0x1b1   : > { %v1078_v61 = vmax.f32 %v797_v59, %v1046_v60 }
 0x1b3   : > { %v1359_v0 = vmax.f32 %v1078_v61, %v1327_v62  ;;  %1430 = sbr.rel (!%p2471_p4) target bundleno = 504 (0x1f8), region = 36 }
 0x1b5   : > { %v2231_v1 = vpack.c.bf16 %v1359_v0, %v1358_v63 }
 0x1b7   : > { %2247 = vst [vmem:[%s2605_s12 + $0x78] sm:$0xff] %v2231_v1  }
 0x1b8   : > { %s2950_s29 = smov (!%p1433_p8, %s1432_s29), 32 }
 0x1b9   : > { %s2062_s7 = sshll.u32 %s2950_s29, 2 }
 0x1ba   : > { %p2065_p9 = scmp.eq.s32.totalorder %s2062_s7, 0 }
 0x1bb   : > { %s2807_s8 = sshrl.u32 (!%p2065_p9), %s2950_s29, 5 }
 0x1bc   : > { %1441 = sbr.rel (%p2065_p9) target bundleno = 504 (0x1f8), region = 40  ;;  %p2066_p10 = scmp.le.s32.totalorder (!%p2065_p9), %s2807_s8, 0 }
 0x1c1   : > { %1720 = sbr.rel (%p2066_p10) target bundleno = 487 (0x1e7), region = 112  ;;  %s2941_s15 = smov (!%p2066_p10), %s2801_s6 }
 0x1c2   : > { %s2942_s20 = smov (!%p2066_p10), %s2605_s12  ;;  %s2816_s27 = smov (!%p2066_p10), 0  }
 0x1c3   : > { %s2818_s9 = smov (!%p2066_p10), 0  }
 0x1c6 LB: >> { %v1458_v14 = vld [vmem:[%s2400_s20] sm:$0xf]  ;;  %v1460_v2 = vld [vmem:[%s2400_s20 + $0x4] sm:$0xf]  ;;  %v1462_v3 = vld [vmem:[%s2400_s20 + $0x8] sm:$0xf]  ;;  %s2408_s9 = sphi %s2818_s9, %s1452_s9   ;;  %s2404_s27 = sphi %s2816_s27, %s2945_s27   ;;  %s2400_s20 = sphi %s2942_s20, %s2944_s20   ;;  %s2396_s15 = sphi %s2941_s15, %s2943_s15  }
 0x1c7   : >> { %1459 = vst [vmem:[%s2396_s15] sm:$0xf] %v1458_v14  ;;  %v1464_v4 = vld [vmem:[%s2400_s20 + $0xc] sm:$0xf]  ;;  %v1466_v5 = vld [vmem:[%s2400_s20 + $0x10] sm:$0xf]  ;;  %s1522_s10 = sadd.s32 1, %s2404_s27 }
 0x1c8   : >> { %1461 = vst [vmem:[%s2396_s15 + $0x4] sm:$0xf] %v1460_v2  ;;  %v1468_v6 = vld [vmem:[%s2400_s20 + $0x14] sm:$0xf]  ;;  %v1470_v7 = vld [vmem:[%s2400_s20 + $0x18] sm:$0xf]  ;;  %p1523_p11 = scmp.ge.s32.totalorder %s1522_s10, %s2807_s8 }
 0x1c9   : >> { %1463 = vst [vmem:[%s2396_s15 + $0x8] sm:$0xf] %v1462_v3  ;;  %v1472_v8 = vld [vmem:[%s2400_s20 + $0x1c] sm:$0xf]  ;;  %v1474_v9 = vld [vmem:[%s2400_s20 + $0x20] sm:$0xf] }
 0x1ca   : >> { %1465 = vst [vmem:[%s2396_s15 + $0xc] sm:$0xf] %v1464_v4  ;;  %v1476_v10 = vld [vmem:[%s2400_s20 + $0x24] sm:$0xf]  ;;  %v1478_v11 = vld [vmem:[%s2400_s20 + $0x28] sm:$0xf] }
 0x1cb   : >> { %1467 = vst [vmem:[%s2396_s15 + $0x10] sm:$0xf] %v1466_v5  ;;  %v1480_v12 = vld [vmem:[%s2400_s20 + $0x2c] sm:$0xf]  ;;  %v1482_v13 = vld [vmem:[%s2400_s20 + $0x30] sm:$0xf] }
 0x1cc   : >> { %1469 = vst [vmem:[%s2396_s15 + $0x14] sm:$0xf] %v1468_v6  ;;  %v1484_v15 = vld [vmem:[%s2400_s20 + $0x34] sm:$0xf]  ;;  %v1486_v16 = vld [vmem:[%s2400_s20 + $0x38] sm:$0xf] }
 0x1cd   : >> { %1471 = vst [vmem:[%s2396_s15 + $0x18] sm:$0xf] %v1470_v7  ;;  %v1488_v54 = vld [vmem:[%s2400_s20 + $0x3c] sm:$0xf]  ;;  %v1490_v17 = vld [vmem:[%s2400_s20 + $0x40] sm:$0xf] }
 0x1ce   : >> { %1473 = vst [vmem:[%s2396_s15 + $0x1c] sm:$0xf] %v1472_v8  ;;  %v1492_v18 = vld [vmem:[%s2400_s20 + $0x44] sm:$0xf]  ;;  %s2952_s10 = smov (%p1523_p11, %s1522_s10), 0  ;;  %s1452_s9 = sadd.s32 1, %s2408_s9  }
 0x1cf   : >> { %1475 = vst [vmem:[%s2396_s15 + $0x20] sm:$0xf] %v1474_v9  ;;  %v1494_v19 = vld [vmem:[%s2400_s20 + $0x48] sm:$0xf]  ;;  %v1496_v20 = vld [vmem:[%s2400_s20 + $0x4c] sm:$0xf]  ;;  %p1451_p12 = scmp.ge.s32.totalorder %s1452_s9, %s2807_s8  ;;  %s2945_s27 = smov %s2952_s10 }
 0x1d0   : >> { %1477 = vst [vmem:[%s2396_s15 + $0x24] sm:$0xf] %v1476_v10  ;;  %s2067_s11 = sshll.u32 %s2952_s10, 7  ;;  %v1498_v21 = vld [vmem:[%s2400_s20 + $0x50] sm:$0xf] }
 0x1d1   : >> { %1479 = vst [vmem:[%s2396_s15 + $0x28] sm:$0xf] %v1478_v11  ;;  %s2877_s14 = scalar_lea.vmem %s2605_s12, %s2067_s11 [#allocation2]   ;;  %s1528_s17 = scalar_lea.vmem %s2801_s6, %s2067_s11   ;;  %v1500_v22 = vld [vmem:[%s2400_s20 + $0x54] sm:$0xf]  ;;  %v1502_v23 = vld [vmem:[%s2400_s20 + $0x58] sm:$0xf] }
 0x1d2   : >> { %1481 = vst [vmem:[%s2396_s15 + $0x2c] sm:$0xf] %v1480_v12  ;;  %v1504_v24 = vld [vmem:[%s2400_s20 + $0x5c] sm:$0xf]  ;;  %v1506_v25 = vld [vmem:[%s2400_s20 + $0x60] sm:$0xf] }
 0x1d3   : >> { %1483 = vst [vmem:[%s2396_s15 + $0x30] sm:$0xf] %v1482_v13  ;;  %v1508_v26 = vld [vmem:[%s2400_s20 + $0x64] sm:$0xf]  ;;  %v1510_v27 = vld [vmem:[%s2400_s20 + $0x68] sm:$0xf] }
 0x1d4   : >> { %1485 = vst [vmem:[%s2396_s15 + $0x34] sm:$0xf] %v1484_v15  ;;  %v1512_v28 = vld [vmem:[%s2400_s20 + $0x6c] sm:$0xf]  ;;  %v1514_v29 = vld [vmem:[%s2400_s20 + $0x70] sm:$0xf] }
 0x1d5   : >> { %1487 = vst [vmem:[%s2396_s15 + $0x38] sm:$0xf] %v1486_v16  ;;  %v1516_v30 = vld [vmem:[%s2400_s20 + $0x74] sm:$0xf]  ;;  %v1518_v31 = vld [vmem:[%s2400_s20 + $0x78] sm:$0xf] }
 0x1d6   : >> { %1489 = vst [vmem:[%s2396_s15 + $0x3c] sm:$0xf] %v1488_v54  ;;  %v1520_v32 = vld [vmem:[%s2400_s20 + $0x7c] sm:$0xf]  ;;  %s2944_s20 = smov %s2877_s14 }
 0x1d7   : >> { %1491 = vst [vmem:[%s2396_s15 + $0x40] sm:$0xf] %v1490_v17 }
 0x1d8   : >> { %1493 = vst [vmem:[%s2396_s15 + $0x44] sm:$0xf] %v1492_v18 }
 0x1d9   : >> { %1495 = vst [vmem:[%s2396_s15 + $0x48] sm:$0xf] %v1494_v19 }
 0x1da   : >> { %1497 = vst [vmem:[%s2396_s15 + $0x4c] sm:$0xf] %v1496_v20 }
 0x1db   : >> { %1499 = vst [vmem:[%s2396_s15 + $0x50] sm:$0xf] %v1498_v21 }
 0x1dc   : >> { %1501 = vst [vmem:[%s2396_s15 + $0x54] sm:$0xf] %v1500_v22 }
 0x1dd   : >> { %1503 = vst [vmem:[%s2396_s15 + $0x58] sm:$0xf] %v1502_v23 }
 0x1de   : >> { %1505 = vst [vmem:[%s2396_s15 + $0x5c] sm:$0xf] %v1504_v24 }
 0x1df   : >> { %1507 = vst [vmem:[%s2396_s15 + $0x60] sm:$0xf] %v1506_v25 }
 0x1e0   : >> { %1509 = vst [vmem:[%s2396_s15 + $0x64] sm:$0xf] %v1508_v26 }
 0x1e1   : >> { %1511 = vst [vmem:[%s2396_s15 + $0x68] sm:$0xf] %v1510_v27 }
 0x1e2   : >> { %1513 = vst [vmem:[%s2396_s15 + $0x6c] sm:$0xf] %v1512_v28  ;;  %1454 = sbr.rel (!%p1451_p12) target bundleno = 454 (0x1c6), region = 118 }
 0x1e3   : >> { %1515 = vst [vmem:[%s2396_s15 + $0x70] sm:$0xf] %v1514_v29 }
 0x1e4   : >> { %1517 = vst [vmem:[%s2396_s15 + $0x74] sm:$0xf] %v1516_v30 }
 0x1e5   : >> { %1519 = vst [vmem:[%s2396_s15 + $0x78] sm:$0xf] %v1518_v31 }
 0x1e6   : >> { %1521 = vst [vmem:[%s2396_s15 + $0x7c] sm:$0xf] %v1520_v32  ;;  %s2943_s15 = smov %s1528_s17 }
 0x1e7 PF: > { %s2918_s18 = sand.u32 31, %s2950_s29   ;;  %s2151_s21 = sshll.u32 %s2807_s8, 7 }
 0x1e8   : > { %s1533_s22 = scalar_lea.vmem %s2605_s12, %s2151_s21 [#allocation2]   ;;  %s1535_s23 = scalar_lea.vmem %s2801_s6, %s2151_s21  }
 0x1e9   : > { %p2072_p13 = scmp.le.s32.totalorder %s2918_s18, 0 }
 0x1ea   : > { %s2410_s24 = smov (!%p2072_p13), %s1535_s23   ;;  %s2414_s25 = smov (!%p2072_p13), %s1533_s22  }
 0x1eb   : > { %1734 = sbr.rel (%p2072_p13) target bundleno = 504 (0x1f8), region = 123  ;;  %s2418_s26 = smov (!%p2072_p13), 0  }
 0x1ec   : > { %s2422_s28 = smov (!%p2072_p13), 0  }
 0x1f0 LB: >> { %v1545_v33 = vld [vmem:[%s2416_s25] sm:$0xf]  ;;  %s1547_s29 = sadd.s32 1, %s2420_s26  ;;  %s1539_s28 = sadd.s32 1, %s2424_s28   ;;  %s2424_s28 = sphi %s2422_s28, %s1539_s28   ;;  %s2420_s26 = sphi %s2418_s26, %s2419_s26   ;;  %s2416_s25 = sphi %s2414_s25, %s1552_s25   ;;  %s2412_s24 = sphi %s2410_s24, %s1553_s24  }
 0x1f1   : >> { %1546 = vst [vmem:[%s2412_s24] sm:$0xf] %v1545_v33  ;;  %p1548_p0 = scmp.ge.s32.totalorder %s1547_s29, %s2918_s18  ;;  %p1538_p1 = scmp.ge.s32.totalorder %s1539_s28, %s2918_s18 }
 0x1f3   : >> { %s2954_s29 = smov (%p1548_p0, %s1547_s29), 0  ;;  %1541 = sbr.rel (!%p1538_p1) target bundleno = 496 (0x1f0), region = 129 }
 0x1f4   : >> { %s2073_s12 = sshll.u32 %s2954_s29, 2  ;;  %s2419_s26 = smov %s2954_s29  }
 0x1f5   : >> { %s1552_s25 = scalar_lea.vmem %s1533_s22, %s2073_s12 [#allocation2]   ;;  %s1553_s24 = scalar_lea.vmem %s1535_s23, %s2073_s12  }
 0x1f8 PF: > { %p10_p2 = scmp.ge.s32.totalorder %s2461_s16, 10   ;;  %s2946_s12 = smov %s2388_s13 }
 0x1f9   : > { %s2947_s13 = smov %s2469_s19  ;;  %s2948_s14 = smov %s2461_s16 }
 0x1fa   :  { %12 = sbr.rel (!%p10_p2) target bundleno = 2 (0x2), region = 140 }

// kernel: resnet_a_forward.5
= control target key start
LH: loop header
LB: loop body
LE: loop exit
PB: predicated region body
PF: predicated region fallthrough
CT: control target
= control target key end

     0   :  { %s2227_s24 = smov 0   ;;  %s2607_s0 = inlined_call_operand.vmem [shape: bf16[4,113,512], index: 0, kind: input, shape index: {}]   ;;  %s2608_s1 = inlined_call_operand.vmem [shape: bf16[512,128], index: 1, kind: input, shape index: {}]   ;;  %s2609_s2 = inlined_call_operand.vmem [shape: bf16[3,128,128], index: 2, kind: input, shape index: {}]   ;;  %s2610_s3 = inlined_call_operand.vmem [shape: bf16[128,128], index: 3, kind: input, shape index: {}]   ;;  %s2611_s4 = inlined_call_operand.vmem [shape: f32[1,128], index: 4, kind: input, shape index: {}]   ;;  %s2612_s5 = inlined_call_operand.vmem [shape: f32[1,128], index: 5, kind: input, shape index: {}]   ;;  %s2613_s6 = inlined_call_operand.vmem [shape: f32[1,128], index: 6, kind: input, shape index: {}]   ;;  %s2614_s7 = inlined_call_operand.vmem [shape: bf16[4,113,128], index: 7, kind: output, shape index: {}]  }
   0x1 LB: > { %s1622_s25 = sadd.s32 4294967295, %s2184_s24   ;;  %p1626_p0 = scmp.ge.s32.totalorder %s2184_s24, 1  ;;  %s2184_s24 = sphi %s2227_s24, %s17_s24  }
   0x2   : > { %p237_p1 = scmp.lt.s32.totalorder %s2184_s24, 5 }
   0x4   : > { %p238_p2 = pnand %p1626_p0, %p237_p1 }
   0x5   : > { %p269_p3 = scmp.lt.s32.totalorder (!%p238_p2), %s1622_s25, 3 }
   0x6   : > { %241 = sbr.rel (%p238_p2) target bundleno = 465 (0x1d1), region = 48 }
   0xb   : > { %v2066_v0 = vld [vmem:[%s2608_s1 + $0x38] sm:$0xff]  ;;  %v2065_v4 = vld [vmem:[%s2608_s1 + $0x30] sm:$0xff]  ;;  %v2064_v8 = vld [vmem:[%s2608_s1 + $0x28] sm:$0xff]  ;;  %s2616_s25 = smov (!%p269_p3, %s1622_s25), 3  ;;  %vm1561_vm0 = vcmask 1040384  }
   0xc   : > { %v2074_v1 = vld [vmem:[%s2608_s1 + $0x78] sm:$0xff]  ;;  %723 = vmatpush.bf16.msra.mxu0 %v2066_v0  ;;  %v2073_v5 = vld [vmem:[%s2608_s1 + $0x70] sm:$0xff]  ;;  %v2072_v9 = vld [vmem:[%s2608_s1 + $0x68] sm:$0xff]  ;;  %s2164_s28 = smul.u32 240, %s2616_s25  ;;  %vm1562_vm1 = vsmask.f32 256 }
   0xd   : > { %v2082_v2 = vld [vmem:[%s2608_s1 + $0xb8] sm:$0xff]  ;;  %771 = vmatpush.bf16.msra.mxu1 %v2074_v1  ;;  %v2081_v6 = vld [vmem:[%s2608_s1 + $0xb0] sm:$0xff]  ;;  %v2080_v10 = vld [vmem:[%s2608_s1 + $0xa8] sm:$0xff]  ;;  %s2165_s18 = smul.u32 60, %s2616_s25 }
   0xe   : > { %v2090_v3 = vld [vmem:[%s2608_s1 + $0xf8] sm:$0xff]  ;;  %819 = vmatpush.bf16.msra.mxu2 %v2082_v2  ;;  %v2089_v7 = vld [vmem:[%s2608_s1 + $0xf0] sm:$0xff]  ;;  %v2088_v11 = vld [vmem:[%s2608_s1 + $0xe8] sm:$0xff]  ;;  %s2323_s16 = scalar_lea.vmem %s2607_s0, %s2164_s28 }
   0xf   : > { %867 = vmatpush.bf16.msra.mxu3 %v2090_v3  ;;  %v2063_v12 = vld [vmem:[%s2608_s1 + $0x20] sm:$0xff]  ;;  %v2062_v16 = vld [vmem:[%s2608_s1 + $0x18] sm:$0xff]  ;;  %v2061_v20 = vld [vmem:[%s2608_s1 + $0x10] sm:$0xff]  ;;  %s2567_s21 = scalar_lea.vmem %s2614_s7, %s2165_s18 }
  0x10   : > { %724 = vmatpush.bf16.msra.mxu0 %v2065_v4  ;;  %v2071_v13 = vld [vmem:[%s2608_s1 + $0x60] sm:$0xff]  ;;  %v2070_v17 = vld [vmem:[%s2608_s1 + $0x58] sm:$0xff]  ;;  %v2069_v21 = vld [vmem:[%s2608_s1 + $0x50] sm:$0xff] }
  0x11   : > { %772 = vmatpush.bf16.msra.mxu1 %v2073_v5  ;;  %v2079_v14 = vld [vmem:[%s2608_s1 + $0xa0] sm:$0xff]  ;;  %v2078_v18 = vld [vmem:[%s2608_s1 + $0x98] sm:$0xff]  ;;  %v2077_v22 = vld [vmem:[%s2608_s1 + $0x90] sm:$0xff] }
  0x12   : > { %820 = vmatpush.bf16.msra.mxu2 %v2081_v6  ;;  %v2087_v15 = vld [vmem:[%s2608_s1 + $0xe0] sm:$0xff]  ;;  %v2086_v19 = vld [vmem:[%s2608_s1 + $0xd8] sm:$0xff]  ;;  %v2085_v23 = vld [vmem:[%s2608_s1 + $0xd0] sm:$0xff] }
  0x13   : > { %868 = vmatpush.bf16.msra.mxu3 %v2089_v7  ;;  %v2060_v24 = vld [vmem:[%s2608_s1 + $0x8] sm:$0xff]  ;;  %v2059_v28 = vld [vmem:[%s2608_s1] sm:$0xff]  ;;  %v2033_v33 = vld [vmem:[%s2323_s16 + $0xc] sm:$0xf0] }
  0x14   : > { %725 = vmatpush.bf16.msra.mxu0 %v2064_v8  ;;  %v2068_v25 = vld [vmem:[%s2608_s1 + $0x48] sm:$0xff]  ;;  %v2067_v29 = vld [vmem:[%s2608_s1 + $0x40] sm:$0xff]  ;;  %v1633_v35 = vld [vmem:[%s2323_s16 + $0x10] sm:$0xf0] }
  0x15   : > { %773 = vmatpush.bf16.msra.mxu1 %v2072_v9  ;;  %v2076_v26 = vld [vmem:[%s2608_s1 + $0x88] sm:$0xff]  ;;  %v2075_v30 = vld [vmem:[%s2608_s1 + $0x80] sm:$0xff]  ;;  %v2034_v37 = vld [vmem:[%s2323_s16 + $0x14] sm:$0xf0] }
  0x16   : > { %821 = vmatpush.bf16.msra.mxu2 %v2080_v10  ;;  %v2084_v27 = vld [vmem:[%s2608_s1 + $0xc8] sm:$0xff]  ;;  %v2083_v31 = vld [vmem:[%s2608_s1 + $0xc0] sm:$0xff]  ;;  %v1641_v39 = vld [vmem:[%s2323_s16 + $0x18] sm:$0xf0] }
  0x17   : > { %869 = vmatpush.bf16.msra.mxu3 %v2088_v11  ;;  %v1631_v32 = vld [vmem:[%s2323_s16] sm:$0xf]  ;;  %v2031_v34 = vld [vmem:[%s2323_s16 + $0x4] sm:$0xf]  ;;  %v1639_v36 = vld [vmem:[%s2323_s16 + $0x8] sm:$0xf] }
  0x18   : > { %726 = vmatpush.bf16.msra.mxu0 %v2063_v12  ;;  %v2032_v38 = vld [vmem:[%s2323_s16 + $0xc] sm:$0xf]  ;;  %v1632_v40 = vor.u32 %v2033_v33, %v1631_v32  ;;  %v2351_v41 = vor.u32 %v2031_v34, %v1633_v35  ;;  %v1640_v42 = vor.u32 %v2034_v37, %v1639_v36  ;;  %v2114_v44 = vld [vmem:[%s2609_s2 + $0xb8] sm:$0xff]  ;;  %v1647_v48 = vld [vmem:[%s2323_s16 + $0x20] sm:$0xf] }
  0x19   : > { %774 = vmatpush.bf16.msra.mxu1 %v2071_v13  ;;  %v1644_v43 = vor.u32 %v2032_v38, %v1641_v39  ;;  %v2122_v45 = vld [vmem:[%s2610_s3 + $0x38] sm:$0xff]  ;;  %v2037_v49 = vld [vmem:[%s2323_s16 + $0x2c] sm:$0xf0]  ;;  %v2035_v50 = vld [vmem:[%s2323_s16 + $0x24] sm:$0xf] }
  0x1a   : > { %822 = vmatpush.bf16.msra.mxu2 %v2079_v14  ;;  %v2106_v46 = vld [vmem:[%s2609_s2 + $0x78] sm:$0xff]  ;;  %v1649_v51 = vld [vmem:[%s2323_s16 + $0x30] sm:$0xf0]  ;;  %v1655_v52 = vld [vmem:[%s2323_s16 + $0x28] sm:$0xf]  ;;  %v1648_v56 = vor.u32 %v2037_v49, %v1647_v48 }
  0x1b   : > { %870 = vmatpush.bf16.msra.mxu3 %v2087_v15  ;;  %v2098_v47 = vld [vmem:[%s2609_s2 + $0x38] sm:$0xff]  ;;  %v2036_v54 = vld [vmem:[%s2323_s16 + $0x2c] sm:$0xf]  ;;  %v2374_v57 = vor.u32 %v2035_v50, %v1649_v51  ;;  %v2113_v60 = vld [vmem:[%s2609_s2 + $0xb0] sm:$0xff] }
  0x1c   : > { %727 = vmatpush.bf16.msra.mxu0 %v2062_v16  ;;  %v2038_v53 = vld [vmem:[%s2323_s16 + $0x34] sm:$0xf0]  ;;  %v1657_v55 = vld [vmem:[%s2323_s16 + $0x38] sm:$0xf0]  ;;  %v2121_v61 = vld [vmem:[%s2610_s3 + $0x30] sm:$0xff] }
  0x1d   : > { %775 = vmatpush.bf16.msra.mxu1 %v2070_v17  ;;  %v1656_v58 = vor.u32 %v2038_v53, %v1655_v52  ;;  %v1660_v59 = vor.u32 %v2036_v54, %v1657_v55  ;;  %v2105_v62 = vld [vmem:[%s2609_s2 + $0x70] sm:$0xff]  ;;  %v1663_v0 = vld [vmem:[%s2323_s16 + $0x40] sm:$0xf]  ;;  %v2039_v2 = vld [vmem:[%s2323_s16 + $0x44] sm:$0xf] }
  0x1e   : > { %823 = vmatpush.bf16.msra.mxu2 %v2078_v18  ;;  %v2097_v63 = vld [vmem:[%s2609_s2 + $0x30] sm:$0xff]  ;;  %v1671_v4 = vld [vmem:[%s2323_s16 + $0x48] sm:$0xf]  ;;  %v2042_v5 = vld [vmem:[%s2323_s16 + $0x54] sm:$0xf0] }
  0x1f   : > { %871 = vmatpush.bf16.msra.mxu3 %v2086_v19  ;;  %v2041_v1 = vld [vmem:[%s2323_s16 + $0x4c] sm:$0xf0]  ;;  %v1665_v3 = vld [vmem:[%s2323_s16 + $0x50] sm:$0xf0]  ;;  %v2040_v6 = vld [vmem:[%s2323_s16 + $0x4c] sm:$0xf]  ;;  %v1672_v10 = vor.u32 %v2042_v5, %v1671_v4 }
  0x20   : > { %728 = vmatpush.bf16.msra.mxu0 %v2061_v20  ;;  %v1673_v7 = vld [vmem:[%s2323_s16 + $0x58] sm:$0xf0]  ;;  %v1664_v8 = vor.u32 %v2041_v1, %v1663_v0  ;;  %v2397_v9 = vor.u32 %v2039_v2, %v1665_v3  ;;  %v2112_v12 = vld [vmem:[%s2609_s2 + $0xa8] sm:$0xff]  ;;  %v1679_v16 = vld [vmem:[%s2323_s16 + $0x60] sm:$0xf] }
  0x21   : > { %776 = vmatpush.bf16.msra.mxu1 %v2069_v21  ;;  %v1676_v11 = vor.u32 %v2040_v6, %v1673_v7  ;;  %v2120_v13 = vld [vmem:[%s2610_s3 + $0x28] sm:$0xff]  ;;  %v2045_v17 = vld [vmem:[%s2323_s16 + $0x6c] sm:$0xf0]  ;;  %v2043_v18 = vld [vmem:[%s2323_s16 + $0x64] sm:$0xf] }
  0x22   : > { %824 = vmatpush.bf16.msra.mxu2 %v2077_v22  ;;  %v2104_v14 = vld [vmem:[%s2609_s2 + $0x68] sm:$0xff]  ;;  %v1681_v19 = vld [vmem:[%s2323_s16 + $0x70] sm:$0xf0]  ;;  %v2046_v21 = vld [vmem:[%s2323_s16 + $0x74] sm:$0xf0] }
  0x23   : > { %872 = vmatpush.bf16.msra.mxu3 %v2085_v23  ;;  %v2096_v15 = vld [vmem:[%s2609_s2 + $0x28] sm:$0xff]  ;;  %v1689_v23 = vld [vmem:[%s2323_s16 + $0x78] sm:$0xf0]  ;;  %v1695_v32 = vld [vmem:[%s2323_s16 + $0x80] sm:$0xf] }
  0x24   : > { %729 = vmatpush.bf16.msra.mxu0 %v2060_v24  ;;  %v1687_v20 = vld [vmem:[%s2323_s16 + $0x68] sm:$0xf]  ;;  %v2044_v22 = vld [vmem:[%s2323_s16 + $0x6c] sm:$0xf]  ;;  %v1680_v24 = vor.u32 %v2045_v17, %v1679_v16  ;;  %v2049_v33 = vld [vmem:[%s2323_s16 + $0x8c] sm:$0xf0] }
  0x25   : > { %777 = vmatpush.bf16.msra.mxu1 %v2068_v25  ;;  %v2420_v25 = vor.u32 %v2043_v18, %v1681_v19  ;;  %v2047_v34 = vld [vmem:[%s2323_s16 + $0x84] sm:$0xf]  ;;  %v1697_v35 = vld [vmem:[%s2323_s16 + $0x90] sm:$0xf0]  ;;  %v1703_v36 = vld [vmem:[%s2323_s16 + $0x88] sm:$0xf] }
  0x26   : > { %825 = vmatpush.bf16.msra.mxu2 %v2076_v26  ;;  %v1688_v26 = vor.u32 %v2046_v21, %v1687_v20  ;;  %v2050_v37 = vld [vmem:[%s2323_s16 + $0x94] sm:$0xf0]  ;;  %v2048_v38 = vld [vmem:[%s2323_s16 + $0x8c] sm:$0xf]  ;;  %v1705_v39 = vld [vmem:[%s2323_s16 + $0x98] sm:$0xf0] }
  0x27   : > { %873 = vmatpush.bf16.msra.mxu3 %v2084_v27  ;;  %v1692_v27 = vor.u32 %v2044_v22, %v1689_v23  ;;  %v2094_v48 = vld [vmem:[%s2609_s2 + $0x18] sm:$0xff]  ;;  %v1711_v49 = vld [vmem:[%s2323_s16 + $0xa0] sm:$0xf]  ;;  %v2053_v50 = vld [vmem:[%s2323_s16 + $0xac] sm:$0xf0]  ;;  %v2186_v21 = vmov 0.0  }
  0x28   : > { %730 = vmatpush.bf16.msra.mxu0 %v2059_v28  ;;  %v2111_v28 = vld [vmem:[%s2609_s2 + $0xa0] sm:$0xff]  ;;  %v1713_v52 = vld [vmem:[%s2323_s16 + $0xb0] sm:$0xf0]  ;;  %v1719_v53 = vld [vmem:[%s2323_s16 + $0xa8] sm:$0xf]  ;;  %930 = vst [vmem:[#allocation2] sm:$0xff] %v2186_v21 }
  0x29   : > { %778 = vmatpush.bf16.msra.mxu1 %v2067_v29  ;;  %v2119_v29 = vld [vmem:[%s2610_s3 + $0x20] sm:$0xff]  ;;  %v2054_v54 = vld [vmem:[%s2323_s16 + $0xb4] sm:$0xf0]  ;;  %v2052_v55 = vld [vmem:[%s2323_s16 + $0xac] sm:$0xf]  ;;  %931 = vst [vmem:[#allocation2 + $0x8] sm:$0xff] %v2186_v21 }
  0x2a   : > { %826 = vmatpush.bf16.msra.mxu2 %v2075_v30  ;;  %v2103_v30 = vld [vmem:[%s2609_s2 + $0x60] sm:$0xff]  ;;  %v2101_v0 = vld [vmem:[%s2609_s2 + $0x50] sm:$0xff]  ;;  %v1735_v6 = vld [vmem:[%s2323_s16 + $0xc8] sm:$0xf]  ;;  %932 = vst [vmem:[#allocation2 + $0x10] sm:$0xff] %v2186_v21 }
  0x2b   : > { %874 = vmatpush.bf16.msra.mxu3 %v2083_v31  ;;  %731 = vmatmul.bf16.vlgmr.msra.gmra.mxu0 %v1632_v40  ;;  %v2095_v31 = vld [vmem:[%s2609_s2 + $0x20] sm:$0xff]  ;;  %v1696_v40 = vor.u32 %v2049_v33, %v1695_v32  ;;  %v2093_v1 = vld [vmem:[%s2609_s2 + $0x10] sm:$0xff]  ;;  %v2058_v7 = vld [vmem:[%s2323_s16 + $0xd4] sm:$0xf0]  ;;  %933 = vst [vmem:[#allocation2 + $0x18] sm:$0xff] %v2186_v21 }
  0x2c   : > { %779 = vmatmul.bf16.vlgmr.msra.gmra.mxu1 %v2351_v41  ;;  %1072 = vmatpush.bf16.msrb.mxu0 %v2106_v46  ;;  %v2118_v46 = vld [vmem:[%s2610_s3 + $0x18] sm:$0xff]  ;;  %v2051_v51 = vld [vmem:[%s2323_s16 + $0xa4] sm:$0xf]  ;;  %v1727_v2 = vld [vmem:[%s2323_s16 + $0xc0] sm:$0xf]  ;;  %934 = vst [vmem:[#allocation2 + $0x20] sm:$0xff] %v2186_v21 }
  0x2d   : > { %827 = vmatmul.bf16.vlgmr.msra.gmra.mxu2 %v1640_v42  ;;  %1168 = vmatpush.bf16.msrb.mxu1 %v2098_v47  ;;  %v2443_v42 = vor.u32 %v2047_v34, %v1697_v35  ;;  %v2102_v47 = vld [vmem:[%s2609_s2 + $0x58] sm:$0xff]  ;;  %v2057_v3 = vld [vmem:[%s2323_s16 + $0xcc] sm:$0xf0]  ;;  %v2055_v4 = vld [vmem:[%s2323_s16 + $0xc4] sm:$0xf]  ;;  %935 = vst [vmem:[#allocation2 + $0x28] sm:$0xff] %v2186_v21 }
  0x2e   : > { %875 = vmatmul.bf16.vlgmr.msra.gmra.mxu3 %v1644_v43  ;;  %1304 = vmatpush.bf16.msrb.mxu2 %v2114_v44  ;;  %v1704_v43 = vor.u32 %v2050_v37, %v1703_v36  ;;  %v1708_v44 = vor.u32 %v2048_v38, %v1705_v39  ;;  %v1729_v5 = vld [vmem:[%s2323_s16 + $0xd0] sm:$0xf0]  ;;  %v308_v16 = vld [vmem:[%s2323_s16 + $0xe8] sm:$0x11]  ;;  %936 = vst [vmem:[#allocation2 + $0x30] sm:$0xff] %v2186_v21  ;;  %v2091_v32 = vld [vmem:[%s2609_s2] sm:$0xff] }
  0x2f   : > { %1454 = vmatpush.bf16.msrb.mxu3 %v2122_v45  ;;  %v2110_v45 = vld [vmem:[%s2609_s2 + $0x98] sm:$0xff]  ;;  %v465_v19 = vunpack.c.l.b16 %v308_v16  ;;  %v466_v20 = vunpack.c.h.b16 %v308_v16  ;;  %v2108_v22 = vld [vmem:[%s2609_s2 + $0x88] sm:$0xff]  ;;  %937 = vst [vmem:[#allocation2 + $0x38] sm:$0xff] %v2186_v21  ;;  %v2518_v33 = vld [vmem:[%s2611_s4] ss:$0 sm:$0xff] }
  0x30   : > { %1073 = vmatpush.bf16.msrb.mxu0 %v2105_v62  ;;  %v2109_v62 = vld [vmem:[%s2609_s2 + $0x90] sm:$0xff]  ;;  %v2116_v23 = vld [vmem:[%s2610_s3 + $0x8] sm:$0xff]  ;;  %938 = vst [vmem:[#allocation2 + $0x40] sm:$0xff] %v2186_v21  ;;  %v2115_v34 = vld [vmem:[%s2610_s3] sm:$0xff] }
  0x31   : > { %1169 = vmatpush.bf16.msrb.mxu1 %v2097_v63  ;;  %v2117_v63 = vld [vmem:[%s2610_s3 + $0x10] sm:$0xff]  ;;  %939 = vst [vmem:[#allocation2 + $0x48] sm:$0xff] %v2186_v21  ;;  %v2107_v35 = vld [vmem:[%s2609_s2 + $0x80] sm:$0xff]  ;;  %vm1563_vm2 = vmand %vm1561_vm0, %vm1562_vm1 }
  0x32   : > { %1305 = vmatpush.bf16.msrb.mxu2 %v2113_v60  ;;  %v1720_v60 = vor.u32 %v2054_v54, %v1719_v53  ;;  %940 = vst [vmem:[#allocation2 + $0x50] sm:$0xff] %v2186_v21 }
  0x33   : > { %1455 = vmatpush.bf16.msrb.mxu3 %v2121_v61  ;;  %941 = vst [vmem:[#allocation2 + $0x58] sm:$0xff] %v2186_v21 }
  0x34   : > { %1074 = vmatpush.bf16.msrb.mxu0 %v2104_v14  ;;  %942 = vst [vmem:[#allocation2 + $0x60] sm:$0xff] %v2186_v21 }
  0x35   : > { %1170 = vmatpush.bf16.msrb.mxu1 %v2096_v15  ;;  %v307_v15 = vld [vmem:[%s2323_s16 + $0xe0] sm:$0x11]  ;;  %943 = vst [vmem:[#allocation2 + $0x68] sm:$0xff] %v2186_v21 }
  0x36   : > { %1306 = vmatpush.bf16.msrb.mxu2 %v2112_v12  ;;  %v2489_v12 = vor.u32 %v2055_v4, %v1729_v5  ;;  %v463_v17 = vunpack.c.l.b16 %v307_v15  ;;  %v464_v18 = vunpack.c.h.b16 %v307_v15  ;;  %944 = vst [vmem:[#allocation2 + $0x70] sm:$0x7] %v2186_v21 }
  0x37   : > { %1456 = vmatpush.bf16.msrb.mxu3 %v2120_v13  ;;  %v1736_v13 = vor.u32 %v2058_v7, %v1735_v6 }
  0x38   : > { %1075 = vmatpush.bf16.msrb.mxu0 %v2103_v30  ;;  %v498_v30 = vpack.c.b16 %v466_v20, %v466_v20 }
  0x39   : > { %1171 = vmatpush.bf16.msrb.mxu1 %v2095_v31  ;;  %v2099_v31 = vld [vmem:[%s2609_s2 + $0x40] sm:$0xff] }
  0x3a   : > { %1307 = vmatpush.bf16.msrb.mxu2 %v2111_v28  ;;  %v2092_v28 = vld [vmem:[%s2609_s2 + $0x8] sm:$0xff] }
  0x3b   : > { %736 = vmatmul.bf16.gmra.mxu0 %v1648_v56  ;;  %1457 = vmatpush.bf16.msrb.mxu3 %v2119_v29  ;;  %v1721_v56 = vld [vmem:[%s2323_s16 + $0xb8] sm:$0xf0]  ;;  %v497_v29 = vpack.c.b16 %v465_v19, %v465_v19 }
  0x3c   : > { %784 = vmatmul.bf16.gmra.mxu1 %v2374_v57  ;;  %1076 = vmatpush.bf16.msrb.mxu0 %v2102_v47  ;;  %v1724_v61 = vor.u32 %v2052_v55, %v1721_v56 }
  0x3d   : > { %832 = vmatmul.bf16.gmra.mxu2 %v1656_v58  ;;  %1172 = vmatpush.bf16.msrb.mxu1 %v2094_v48  ;;  %v1712_v58 = vor.u32 %v2053_v50, %v1711_v49 }
  0x3e   : > { %880 = vmatmul.bf16.gmra.mxu3 %v1660_v59  ;;  %1308 = vmatpush.bf16.msrb.mxu2 %v2110_v45  ;;  %v2466_v59 = vor.u32 %v2051_v51, %v1713_v52 }
  0x3f   : > { %1458 = vmatpush.bf16.msrb.mxu3 %v2118_v46 }
  0x40   : > { %1077 = vmatpush.bf16.msrb.mxu0 %v2101_v0 }
  0x41   : > { %1173 = vmatpush.bf16.msrb.mxu1 %v2093_v1 }
  0x42   : > { %1309 = vmatpush.bf16.msrb.mxu2 %v2109_v62 }
  0x43   : > { %1459 = vmatpush.bf16.msrb.mxu3 %v2117_v63 }
  0x45   : > { %1174 = vmatpush.bf16.msrb.mxu1 %v2092_v28 }
  0x46   : > { %1310 = vmatpush.bf16.msrb.mxu2 %v2108_v22 }
  0x47   : > { %1460 = vmatpush.bf16.msrb.mxu3 %v2116_v23 }
  0x49   : > { %1175 = vmatpush.bf16.msrb.mxu1 %v2091_v32 }
  0x4a   : > { %1311 = vmatpush.bf16.msrb.mxu2 %v2107_v35 }
  0x4b   : > { %741 = vmatmul.bf16.gmra.mxu0 %v1664_v8  ;;  %v2056_v8 = vld [vmem:[%s2323_s16 + $0xcc] sm:$0xf]  ;;  %1461 = vmatpush.bf16.msrb.mxu3 %v2115_v34 }
  0x4c   : > { %789 = vmatmul.bf16.gmra.mxu1 %v2397_v9 }
  0x4d   : > { %837 = vmatmul.bf16.gmra.mxu2 %v1672_v10  ;;  %v1737_v10 = vld [vmem:[%s2323_s16 + $0xd8] sm:$0xf0] }
  0x4e   : > { %885 = vmatmul.bf16.gmra.mxu3 %v1676_v11  ;;  %v1728_v11 = vor.u32 %v2057_v3, %v1727_v2  ;;  %v1740_v14 = vor.u32 %v2056_v8, %v1737_v10 }
  0x5b   : > { %746 = vmatmul.bf16.gmra.mxu0 %v1680_v24  ;;  %v2100_v24 = vld [vmem:[%s2609_s2 + $0x48] sm:$0xff] }
  0x5c   : > { %794 = vmatmul.bf16.gmra.mxu1 %v2420_v25  ;;  %1078 = vmatpush.bf16.msrb.mxu0 %v2100_v24 }
  0x5d   : > { %842 = vmatmul.bf16.gmra.mxu2 %v1688_v26  ;;  %v495_v26 = vpack.c.b16 %v463_v17, %v463_v17 }
  0x5e   : > { %890 = vmatmul.bf16.gmra.mxu3 %v1692_v27  ;;  %v2503_v27 = vpack.c.b16 %v464_v18, %v464_v18 }
  0x60   : > { %1079 = vmatpush.bf16.msrb.mxu0 %v2099_v31 }
  0x6b   : > { %751 = vmatmul.bf16.gmra.mxu0 %v1696_v40 }
  0x6c   : > { %799 = vmatmul.bf16.gmra.mxu1 %v2443_v42 }
  0x6d   : > { %847 = vmatmul.bf16.gmra.mxu2 %v1704_v43 }
  0x6e   : > { %895 = vmatmul.bf16.gmra.mxu3 %v1708_v44 }
  0x7b   : > { %756 = vmatmul.bf16.gmra.mxu0 %v1712_v58 }
  0x7c   : > { %804 = vmatmul.bf16.gmra.mxu1 %v2466_v59 }
  0x7d   : > { %852 = vmatmul.bf16.gmra.mxu2 %v1720_v60 }
  0x7e   : > { %900 = vmatmul.bf16.gmra.mxu3 %v1724_v61 }
  0x8b   : > { %761 = vmatmul.bf16.gmra.mxu0 %v1728_v11 }
  0x8c   : > { %809 = vmatmul.bf16.gmra.mxu1 %v2489_v12 }
  0x8d   : > { %857 = vmatmul.bf16.gmra.mxu2 %v1736_v13 }
  0x8e   : > { %905 = vmatmul.bf16.gmra.mxu3 %v1740_v14 }
  0x9b   : > { %766 = vmatmul.bf16.gmra.mxu0 %v495_v26 }
  0x9c   : > { %814 = vmatmul.bf16.gmra.mxu1 %v2503_v27 }
  0x9d   : > { %862 = vmatmul.bf16.gmra.mxu2 %v497_v29 }
  0x9e   : > { %910 = vmatmul.bf16.gmra.mxu3 %v498_v30 }
  0xa8   : > { %v732_v36 = vpop.f32.mrf.mxu0 }
  0xa9   : > { %v780_v37 = vpop.f32.mrf.mxu1  ;;  %v733_v38 = vadd.f32 %v2518_v33, %v732_v36 }
  0xab   : > { %v781_v39 = vadd.f32 %v780_v37, %v733_v38 }
  0xae   : > { %1462 = vmatmul.bf16.vlgmr.msrb.gmra.mxu3 %v2351_v41 }
  0xb0   : > { %v828_v40 = vpop.f32.mrf.mxu2  ;;  %v734_v45 = vpop.f32.mrf.mxu0 }
  0xb1   : > { %v876_v43 = vpop.f32.mrf.mxu3  ;;  %v829_v44 = vadd.f32 %v828_v40, %v781_v39  ;;  %v782_v46 = vpop.f32.mrf.mxu1  ;;  %v735_v48 = vadd.f32 %v2518_v33, %v734_v45 }
  0xb3   : > { %v877_v47 = vadd.f32 %v876_v43, %v829_v44  ;;  %v783_v50 = vadd.f32 %v782_v46, %v735_v48 }
  0xb5   : > { %v915_v49 = vmax.f32 %v877_v47, 0.0 }
  0xb7   : > { %945 = vst [vmem:[#allocation2 + $0x1] sm:$0xff] %v915_v49 }
  0xb8   : > { %v830_v51 = vpop.f32.mrf.mxu2  ;;  %v737_v54 = vpop.f32.mrf.mxu0 }
  0xb9   : > { %v878_v52 = vpop.f32.mrf.mxu3  ;;  %v831_v53 = vadd.f32 %v830_v51, %v783_v50  ;;  %v785_v55 = vpop.f32.mrf.mxu1  ;;  %v738_v56 = vadd.f32 %v2518_v33, %v737_v54 }
  0xbb   : > { %v879_v58 = vadd.f32 %v878_v52, %v831_v53  ;;  %v786_v60 = vadd.f32 %v785_v55, %v738_v56 }
  0xbd   : > { %v916_v41 = vmax.f32 %v879_v58, 0.0 }
  0xbe   : > { %1467 = vmatmul.bf16.gmra.mxu3 %v2374_v57  ;;  %v960_v6 = vld [vmem:[#allocation2] sm:$0xff] }
  0xbf   : > { %946 = vst [vmem:[#allocation2 + $0x9] sm:$0xff] %v916_v41  ;;  %v999_v61 = vpack.c.bf16 %v916_v41, %v915_v49 }
  0xc0   : > { %v833_v62 = vpop.f32.mrf.mxu2  ;;  %v739_v1 = vpop.f32.mrf.mxu0 }
  0xc1   : > { %v881_v63 = vpop.f32.mrf.mxu3  ;;  %v834_v0 = vadd.f32 %v833_v62, %v786_v60  ;;  %1080 = vmatmul.bf16.vlgmr.msrb.gmra.mxu0 %v999_v61  ;;  %v787_v2 = vpop.f32.mrf.mxu1  ;;  %v740_v4 = vadd.f32 %v2518_v33, %v739_v1 }
  0xc3   : > { %v882_v3 = vadd.f32 %v881_v63, %v834_v0  ;;  %v788_v8 = vadd.f32 %v787_v2, %v740_v4 }
  0xc5   : > { %v917_v5 = vmax.f32 %v882_v3, 0.0 }
  0xc6   : > { %v961_v7 = vld [vmem:[#allocation2 + $0x8] sm:$0xff] }
  0xc7   : > { %947 = vst [vmem:[#allocation2 + $0x11] sm:$0xff] %v917_v5  ;;  %v975_v10 = vpack.c.bf16 %v961_v7, %v960_v6  ;;  %v1216_v20 = vld [vmem:[#allocation2 + $0x2] sm:$0xff] }
  0xc8   : > { %v835_v11 = vpop.f32.mrf.mxu2  ;;  %v742_v14 = vpop.f32.mrf.mxu0 }
  0xc9   : > { %v883_v13 = vpop.f32.mrf.mxu3  ;;  %v836_v57 = vadd.f32 %v835_v11, %v788_v8  ;;  %1176 = vmatmul.bf16.vlgmr.msrb.gmra.mxu1 %v975_v10  ;;  %v790_v15 = vpop.f32.mrf.mxu1  ;;  %v743_v16 = vadd.f32 %v2518_v33, %v742_v14 }
  0xcb   : > { %v884_v17 = vadd.f32 %v883_v13, %v836_v57  ;;  %v791_v19 = vadd.f32 %v790_v15, %v743_v16 }
  0xcd   : > { %v918_v18 = vmax.f32 %v884_v17, 0.0 }
  0xce   : > { %1472 = vmatmul.bf16.gmra.mxu3 %v2397_v9  ;;  %v1217_v21 = vld [vmem:[#allocation2 + $0xa] sm:$0xff] }
  0xcf   : > { %948 = vst [vmem:[#allocation2 + $0x19] sm:$0xff] %v918_v18  ;;  %v1000_v22 = vpack.c.bf16 %v918_v18, %v917_v5  ;;  %v1231_v23 = vpack.c.bf16 %v1217_v21, %v1216_v20  ;;  %v962_v35 = vld [vmem:[#allocation2 + $0x10] sm:$0xff] }
  0xd0   : > { %v838_v24 = vpop.f32.mrf.mxu2  ;;  %v744_v29 = vpop.f32.mrf.mxu0 }
  0xd1   : > { %v886_v26 = vpop.f32.mrf.mxu3  ;;  %v839_v28 = vadd.f32 %v838_v24, %v791_v19  ;;  %1085 = vmatmul.bf16.gmra.mxu0 %v1000_v22  ;;  %1312 = vmatmul.bf16.vlgmr.msrb.gmra.mxu2 %v1231_v23  ;;  %v792_v30 = vpop.f32.mrf.mxu1  ;;  %v745_v32 = vadd.f32 %v2518_v33, %v744_v29 }
  0xd3   : > { %v887_v31 = vadd.f32 %v886_v26, %v839_v28  ;;  %v793_v9 = vadd.f32 %v792_v30, %v745_v32 }
  0xd5   : > { %v919_v34 = vmax.f32 %v887_v31, 0.0 }
  0xd6   : > { %v963_v36 = vld [vmem:[#allocation2 + $0x18] sm:$0xff] }
  0xd7   : > { %949 = vst [vmem:[#allocation2 + $0x21] sm:$0xff] %v919_v34  ;;  %v976_v37 = vpack.c.bf16 %v963_v36, %v962_v35  ;;  %v1218_v49 = vld [vmem:[#allocation2 + $0x12] sm:$0xff] }
  0xd8   : > { %v840_v38 = vpop.f32.mrf.mxu2  ;;  %v747_v43 = vpop.f32.mrf.mxu0 }
  0xd9   : > { %v888_v39 = vpop.f32.mrf.mxu3  ;;  %v841_v40 = vadd.f32 %v840_v38, %v793_v9  ;;  %1181 = vmatmul.bf16.gmra.mxu1 %v976_v37  ;;  %v795_v44 = vpop.f32.mrf.mxu1  ;;  %v748_v45 = vadd.f32 %v2518_v33, %v747_v43 }
  0xdb   : > { %v889_v46 = vadd.f32 %v888_v39, %v841_v40  ;;  %v796_v48 = vadd.f32 %v795_v44, %v748_v45 }
  0xdd   : > { %v920_v47 = vmax.f32 %v889_v46, 0.0 }
  0xde   : > { %1477 = vmatmul.bf16.gmra.mxu3 %v2420_v25  ;;  %v1219_v50 = vld [vmem:[#allocation2 + $0x1a] sm:$0xff] }
  0xdf   : > { %950 = vst [vmem:[#allocation2 + $0x29] sm:$0xff] %v920_v47  ;;  %v1001_v51 = vpack.c.bf16 %v920_v47, %v919_v34  ;;  %v1232_v52 = vpack.c.bf16 %v1219_v50, %v1218_v49  ;;  %v964_v62 = vld [vmem:[#allocation2 + $0x20] sm:$0xff] }
  0xe0   : > { %v843_v53 = vpop.f32.mrf.mxu2  ;;  %v749_v56 = vpop.f32.mrf.mxu0 }
  0xe1   : > { %v891_v54 = vpop.f32.mrf.mxu3  ;;  %v844_v55 = vadd.f32 %v843_v53, %v796_v48  ;;  %1090 = vmatmul.bf16.gmra.mxu0 %v1001_v51  ;;  %1317 = vmatmul.bf16.gmra.mxu2 %v1232_v52  ;;  %v797_v58 = vpop.f32.mrf.mxu1  ;;  %v750_v60 = vadd.f32 %v2518_v33, %v749_v56 }
  0xe3   : > { %v892_v41 = vadd.f32 %v891_v54, %v844_v55  ;;  %v798_v25 = vadd.f32 %v797_v58, %v750_v60 }
  0xe5   : > { %v921_v61 = vmax.f32 %v892_v41, 0.0 }
  0xe6   : > { %v965_v63 = vld [vmem:[#allocation2 + $0x28] sm:$0xff] }
  0xe7   : > { %951 = vst [vmem:[#allocation2 + $0x31] sm:$0xff] %v921_v61  ;;  %v977_v0 = vpack.c.bf16 %v965_v63, %v964_v62  ;;  %v1220_v11 = vld [vmem:[#allocation2 + $0x22] sm:$0xff] }
  0xe8   : > { %v845_v1 = vpop.f32.mrf.mxu2  ;;  %v752_v4 = vpop.f32.mrf.mxu0 }
  0xe9   : > { %v893_v2 = vpop.f32.mrf.mxu3  ;;  %v846_v3 = vadd.f32 %v845_v1, %v798_v25  ;;  %1186 = vmatmul.bf16.gmra.mxu1 %v977_v0  ;;  %v800_v5 = vpop.f32.mrf.mxu1  ;;  %v753_v6 = vadd.f32 %v2518_v33, %v752_v4 }
  0xeb   : > { %v894_v7 = vadd.f32 %v893_v2, %v846_v3  ;;  %v801_v10 = vadd.f32 %v800_v5, %v753_v6 }
  0xed   : > { %v922_v8 = vmax.f32 %v894_v7, 0.0 }
  0xee   : > { %1482 = vmatmul.bf16.gmra.mxu3 %v2443_v42  ;;  %v1221_v13 = vld [vmem:[#allocation2 + $0x2a] sm:$0xff] }
  0xef   : > { %952 = vst [vmem:[#allocation2 + $0x39] sm:$0xff] %v922_v8  ;;  %v1002_v57 = vpack.c.bf16 %v922_v8, %v921_v61  ;;  %v1233_v14 = vpack.c.bf16 %v1221_v13, %v1220_v11  ;;  %v966_v23 = vld [vmem:[#allocation2 + $0x30] sm:$0xff] }
  0xf0   : > { %v848_v15 = vpop.f32.mrf.mxu2  ;;  %v754_v18 = vpop.f32.mrf.mxu0 }
  0xf1   : > { %v896_v16 = vpop.f32.mrf.mxu3  ;;  %v849_v17 = vadd.f32 %v848_v15, %v801_v10  ;;  %1095 = vmatmul.bf16.gmra.mxu0 %v1002_v57  ;;  %1322 = vmatmul.bf16.gmra.mxu2 %v1233_v14  ;;  %v802_v19 = vpop.f32.mrf.mxu1  ;;  %v755_v21 = vadd.f32 %v2518_v33, %v754_v18 }
  0xf3   : > { %v897_v20 = vadd.f32 %v896_v16, %v849_v17  ;;  %v803_v42 = vadd.f32 %v802_v19, %v755_v21 }
  0xf5   : > { %v923_v22 = vmax.f32 %v897_v20, 0.0 }
  0xf6   : > { %v967_v24 = vld [vmem:[#allocation2 + $0x38] sm:$0xff] }
  0xf7   : > { %953 = vst [vmem:[#allocation2 + $0x41] sm:$0xff] %v923_v22  ;;  %v978_v26 = vpack.c.bf16 %v967_v24, %v966_v23  ;;  %v1222_v37 = vld [vmem:[#allocation2 + $0x32] sm:$0xff] }
  0xf8   : > { %v850_v28 = vpop.f32.mrf.mxu2  ;;  %v757_v31 = vpop.f32.mrf.mxu0 }
  0xf9   : > { %v898_v29 = vpop.f32.mrf.mxu3  ;;  %v851_v30 = vadd.f32 %v850_v28, %v803_v42  ;;  %1191 = vmatmul.bf16.gmra.mxu1 %v978_v26  ;;  %v805_v32 = vpop.f32.mrf.mxu1  ;;  %v758_v34 = vadd.f32 %v2518_v33, %v757_v31 }
  0xfb   : > { %v899_v35 = vadd.f32 %v898_v29, %v851_v30  ;;  %v806_v9 = vadd.f32 %v805_v32, %v758_v34 }
  0xfd   : > { %v924_v36 = vmax.f32 %v899_v35, 0.0 }
  0xfe   : > { %1487 = vmatmul.bf16.gmra.mxu3 %v2466_v59  ;;  %v1223_v38 = vld [vmem:[#allocation2 + $0x3a] sm:$0xff] }
  0xff   : > { %954 = vst [vmem:[#allocation2 + $0x49] sm:$0xff] %v924_v36  ;;  %v1003_v39 = vpack.c.bf16 %v924_v36, %v923_v22  ;;  %v1234_v40 = vpack.c.bf16 %v1223_v38, %v1222_v37  ;;  %v968_v51 = vld [vmem:[#allocation2 + $0x40] sm:$0xff] }
 0x100   : > { %v853_v43 = vpop.f32.mrf.mxu2  ;;  %v759_v46 = vpop.f32.mrf.mxu0 }
 0x101   : > { %v901_v44 = vpop.f32.mrf.mxu3  ;;  %v854_v45 = vadd.f32 %v853_v43, %v806_v9  ;;  %1100 = vmatmul.bf16.gmra.mxu0 %v1003_v39  ;;  %1327 = vmatmul.bf16.gmra.mxu2 %v1234_v40  ;;  %v807_v47 = vpop.f32.mrf.mxu1  ;;  %v760_v49 = vadd.f32 %v2518_v33, %v759_v46 }
 0x103   : > { %v902_v48 = vadd.f32 %v901_v44, %v854_v45  ;;  %v808_v59 = vadd.f32 %v807_v47, %v760_v49  ;;  %v1230_v49 = vld [vmem:[#allocation2 + $0x72] sm:$0x1] }
 0x105   : > { %v925_v50 = vmax.f32 %v902_v48, 0.0 }
 0x106   : > { %v969_v52 = vld [vmem:[#allocation2 + $0x48] sm:$0xff] }
 0x107   : > { %955 = vst [vmem:[#allocation2 + $0x51] sm:$0xff] %v925_v50  ;;  %v979_v53 = vpack.c.bf16 %v969_v52, %v968_v51  ;;  %v1224_v25 = vld [vmem:[#allocation2 + $0x42] sm:$0xff] }
 0x108   : > { %v855_v54 = vpop.f32.mrf.mxu2  ;;  %v762_v58 = vpop.f32.mrf.mxu0 }
 0x109   : > { %v903_v55 = vpop.f32.mrf.mxu3  ;;  %v856_v56 = vadd.f32 %v855_v54, %v808_v59  ;;  %1196 = vmatmul.bf16.gmra.mxu1 %v979_v53  ;;  %v810_v41 = vpop.f32.mrf.mxu1  ;;  %v763_v60 = vadd.f32 %v2518_v33, %v762_v58 }
 0x10b   : > { %v904_v61 = vadd.f32 %v903_v55, %v856_v56  ;;  %v811_v63 = vadd.f32 %v810_v41, %v763_v60 }
 0x10d   : > { %v926_v62 = vmax.f32 %v904_v61, 0.0 }
 0x10e   : > { %1492 = vmatmul.bf16.gmra.mxu3 %v2489_v12  ;;  %v1225_v0 = vld [vmem:[#allocation2 + $0x4a] sm:$0xff] }
 0x10f   : > { %956 = vst [vmem:[#allocation2 + $0x59] sm:$0xff] %v926_v62  ;;  %v1004_v1 = vpack.c.bf16 %v926_v62, %v925_v50  ;;  %v1235_v2 = vpack.c.bf16 %v1225_v0, %v1224_v25  ;;  %v970_v13 = vld [vmem:[#allocation2 + $0x50] sm:$0xff]  ;;  %v1238_v50 = vpack.c.bf16 %v1230_v49, %v1230_v49  ;;  %v2557_v0 = vld [vmem:[%s2612_s5] ss:$0 sm:$0xff] }
 0x110   : > { %v858_v3 = vpop.f32.mrf.mxu2  ;;  %v764_v6 = vpop.f32.mrf.mxu0 }
 0x111   : > { %v906_v4 = vpop.f32.mrf.mxu3  ;;  %v859_v5 = vadd.f32 %v858_v3, %v811_v63  ;;  %1105 = vmatmul.bf16.gmra.mxu0 %v1004_v1  ;;  %1332 = vmatmul.bf16.gmra.mxu2 %v1235_v2  ;;  %v812_v7 = vpop.f32.mrf.mxu1  ;;  %v765_v10 = vadd.f32 %v2518_v33, %v764_v6  ;;  %v2552_v63 = vld [vmem:[%s2613_s6] ss:$0 sm:$0xff] }
 0x113   : > { %v907_v8 = vadd.f32 %v906_v4, %v859_v5  ;;  %v813_v12 = vadd.f32 %v812_v7, %v765_v10 }
 0x115   : > { %v927_v11 = vmax.f32 %v907_v8, 0.0 }
 0x116   : > { %v971_v57 = vld [vmem:[#allocation2 + $0x58] sm:$0xff] }
 0x117   : > { %957 = vst [vmem:[#allocation2 + $0x61] sm:$0xff] %v927_v11  ;;  %v980_v14 = vpack.c.bf16 %v971_v57, %v970_v13  ;;  %v1226_v24 = vld [vmem:[#allocation2 + $0x52] sm:$0xff] }
 0x118   : > { %v860_v15 = vpop.f32.mrf.mxu2  ;;  %v767_v18 = vpop.f32.mrf.mxu0 }
 0x119   : > { %v908_v16 = vpop.f32.mrf.mxu3  ;;  %v861_v17 = vadd.f32 %v860_v15, %v813_v12  ;;  %1201 = vmatmul.bf16.gmra.mxu1 %v980_v14  ;;  %v815_v19 = vpop.f32.mrf.mxu1  ;;  %v768_v20 = vadd.f32 %v2518_v33, %v767_v18 }
 0x11b   : > { %v909_v21 = vadd.f32 %v908_v16, %v861_v17  ;;  %v816_v23 = vadd.f32 %v815_v19, %v768_v20 }
 0x11d   : > { %v928_v22 = vmax.f32 %v909_v21, 0.0 }
 0x11e   : > { %1497 = vmatmul.bf16.gmra.mxu3 %v2503_v27  ;;  %v1227_v42 = vld [vmem:[#allocation2 + $0x5a] sm:$0xff] }
 0x11f   : > { %v1005_v26 = vpack.c.bf16 %v928_v22, %v927_v11  ;;  %958 = vst [vmem:[#allocation2 + $0x69] sm:$0xff] %v928_v22  ;;  %v1236_v28 = vpack.c.bf16 %v1227_v42, %v1226_v24  ;;  %v972_v33 = vld [vmem:[#allocation2 + $0x60] sm:$0xff] }
 0x120   : > { %v863_v29 = vpop.f32.mrf.mxu2  ;;  %v769_v32 = vpop.f32.mrf.mxu0 }
 0x121   : > { %v911_v30 = vpop.f32.mrf.mxu3  ;;  %v864_v31 = vadd.f32 %v863_v29, %v816_v23  ;;  %1110 = vmatmul.bf16.gmra.mxu0 %v1005_v26  ;;  %1337 = vmatmul.bf16.gmra.mxu2 %v1236_v28  ;;  %v817_v34 = vpop.f32.mrf.mxu1 }
 0x123   : > { %v912_v35 = vadd.f32 %v911_v30, %v864_v31 }
 0x125   : > { %v929_v36 = vmax.f32 %v912_v35, 0.0 }
 0x126   : > { %v973_v9 = vld [vmem:[#allocation2 + $0x68] sm:$0xff]  ;;  %v974_v46 = vld [vmem:[#allocation2 + $0x70] sm:$0x1] }
 0x127   : > { %959 = vst [vmem:[#allocation2 + $0x71] sm:$0x1] %v929_v36  ;;  %v981_v37 = vpack.c.bf16 %v973_v9, %v972_v33  ;;  %v1228_v39 = vld [vmem:[#allocation2 + $0x62] sm:$0xff]  ;;  %v1006_v43 = vpack.c.bf16 %v929_v36, %v929_v36  ;;  %v982_v47 = vpack.c.bf16 %v974_v46, %v974_v46 }
 0x128   : > { %v865_v38 = vpop.f32.mrf.mxu2 }
 0x129   : > { %v913_v27 = vpop.f32.mrf.mxu3  ;;  %1206 = vmatmul.bf16.gmra.mxu1 %v981_v37 }
 0x12e   : > { %v1229_v40 = vld [vmem:[#allocation2 + $0x6a] sm:$0xff] }
 0x12f   : > { %v1237_v44 = vpack.c.bf16 %v1229_v40, %v1228_v39 }
 0x131   : > { %v1463_v45 = vpop.f32.mrf.mxu3  ;;  %1115 = vmatmul.bf16.gmra.mxu0 %v1006_v43  ;;  %1342 = vmatmul.bf16.gmra.mxu2 %v1237_v44 }
 0x132   : > { %v1464_v3 = vadd.f32 %v2552_v63, %v1463_v45 }
 0x139   : > { %v1465_v48 = vpop.f32.mrf.mxu3  ;;  %1211 = vmatmul.bf16.gmra.mxu1 %v982_v47 }
 0x13a   : > { %v1466_v11 = vadd.f32 %v2552_v63, %v1465_v48 }
 0x13e   : > { %v1081_v51 = vpop.f32.mrf.mxu0 }
 0x141   : > { %v1468_v52 = vpop.f32.mrf.mxu3  ;;  %1347 = vmatmul.bf16.gmra.mxu2 %v1238_v50 }
 0x142   : > { %v1469_v24 = vadd.f32 %v2552_v63, %v1468_v52 }
 0x146   : > { %v1083_v59 = vpop.f32.mrf.mxu0  ;;  %v1177_v53 = vpop.f32.mrf.mxu1 }
 0x147   : > { %v1178_v60 = vadd.f32 %v1177_v53, %v1081_v51 }
 0x149   : > { %v1470_v54 = vpop.f32.mrf.mxu3 }
 0x14a   : > { %v1471_v32 = vadd.f32 %v2552_v63, %v1470_v54 }
 0x14e   : > { %v1086_v55 = vpop.f32.mrf.mxu0  ;;  %v1179_v56 = vpop.f32.mrf.mxu1 }
 0x14f   : > { %v1180_v2 = vadd.f32 %v1179_v56, %v1083_v59 }
 0x151   : > { %v1473_v58 = vpop.f32.mrf.mxu3 }
 0x152   : > { %v1474_v46 = vadd.f32 %v2552_v63, %v1473_v58 }
 0x154   : > { %v1313_v41 = vpop.f32.mrf.mxu2 }
 0x155   : > { %v1352_v25 = vadd.f32 %v1313_v41, %v1178_v60 }
 0x156   : > { %v1088_v61 = vpop.f32.mrf.mxu0  ;;  %v1182_v62 = vpop.f32.mrf.mxu1 }
 0x157   : > { %v1371_v4 = vadd.f32 %v2557_v0, %v1352_v25  ;;  %v1183_v17 = vadd.f32 %v1182_v62, %v1086_v55 }
 0x159   : > { %v1475_v1 = vpop.f32.mrf.mxu3  ;;  %v1502_v10 = vadd.f32 %v1464_v3, %v1371_v4 }
 0x15a   : > { %v1476_v59 = vadd.f32 %v2552_v63, %v1475_v1 }
 0x15b   : > { %v1517_v14 = vmax.f32 %v1502_v10, 0.0 }
 0x15c   : > { %v1315_v5 = vpop.f32.mrf.mxu2 }
 0x15d   : > { %v1353_v6 = vadd.f32 %v1315_v5, %v1180_v2 }
 0x15e   : > { %v1091_v7 = vpop.f32.mrf.mxu0  ;;  %v1184_v8 = vpop.f32.mrf.mxu1 }
 0x15f   : > { %v1372_v13 = vadd.f32 %v2557_v0, %v1353_v6  ;;  %v1185_v23 = vadd.f32 %v1184_v8, %v1088_v61 }
 0x161   : > { %v1478_v57 = vpop.f32.mrf.mxu3  ;;  %v1503_v12 = vadd.f32 %v1466_v11, %v1372_v13 }
 0x162   : > { %v1479_v5 = vadd.f32 %v2552_v63, %v1478_v57 }
 0x163   : > { %v1518_v15 = vmax.f32 %v1503_v12, 0.0 }
 0x164   : > { %v1318_v16 = vpop.f32.mrf.mxu2 }
 0x165   : > { %v2126_v18 = vpack.c.bf16 %v1518_v15, %v1517_v14  ;;  %v1354_v21 = vadd.f32 %v1318_v16, %v1183_v17 }
 0x166   : > { %v1093_v19 = vpop.f32.mrf.mxu0  ;;  %v1187_v20 = vpop.f32.mrf.mxu1 }
 0x167   : > { %2127 = vst [vmem:[%s2567_s21] sm:$0xff] %v2126_v18   ;;  %v1373_v42 = vadd.f32 %v2557_v0, %v1354_v21  ;;  %v1188_v38 = vadd.f32 %v1187_v20, %v1091_v7 }
 0x169   : > { %v1480_v22 = vpop.f32.mrf.mxu3  ;;  %v1504_v31 = vadd.f32 %v1469_v24, %v1373_v42 }
 0x16a   : > { %v1481_v13 = vadd.f32 %v2552_v63, %v1480_v22 }
 0x16b   : > { %v1519_v33 = vmax.f32 %v1504_v31, 0.0 }
 0x16c   : > { %v1320_v26 = vpop.f32.mrf.mxu2 }
 0x16d   : > { %v1355_v28 = vadd.f32 %v1320_v26, %v1185_v23 }
 0x16e   : > { %v1096_v29 = vpop.f32.mrf.mxu0  ;;  %v1189_v30 = vpop.f32.mrf.mxu1 }
 0x16f   : > { %v1374_v34 = vadd.f32 %v2557_v0, %v1355_v28  ;;  %v1190_v45 = vadd.f32 %v1189_v30, %v1093_v19 }
 0x171   : > { %v1483_v35 = vpop.f32.mrf.mxu3  ;;  %v1505_v36 = vadd.f32 %v1471_v32, %v1374_v34 }
 0x172   : > { %v1484_v26 = vadd.f32 %v2552_v63, %v1483_v35 }
 0x173   : > { %v1520_v9 = vmax.f32 %v1505_v36, 0.0 }
 0x174   : > { %v1323_v37 = vpop.f32.mrf.mxu2 }
 0x175   : > { %v2131_v27 = vpack.c.bf16 %v1520_v9, %v1519_v33  ;;  %v1356_v43 = vadd.f32 %v1323_v37, %v1188_v38 }
 0x176   : > { %v1098_v39 = vpop.f32.mrf.mxu0  ;;  %v1192_v40 = vpop.f32.mrf.mxu1 }
 0x177   : > { %2158 = vst [vmem:[%s2567_s21 + $0x8] sm:$0xff] %v2131_v27   ;;  %v1375_v47 = vadd.f32 %v2557_v0, %v1356_v43  ;;  %v1193_v61 = vadd.f32 %v1192_v40, %v1096_v29 }
 0x179   : > { %v1485_v44 = vpop.f32.mrf.mxu3  ;;  %v1506_v52 = vadd.f32 %v1474_v46, %v1375_v47 }
 0x17a   : > { %v1486_v34 = vadd.f32 %v2552_v63, %v1485_v44 }
 0x17b   : > { %v1521_v56 = vmax.f32 %v1506_v52, 0.0 }
 0x17c   : > { %v1325_v48 = vpop.f32.mrf.mxu2 }
 0x17d   : > { %v1357_v49 = vadd.f32 %v1325_v48, %v1190_v45 }
 0x17e   : > { %v1101_v50 = vpop.f32.mrf.mxu0  ;;  %v1194_v51 = vpop.f32.mrf.mxu1 }
 0x17f   : > { %v1376_v53 = vadd.f32 %v2557_v0, %v1357_v49  ;;  %v1195_v4 = vadd.f32 %v1194_v51, %v1098_v39 }
 0x181   : > { %v1488_v54 = vpop.f32.mrf.mxu3  ;;  %v1507_v55 = vadd.f32 %v1476_v59, %v1376_v53 }
 0x182   : > { %v1489_v48 = vadd.f32 %v2552_v63, %v1488_v54 }
 0x183   : > { %v1522_v41 = vmax.f32 %v1507_v55, 0.0 }
 0x184   : > { %v1328_v60 = vpop.f32.mrf.mxu2 }
 0x185   : > { %v2136_v62 = vpack.c.bf16 %v1522_v41, %v1521_v56  ;;  %v1358_v2 = vadd.f32 %v1328_v60, %v1193_v61 }
 0x186   : > { %v1103_v58 = vpop.f32.mrf.mxu0  ;;  %v1197_v25 = vpop.f32.mrf.mxu1 }
 0x187   : > { %2159 = vst [vmem:[%s2567_s21 + $0x10] sm:$0xff] %v2136_v62   ;;  %v1377_v6 = vadd.f32 %v2557_v0, %v1358_v2  ;;  %v1198_v19 = vadd.f32 %v1197_v25, %v1101_v50 }
 0x189   : > { %v1490_v3 = vpop.f32.mrf.mxu3  ;;  %v1508_v11 = vadd.f32 %v1479_v5, %v1377_v6 }
 0x18a   : > { %v1491_v53 = vadd.f32 %v2552_v63, %v1490_v3 }
 0x18b   : > { %v1523_v16 = vmax.f32 %v1508_v11, 0.0 }
 0x18c   : > { %v1330_v1 = vpop.f32.mrf.mxu2 }
 0x18d   : > { %v1359_v7 = vadd.f32 %v1330_v1, %v1195_v4 }
 0x18e   : > { %v1106_v8 = vpop.f32.mrf.mxu0  ;;  %v1199_v10 = vpop.f32.mrf.mxu1 }
 0x18f   : > { %v1378_v12 = vadd.f32 %v2557_v0, %v1359_v7  ;;  %v1200_v42 = vadd.f32 %v1199_v10, %v1103_v58 }
 0x191   : > { %v1493_v14 = vpop.f32.mrf.mxu3  ;;  %v1509_v15 = vadd.f32 %v1481_v13, %v1378_v12 }
 0x192   : > { %v1494_v5 = vadd.f32 %v2552_v63, %v1493_v14 }
 0x193   : > { %v1524_v17 = vmax.f32 %v1509_v15, 0.0 }
 0x194   : > { %v1333_v18 = vpop.f32.mrf.mxu2 }
 0x195   : > { %v2141_v20 = vpack.c.bf16 %v1524_v17, %v1523_v16  ;;  %v1360_v23 = vadd.f32 %v1333_v18, %v1198_v19 }
 0x196   : > { %v1108_v57 = vpop.f32.mrf.mxu0  ;;  %v1202_v21 = vpop.f32.mrf.mxu1 }
 0x197   : > { %2160 = vst [vmem:[%s2567_s21 + $0x18] sm:$0xff] %v2141_v20   ;;  %v1379_v28 = vadd.f32 %v2557_v0, %v1360_v23  ;;  %v1203_v39 = vadd.f32 %v1202_v21, %v1106_v8  ;;  %v1564_v23 = vld [vmem:[%s2567_s21 + $0x38] sm:$0x1] }
 0x199   : > { %v1495_v24 = vpop.f32.mrf.mxu3  ;;  %v1510_v32 = vadd.f32 %v1484_v26, %v1379_v28 }
 0x19a   : > { %v1496_v10 = vadd.f32 %v2552_v63, %v1495_v24 }
 0x19b   : > { %v1525_v37 = vmax.f32 %v1510_v32, 0.0 }
 0x19c   : > { %v1335_v22 = vpop.f32.mrf.mxu2 }
 0x19d   : > { %v1361_v29 = vadd.f32 %v1335_v22, %v1200_v42 }
 0x19e   : > { %v1111_v30 = vpop.f32.mrf.mxu0  ;;  %v1204_v31 = vpop.f32.mrf.mxu1 }
 0x19f   : > { %v1380_v36 = vadd.f32 %v2557_v0, %v1361_v29  ;;  %v1205_v47 = vadd.f32 %v1204_v31, %v1108_v57 }
 0x1a1   : > { %v1498_v33 = vpop.f32.mrf.mxu3  ;;  %v1511_v9 = vadd.f32 %v1486_v34, %v1380_v36 }
 0x1a2   : > { %v1499_v14 = vadd.f32 %v2552_v63, %v1498_v33 }
 0x1a3   : > { %v1526_v38 = vmax.f32 %v1511_v9, 0.0 }
 0x1a4   : > { %v1338_v27 = vpop.f32.mrf.mxu2 }
 0x1a5   : > { %v2146_v40 = vpack.c.bf16 %v1526_v38, %v1525_v37  ;;  %v1362_v45 = vadd.f32 %v1338_v27, %v1203_v39 }
 0x1a6   : > { %v1113_v35 = vpop.f32.mrf.mxu0  ;;  %v1207_v43 = vpop.f32.mrf.mxu1 }
 0x1a7   : > { %2161 = vst [vmem:[%s2567_s21 + $0x20] sm:$0xff] %v2146_v40   ;;  %v1381_v49 = vadd.f32 %v2557_v0, %v1362_v45  ;;  %v1208_v62 = vadd.f32 %v1207_v43, %v1111_v30 }
 0x1a9   : > { %v1500_v46 = vpop.f32.mrf.mxu3  ;;  %v1512_v59 = vadd.f32 %v1489_v48, %v1381_v49 }
 0x1ab   : > { %v1527_v41 = vmax.f32 %v1512_v59, 0.0 }
 0x1ac   : > { %v1340_v44 = vpop.f32.mrf.mxu2 }
 0x1ad   : > { %v1363_v50 = vadd.f32 %v1340_v44, %v1205_v47 }
 0x1ae   : > { %v1116_v51 = vpop.f32.mrf.mxu0  ;;  %v1209_v52 = vpop.f32.mrf.mxu1 }
 0x1af   : > { %v1382_v55 = vadd.f32 %v2557_v0, %v1363_v50  ;;  %v1210_v4 = vadd.f32 %v1209_v52, %v1113_v35 }
 0x1b1   : > { %v1513_v56 = vadd.f32 %v1491_v53, %v1382_v55 }
 0x1b3   : > { %v1528_v60 = vmax.f32 %v1513_v56, 0.0 }
 0x1b4   : > { %v1343_v61 = vpop.f32.mrf.mxu2 }
 0x1b5   : > { %v2151_v58 = vpack.c.bf16 %v1528_v60, %v1527_v41  ;;  %v1364_v2 = vadd.f32 %v1343_v61, %v1208_v62 }
 0x1b6   : > { %v1118_v25 = vpop.f32.mrf.mxu0  ;;  %v1212_v54 = vpop.f32.mrf.mxu1 }
 0x1b7   : > { %2162 = vst [vmem:[%s2567_s21 + $0x28] sm:$0xff] %v2151_v58   ;;  %v1383_v6 = vadd.f32 %v2557_v0, %v1364_v2  ;;  %v1213_v15 = vadd.f32 %v1212_v54, %v1116_v51 }
 0x1b9   : > { %v1514_v8 = vadd.f32 %v1494_v5, %v1383_v6 }
 0x1bb   : > { %v1529_v12 = vmax.f32 %v1514_v8, 0.0 }
 0x1bc   : > { %v1345_v1 = vpop.f32.mrf.mxu2 }
 0x1bd   : > { %v1365_v3 = vadd.f32 %v1345_v1, %v1210_v4 }
 0x1be   : > { %v1214_v7 = vpop.f32.mrf.mxu1 }
 0x1bf   : > { %v1384_v11 = vadd.f32 %v2557_v0, %v1365_v3 }
 0x1c1   : > { %v1515_v13 = vadd.f32 %v1496_v10, %v1384_v11 }
 0x1c3   : > { %v1530_v16 = vmax.f32 %v1515_v13, 0.0 }
 0x1c4   : > { %v1348_v17 = vpop.f32.mrf.mxu2 }
 0x1c5   : > { %v2156_v18 = vpack.c.bf16 %v1530_v16, %v1529_v12  ;;  %v1366_v19 = vadd.f32 %v1348_v17, %v1213_v15 }
 0x1c7   : > { %2163 = vst [vmem:[%s2567_s21 + $0x30] sm:$0xff] %v2156_v18   ;;  %v1385_v20 = vadd.f32 %v2557_v0, %v1366_v19 }
 0x1c9   : > { %v1516_v57 = vadd.f32 %v1499_v14, %v1385_v20 }
 0x1cb   : > { %v1531_v21 = vmax.f32 %v1516_v57, 0.0 }
 0x1cc   : > { %v1350_v24 = vpop.f32.mrf.mxu2 }
 0x1cd   : > { %v1546_v42 = vpack.c.bf16 %v1531_v21, %v1531_v21 }
 0x1cf   : > { %v1565_v26 = vsel %vm1563_vm2, %v1546_v42, %v1564_v23 }
 0x1d0   : > { %1566 = vst [vmem:[%s2567_s21 + $0x38] sm:$0x1] %v1565_v26 }
 0x1d1 PF: > { %s17_s24 = sadd.s32 1, %s2184_s24  }
 0x1d2   : > { %p14_p4 = scmp.ge.s32.totalorder %s17_s24, 6  }
 0x1d4   :  { %16 = sbr.rel (!%p14_p4) target bundleno = 1 (0x1), region = 80 }

// kernel: resnet_a_forward.6
= control target key start
LH: loop header
LB: loop body
LE: loop exit
PB: predicated region body
PF: predicated region fallthrough
CT: control target
= control target key end

     0   :  { %s1586_s24 = smov 0   ;;  %s1838_s0 = inlined_call_operand.vmem [shape: bf16[4,29,512], index: 0, kind: input, shape index: {}]   ;;  %s1839_s1 = inlined_call_operand.vmem [shape: bf16[512,128], index: 1, kind: input, shape index: {}]   ;;  %s1840_s2 = inlined_call_operand.vmem [shape: bf16[3,128,128], index: 2, kind: input, shape index: {}]   ;;  %s1841_s3 = inlined_call_operand.vmem [shape: bf16[128,128], index: 3, kind: input, shape index: {}]   ;;  %s1842_s4 = inlined_call_operand.vmem [shape: f32[1,128], index: 4, kind: input, shape index: {}]   ;;  %s1843_s5 = inlined_call_operand.vmem [shape: f32[1,128], index: 5, kind: input, shape index: {}]   ;;  %s1844_s6 = inlined_call_operand.vmem [shape: f32[1,128], index: 6, kind: input, shape index: {}]   ;;  %s1845_s7 = inlined_call_operand.vmem [shape: bf16[4,29,128], index: 7, kind: output, shape index: {}]  }
   0x1 LB: > { %s1115_s25 = sadd.s32 4294967295, %s1543_s24   ;;  %p1119_p0 = scmp.ge.s32.totalorder %s1543_s24, 1  ;;  %s1543_s24 = sphi %s1586_s24, %s17_s24  }
   0x2   : > { %p237_p1 = scmp.lt.s32.totalorder %s1543_s24, 5 }
   0x4   : > { %p238_p2 = pnand %p1119_p0, %p237_p1 }
   0x5   : > { %p269_p3 = scmp.lt.s32.totalorder (!%p238_p2), %s1115_s25, 3 }
   0x6   : > { %241 = sbr.rel (%p238_p2) target bundleno = 377 (0x179), region = 48 }
   0xb   : > { %v1463_v0 = vld [vmem:[%s1839_s1 + $0x38] sm:$0xff]  ;;  %v1462_v4 = vld [vmem:[%s1839_s1 + $0x30] sm:$0xff]  ;;  %v1461_v8 = vld [vmem:[%s1839_s1 + $0x28] sm:$0xff]  ;;  %s1847_s25 = smov (!%p269_p3, %s1115_s25), 3  ;;  %vm1054_vm0 = vcmask 1042432  }
   0xc   : > { %v1471_v1 = vld [vmem:[%s1839_s1 + $0x78] sm:$0xff]  ;;  %587 = vmatpush.bf16.msra.mxu0 %v1463_v0  ;;  %v1470_v5 = vld [vmem:[%s1839_s1 + $0x70] sm:$0xff]  ;;  %v1469_v9 = vld [vmem:[%s1839_s1 + $0x68] sm:$0xff]  ;;  %s1446_s9 = sshll.u32 %s1847_s25, 6  ;;  %s1447_s15 = sshll.u32 %s1847_s25, 4 }
   0xd   : > { %v1479_v2 = vld [vmem:[%s1839_s1 + $0xb8] sm:$0xff]  ;;  %606 = vmatpush.bf16.msra.mxu1 %v1471_v1  ;;  %v1478_v6 = vld [vmem:[%s1839_s1 + $0xb0] sm:$0xff]  ;;  %v1477_v10 = vld [vmem:[%s1839_s1 + $0xa8] sm:$0xff]  ;;  %s1682_s16 = scalar_lea.vmem %s1838_s0, %s1446_s9  ;;  %s278_s18 = scalar_lea.vmem %s1845_s7, %s1447_s15  ;;  %vm1055_vm1 = vsmask.f32 2304 }
   0xe   : > { %v1487_v3 = vld [vmem:[%s1839_s1 + $0xf8] sm:$0xff]  ;;  %625 = vmatpush.bf16.msra.mxu2 %v1479_v2  ;;  %v1486_v7 = vld [vmem:[%s1839_s1 + $0xf0] sm:$0xff]  ;;  %v1485_v11 = vld [vmem:[%s1839_s1 + $0xe8] sm:$0xff] }
   0xf   : > { %644 = vmatpush.bf16.msra.mxu3 %v1487_v3  ;;  %v1460_v12 = vld [vmem:[%s1839_s1 + $0x20] sm:$0xff]  ;;  %v1459_v16 = vld [vmem:[%s1839_s1 + $0x18] sm:$0xff]  ;;  %v1458_v20 = vld [vmem:[%s1839_s1 + $0x10] sm:$0xff] }
  0x10   : > { %588 = vmatpush.bf16.msra.mxu0 %v1462_v4  ;;  %v1468_v13 = vld [vmem:[%s1839_s1 + $0x60] sm:$0xff]  ;;  %v1467_v17 = vld [vmem:[%s1839_s1 + $0x58] sm:$0xff]  ;;  %v1466_v21 = vld [vmem:[%s1839_s1 + $0x50] sm:$0xff] }
  0x11   : > { %607 = vmatpush.bf16.msra.mxu1 %v1470_v5  ;;  %v1476_v14 = vld [vmem:[%s1839_s1 + $0xa0] sm:$0xff]  ;;  %v1475_v18 = vld [vmem:[%s1839_s1 + $0x98] sm:$0xff]  ;;  %v1474_v22 = vld [vmem:[%s1839_s1 + $0x90] sm:$0xff] }
  0x12   : > { %626 = vmatpush.bf16.msra.mxu2 %v1478_v6  ;;  %v1484_v15 = vld [vmem:[%s1839_s1 + $0xe0] sm:$0xff]  ;;  %v1483_v19 = vld [vmem:[%s1839_s1 + $0xd8] sm:$0xff]  ;;  %v1482_v23 = vld [vmem:[%s1839_s1 + $0xd0] sm:$0xff] }
  0x13   : > { %645 = vmatpush.bf16.msra.mxu3 %v1486_v7  ;;  %v1457_v24 = vld [vmem:[%s1839_s1 + $0x8] sm:$0xff]  ;;  %v1456_v28 = vld [vmem:[%s1839_s1] sm:$0xff]  ;;  %v1450_v33 = vld [vmem:[%s1682_s16 + $0xc] sm:$0xf0]  ;;  %v1545_v7 = vmov 0.0  }
  0x14   : > { %589 = vmatpush.bf16.msra.mxu0 %v1461_v8  ;;  %v1465_v25 = vld [vmem:[%s1839_s1 + $0x48] sm:$0xff]  ;;  %v1464_v29 = vld [vmem:[%s1839_s1 + $0x40] sm:$0xff]  ;;  %v1128_v35 = vld [vmem:[%s1682_s16 + $0x10] sm:$0xf0]  ;;  %667 = vst [vmem:[#allocation2] sm:$0xff] %v1545_v7 }
  0x15   : > { %608 = vmatpush.bf16.msra.mxu1 %v1469_v9  ;;  %v1473_v26 = vld [vmem:[%s1839_s1 + $0x88] sm:$0xff]  ;;  %v1472_v30 = vld [vmem:[%s1839_s1 + $0x80] sm:$0xff]  ;;  %v1451_v37 = vld [vmem:[%s1682_s16 + $0x14] sm:$0xf0]  ;;  %668 = vst [vmem:[#allocation2 + $0x8] sm:$0xff] %v1545_v7 }
  0x16   : > { %627 = vmatpush.bf16.msra.mxu2 %v1477_v10  ;;  %v1481_v27 = vld [vmem:[%s1839_s1 + $0xc8] sm:$0xff]  ;;  %v1480_v31 = vld [vmem:[%s1839_s1 + $0xc0] sm:$0xff]  ;;  %v1136_v39 = vld [vmem:[%s1682_s16 + $0x18] sm:$0xf0]  ;;  %669 = vst [vmem:[#allocation2 + $0x10] sm:$0xff] %v1545_v7 }
  0x17   : > { %646 = vmatpush.bf16.msra.mxu3 %v1485_v11  ;;  %v1126_v32 = vld [vmem:[%s1682_s16] sm:$0xf]  ;;  %v1448_v34 = vld [vmem:[%s1682_s16 + $0x4] sm:$0xf]  ;;  %v1134_v36 = vld [vmem:[%s1682_s16 + $0x8] sm:$0xf] }
  0x18   : > { %590 = vmatpush.bf16.msra.mxu0 %v1460_v12  ;;  %v1449_v38 = vld [vmem:[%s1682_s16 + $0xc] sm:$0xf]  ;;  %v1503_v40 = vld [vmem:[%s1840_s2 + $0x78] sm:$0xff]  ;;  %v1127_v41 = vor.u32 %v1450_v33, %v1126_v32  ;;  %v1713_v42 = vor.u32 %v1448_v34, %v1128_v35  ;;  %v1135_v43 = vor.u32 %v1451_v37, %v1134_v36  ;;  %v1502_v45 = vld [vmem:[%s1840_s2 + $0x70] sm:$0xff]  ;;  %670 = vst [vmem:[#allocation2 + $0x18] sm:$0x7f] %v1545_v7 }
  0x19   : > { %609 = vmatpush.bf16.msra.mxu1 %v1468_v13  ;;  %v1139_v44 = vor.u32 %v1449_v38, %v1136_v39  ;;  %v1142_v46 = vld [vmem:[%s1682_s16 + $0x20] sm:$0xf]  ;;  %v1454_v47 = vld [vmem:[%s1682_s16 + $0x2c] sm:$0x70]  ;;  %v1452_v48 = vld [vmem:[%s1682_s16 + $0x24] sm:$0xf] }
  0x1a   : > { %628 = vmatpush.bf16.msra.mxu2 %v1476_v14  ;;  %v1144_v49 = vld [vmem:[%s1682_s16 + $0x30] sm:$0x70]  ;;  %v1150_v50 = vld [vmem:[%s1682_s16 + $0x28] sm:$0xf]  ;;  %v1455_v51 = vld [vmem:[%s1682_s16 + $0x34] sm:$0x70]  ;;  %v1143_v54 = vor.u32 %v1454_v47, %v1142_v46 }
  0x1b   : > { %647 = vmatpush.bf16.msra.mxu3 %v1484_v15  ;;  %v1453_v52 = vld [vmem:[%s1682_s16 + $0x2c] sm:$0xf]  ;;  %v1152_v53 = vld [vmem:[%s1682_s16 + $0x38] sm:$0x70]  ;;  %v1727_v55 = vor.u32 %v1452_v48, %v1144_v49  ;;  %v1151_v56 = vor.u32 %v1455_v51, %v1150_v50  ;;  %v1500_v61 = vld [vmem:[%s1840_s2 + $0x60] sm:$0xff] }
  0x1c   : > { %591 = vmatpush.bf16.msra.mxu0 %v1459_v16  ;;  %v1155_v57 = vor.u32 %v1453_v52, %v1152_v53  ;;  %v1501_v58 = vld [vmem:[%s1840_s2 + $0x68] sm:$0xff]  ;;  %v1495_v59 = vld [vmem:[%s1840_s2 + $0x38] sm:$0xff]  ;;  %v1494_v62 = vld [vmem:[%s1840_s2 + $0x30] sm:$0xff] }
  0x1d   : > { %610 = vmatpush.bf16.msra.mxu1 %v1467_v17  ;;  %v1519_v60 = vld [vmem:[%s1841_s3 + $0x38] sm:$0xff]  ;;  %v1518_v63 = vld [vmem:[%s1841_s3 + $0x30] sm:$0xff]  ;;  %v1493_v2 = vld [vmem:[%s1840_s2 + $0x28] sm:$0xff] }
  0x1e   : > { %629 = vmatpush.bf16.msra.mxu2 %v1475_v18  ;;  %v1511_v0 = vld [vmem:[%s1840_s2 + $0xb8] sm:$0xff]  ;;  %v1517_v3 = vld [vmem:[%s1841_s3 + $0x28] sm:$0xff]  ;;  %v1510_v4 = vld [vmem:[%s1840_s2 + $0xb0] sm:$0xff] }
  0x1f   : > { %648 = vmatpush.bf16.msra.mxu3 %v1483_v19  ;;  %v1499_v1 = vld [vmem:[%s1840_s2 + $0x58] sm:$0xff]  ;;  %v1498_v5 = vld [vmem:[%s1840_s2 + $0x50] sm:$0xff]  ;;  %v1492_v6 = vld [vmem:[%s1840_s2 + $0x20] sm:$0xff] }
  0x20   : > { %592 = vmatpush.bf16.msra.mxu0 %v1458_v20  ;;  %v1516_v8 = vld [vmem:[%s1841_s3 + $0x20] sm:$0xff]  ;;  %v1509_v9 = vld [vmem:[%s1840_s2 + $0xa8] sm:$0xff]  ;;  %v1491_v11 = vld [vmem:[%s1840_s2 + $0x18] sm:$0xff] }
  0x21   : > { %611 = vmatpush.bf16.msra.mxu1 %v1466_v21  ;;  %v1497_v10 = vld [vmem:[%s1840_s2 + $0x48] sm:$0xff]  ;;  %v1515_v12 = vld [vmem:[%s1841_s3 + $0x18] sm:$0xff]  ;;  %v1508_v13 = vld [vmem:[%s1840_s2 + $0xa0] sm:$0xff] }
  0x22   : > { %630 = vmatpush.bf16.msra.mxu2 %v1474_v22  ;;  %v1496_v14 = vld [vmem:[%s1840_s2 + $0x40] sm:$0xff]  ;;  %v1490_v15 = vld [vmem:[%s1840_s2 + $0x10] sm:$0xff]  ;;  %v1507_v17 = vld [vmem:[%s1840_s2 + $0x98] sm:$0xff] }
  0x23   : > { %649 = vmatpush.bf16.msra.mxu3 %v1482_v23  ;;  %v1514_v16 = vld [vmem:[%s1841_s3 + $0x10] sm:$0xff]  ;;  %v1489_v18 = vld [vmem:[%s1840_s2 + $0x8] sm:$0xff]  ;;  %v1488_v21 = vld [vmem:[%s1840_s2] sm:$0xff] }
  0x24   : > { %593 = vmatpush.bf16.msra.mxu0 %v1457_v24  ;;  %v1513_v19 = vld [vmem:[%s1841_s3 + $0x8] sm:$0xff]  ;;  %v1506_v20 = vld [vmem:[%s1840_s2 + $0x90] sm:$0xff]  ;;  %v1534_v22 = vld [vmem:[%s1842_s4] ss:$0 sm:$0xff] }
  0x25   : > { %612 = vmatpush.bf16.msra.mxu1 %v1465_v25  ;;  %v1512_v23 = vld [vmem:[%s1841_s3] sm:$0xff]  ;;  %v1505_v24 = vld [vmem:[%s1840_s2 + $0x88] sm:$0xff]  ;;  %vm1056_vm2 = vmand %vm1054_vm0, %vm1055_vm1 }
  0x26   : > { %631 = vmatpush.bf16.msra.mxu2 %v1473_v26 }
  0x27   : > { %650 = vmatpush.bf16.msra.mxu3 %v1481_v27 }
  0x28   : > { %594 = vmatpush.bf16.msra.mxu0 %v1456_v28  ;;  %v1504_v28 = vld [vmem:[%s1840_s2 + $0x80] sm:$0xff] }
  0x29   : > { %613 = vmatpush.bf16.msra.mxu1 %v1464_v29 }
  0x2a   : > { %632 = vmatpush.bf16.msra.mxu2 %v1472_v30 }
  0x2b   : > { %651 = vmatpush.bf16.msra.mxu3 %v1480_v31  ;;  %595 = vmatmul.bf16.vlgmr.msra.gmra.mxu0 %v1127_v41 }
  0x2c   : > { %764 = vmatpush.bf16.msrb.mxu0 %v1503_v40  ;;  %614 = vmatmul.bf16.vlgmr.msra.gmra.mxu1 %v1713_v42 }
  0x2d   : > { %633 = vmatmul.bf16.vlgmr.msra.gmra.mxu2 %v1135_v43  ;;  %831 = vmatpush.bf16.msrb.mxu1 %v1495_v59 }
  0x2e   : > { %652 = vmatmul.bf16.vlgmr.msra.gmra.mxu3 %v1139_v44  ;;  %921 = vmatpush.bf16.msrb.mxu2 %v1511_v0 }
  0x2f   : > { %1020 = vmatpush.bf16.msrb.mxu3 %v1519_v60 }
  0x30   : > { %765 = vmatpush.bf16.msrb.mxu0 %v1502_v45 }
  0x31   : > { %832 = vmatpush.bf16.msrb.mxu1 %v1494_v62 }
  0x32   : > { %922 = vmatpush.bf16.msrb.mxu2 %v1510_v4 }
  0x33   : > { %1021 = vmatpush.bf16.msrb.mxu3 %v1518_v63 }
  0x34   : > { %766 = vmatpush.bf16.msrb.mxu0 %v1501_v58 }
  0x35   : > { %833 = vmatpush.bf16.msrb.mxu1 %v1493_v2 }
  0x36   : > { %923 = vmatpush.bf16.msrb.mxu2 %v1509_v9 }
  0x37   : > { %1022 = vmatpush.bf16.msrb.mxu3 %v1517_v3 }
  0x38   : > { %767 = vmatpush.bf16.msrb.mxu0 %v1500_v61 }
  0x39   : > { %834 = vmatpush.bf16.msrb.mxu1 %v1492_v6 }
  0x3a   : > { %924 = vmatpush.bf16.msrb.mxu2 %v1508_v13 }
  0x3b   : > { %600 = vmatmul.bf16.gmra.mxu0 %v1143_v54  ;;  %1023 = vmatpush.bf16.msrb.mxu3 %v1516_v8 }
  0x3c   : > { %619 = vmatmul.bf16.gmra.mxu1 %v1727_v55  ;;  %768 = vmatpush.bf16.msrb.mxu0 %v1499_v1 }
  0x3d   : > { %638 = vmatmul.bf16.gmra.mxu2 %v1151_v56  ;;  %835 = vmatpush.bf16.msrb.mxu1 %v1491_v11 }
  0x3e   : > { %657 = vmatmul.bf16.gmra.mxu3 %v1155_v57  ;;  %925 = vmatpush.bf16.msrb.mxu2 %v1507_v17 }
  0x3f   : > { %1024 = vmatpush.bf16.msrb.mxu3 %v1515_v12 }
  0x40   : > { %769 = vmatpush.bf16.msrb.mxu0 %v1498_v5 }
  0x41   : > { %836 = vmatpush.bf16.msrb.mxu1 %v1490_v15 }
  0x42   : > { %926 = vmatpush.bf16.msrb.mxu2 %v1506_v20 }
  0x43   : > { %1025 = vmatpush.bf16.msrb.mxu3 %v1514_v16 }
  0x44   : > { %770 = vmatpush.bf16.msrb.mxu0 %v1497_v10 }
  0x45   : > { %837 = vmatpush.bf16.msrb.mxu1 %v1489_v18 }
  0x46   : > { %927 = vmatpush.bf16.msrb.mxu2 %v1505_v24 }
  0x47   : > { %1026 = vmatpush.bf16.msrb.mxu3 %v1513_v19  ;;  %v1535_v19 = vld [vmem:[%s1844_s6] ss:$0 sm:$0xff] }
  0x48   : > { %771 = vmatpush.bf16.msrb.mxu0 %v1496_v14 }
  0x49   : > { %838 = vmatpush.bf16.msrb.mxu1 %v1488_v21  ;;  %v1536_v21 = vld [vmem:[%s1843_s5] ss:$0 sm:$0xff] }
  0x4a   : > { %928 = vmatpush.bf16.msrb.mxu2 %v1504_v28 }
  0x4b   : > { %1027 = vmatpush.bf16.msrb.mxu3 %v1512_v23 }
  0x4e   : > { %1028 = vmatmul.bf16.vlgmr.msrb.gmra.mxu3 %v1713_v42 }
  0x5e   : > { %1033 = vmatmul.bf16.gmra.mxu3 %v1727_v55 }
  0xa8   : > { %v596_v25 = vpop.f32.mrf.mxu0 }
  0xa9   : > { %v615_v26 = vpop.f32.mrf.mxu1  ;;  %v597_v27 = vadd.f32 %v1534_v22, %v596_v25 }
  0xab   : > { %v616_v29 = vadd.f32 %v615_v26, %v597_v27 }
  0xb0   : > { %v634_v30 = vpop.f32.mrf.mxu2  ;;  %v598_v33 = vpop.f32.mrf.mxu0 }
  0xb1   : > { %v653_v31 = vpop.f32.mrf.mxu3  ;;  %v635_v32 = vadd.f32 %v634_v30, %v616_v29  ;;  %v617_v34 = vpop.f32.mrf.mxu1  ;;  %v599_v36 = vadd.f32 %v1534_v22, %v598_v33 }
  0xb3   : > { %v654_v35 = vadd.f32 %v653_v31, %v635_v32  ;;  %v618_v38 = vadd.f32 %v617_v34, %v599_v36 }
  0xb5   : > { %v663_v37 = vmax.f32 %v654_v35, 0.0 }
  0xb7   : > { %671 = vst [vmem:[#allocation2 + $0x1] sm:$0xff] %v663_v37 }
  0xb8   : > { %v636_v39 = vpop.f32.mrf.mxu2  ;;  %v601_v42 = vpop.f32.mrf.mxu0 }
  0xb9   : > { %v655_v40 = vpop.f32.mrf.mxu3  ;;  %v637_v41 = vadd.f32 %v636_v39, %v618_v38  ;;  %v602_v43 = vadd.f32 %v1534_v22, %v601_v42  ;;  %v620_v45 = vpop.f32.mrf.mxu1 }
  0xbb   : > { %v656_v44 = vadd.f32 %v655_v40, %v637_v41  ;;  %v621_v47 = vadd.f32 %v620_v45, %v602_v43 }
  0xbd   : > { %v664_v46 = vmax.f32 %v656_v44, 0.0 }
  0xbe   : > { %v675_v58 = vld [vmem:[#allocation2] sm:$0xff] }
  0xbf   : > { %672 = vst [vmem:[#allocation2 + $0x9] sm:$0xff] %v664_v46  ;;  %v697_v48 = vpack.c.bf16 %v664_v46, %v663_v37 }
  0xc0   : > { %v639_v49 = vpop.f32.mrf.mxu2  ;;  %v603_v52 = vpop.f32.mrf.mxu0 }
  0xc1   : > { %v658_v50 = vpop.f32.mrf.mxu3  ;;  %v640_v51 = vadd.f32 %v639_v49, %v621_v47  ;;  %772 = vmatmul.bf16.vlgmr.msrb.gmra.mxu0 %v697_v48  ;;  %v604_v54 = vadd.f32 %v1534_v22, %v603_v52  ;;  %v622_v57 = vpop.f32.mrf.mxu1 }
  0xc3   : > { %v659_v53 = vadd.f32 %v658_v50, %v640_v51  ;;  %v623_v60 = vadd.f32 %v622_v57, %v604_v54  ;;  %v1057_v57 = vld [vmem:[%s278_s18 + $0xc] sm:$0x7] }
  0xc5   : > { %v665_v56 = vmax.f32 %v659_v53, 0.0 }
  0xc6   : > { %v676_v59 = vld [vmem:[#allocation2 + $0x8] sm:$0xff] }
  0xc7   : > { %673 = vst [vmem:[#allocation2 + $0x11] sm:$0xff] %v665_v56  ;;  %v679_v61 = vpack.c.bf16 %v676_v59, %v675_v58  ;;  %v850_v2 = vld [vmem:[#allocation2 + $0x2] sm:$0xff] }
  0xc8   : > { %v641_v55 = vpop.f32.mrf.mxu2 }
  0xc9   : > { %v642_v62 = vadd.f32 %v641_v55, %v623_v60  ;;  %839 = vmatmul.bf16.vlgmr.msrb.gmra.mxu1 %v679_v61  ;;  %v660_v63 = vpop.f32.mrf.mxu3 }
  0xcb   : > { %v661_v0 = vadd.f32 %v660_v63, %v642_v62 }
  0xcd   : > { %v666_v1 = vmax.f32 %v661_v0, 0.0 }
  0xce   : > { %v851_v3 = vld [vmem:[#allocation2 + $0xa] sm:$0xff] }
  0xcf   : > { %674 = vst [vmem:[#allocation2 + $0x19] sm:$0x1f] %v666_v1  ;;  %v698_v4 = vpack.c.bf16 %v666_v1, %v665_v56  ;;  %v854_v5 = vpack.c.bf16 %v851_v3, %v850_v2  ;;  %v677_v6 = vld [vmem:[#allocation2 + $0x10] sm:$0xff] }
  0xd1   : > { %777 = vmatmul.bf16.gmra.mxu0 %v698_v4  ;;  %929 = vmatmul.bf16.vlgmr.msrb.gmra.mxu2 %v854_v5  ;;  %v1029_v14 = vpop.f32.mrf.mxu3 }
  0xd2   : > { %v1030_v24 = vadd.f32 %v1535_v19, %v1029_v14 }
  0xd6   : > { %v678_v7 = vld [vmem:[#allocation2 + $0x18] sm:$0x1f] }
  0xd7   : > { %v680_v8 = vpack.c.bf16 %v678_v7, %v677_v6  ;;  %v852_v9 = vld [vmem:[#allocation2 + $0x12] sm:$0xff]  ;;  %v853_v10 = vld [vmem:[#allocation2 + $0x1a] sm:$0x1f] }
  0xd8   : > { %v855_v11 = vpack.c.bf16 %v853_v10, %v852_v9 }
  0xd9   : > { %844 = vmatmul.bf16.gmra.mxu1 %v680_v8  ;;  %v1031_v22 = vpop.f32.mrf.mxu3 }
  0xda   : > { %v1032_v30 = vadd.f32 %v1535_v19, %v1031_v22 }
  0xe1   : > { %934 = vmatmul.bf16.gmra.mxu2 %v855_v11  ;;  %v1034_v34 = vpop.f32.mrf.mxu3 }
  0xe2   : > { %v1035_v40 = vadd.f32 %v1535_v19, %v1034_v34 }
  0xe9   : > { %v1036_v48 = vpop.f32.mrf.mxu3 }
  0xea   : > { %v1037_v52 = vadd.f32 %v1535_v19, %v1036_v48 }
 0x13e   : > { %v773_v13 = vpop.f32.mrf.mxu0 }
 0x146   : > { %v840_v12 = vpop.f32.mrf.mxu1  ;;  %v775_v18 = vpop.f32.mrf.mxu0 }
 0x147   : > { %v841_v17 = vadd.f32 %v840_v12, %v773_v13 }
 0x14e   : > { %v842_v15 = vpop.f32.mrf.mxu1  ;;  %v778_v32 = vpop.f32.mrf.mxu0 }
 0x14f   : > { %v843_v23 = vadd.f32 %v842_v15, %v775_v18 }
 0x154   : > { %v930_v16 = vpop.f32.mrf.mxu2 }
 0x155   : > { %v940_v20 = vadd.f32 %v930_v16, %v841_v17 }
 0x156   : > { %v845_v28 = vpop.f32.mrf.mxu1  ;;  %v780_v45 = vpop.f32.mrf.mxu0 }
 0x157   : > { %v948_v25 = vadd.f32 %v1536_v21, %v940_v20  ;;  %v846_v36 = vadd.f32 %v845_v28, %v778_v32 }
 0x159   : > { %v1039_v29 = vadd.f32 %v1030_v24, %v948_v25 }
 0x15b   : > { %v1043_v35 = vmax.f32 %v1039_v29, 0.0 }
 0x15c   : > { %v932_v26 = vpop.f32.mrf.mxu2 }
 0x15d   : > { %v941_v27 = vadd.f32 %v932_v26, %v843_v23 }
 0x15e   : > { %v847_v43 = vpop.f32.mrf.mxu1 }
 0x15f   : > { %v949_v31 = vadd.f32 %v1536_v21, %v941_v27  ;;  %v848_v46 = vadd.f32 %v847_v43, %v780_v45 }
 0x161   : > { %v1040_v33 = vadd.f32 %v1032_v30, %v949_v31 }
 0x163   : > { %v1044_v37 = vmax.f32 %v1040_v33, 0.0 }
 0x164   : > { %v935_v38 = vpop.f32.mrf.mxu2 }
 0x165   : > { %v1523_v39 = vpack.c.bf16 %v1044_v37, %v1043_v35  ;;  %v942_v41 = vadd.f32 %v935_v38, %v846_v36 }
 0x167   : > { %1524 = vst [vmem:[%s278_s18] sm:$0xff] %v1523_v39   ;;  %v950_v42 = vadd.f32 %v1536_v21, %v942_v41 }
 0x169   : > { %v1041_v44 = vadd.f32 %v1035_v40, %v950_v42 }
 0x16b   : > { %v1045_v47 = vmax.f32 %v1041_v44, 0.0 }
 0x16c   : > { %v937_v49 = vpop.f32.mrf.mxu2 }
 0x16d   : > { %v1049_v50 = vpack.c.bf16 %v1045_v47, %v1045_v47  ;;  %v943_v51 = vadd.f32 %v937_v49, %v848_v46 }
 0x16f   : > { %1053 = vst [vmem:[%s278_s18 + $0x8] sm:$0xf] %v1049_v50  ;;  %v951_v53 = vadd.f32 %v1536_v21, %v943_v51 }
 0x171   : > { %v1042_v54 = vadd.f32 %v1037_v52, %v951_v53 }
 0x173   : > { %v1046_v56 = vmax.f32 %v1042_v54, 0.0 }
 0x175   : > { %v1050_v58 = vpack.c.bf16 %v1046_v56, %v1046_v56 }
 0x177   : > { %v1058_v59 = vsel %vm1056_vm2, %v1050_v58, %v1057_v57 }
 0x178   : > { %1059 = vst [vmem:[%s278_s18 + $0xc] sm:$0x7] %v1058_v59 }
 0x179 PF: > { %s17_s24 = sadd.s32 1, %s1543_s24  }
 0x17a   : > { %p14_p4 = scmp.ge.s32.totalorder %s17_s24, 6  }
 0x17c   :  { %16 = sbr.rel (!%p14_p4) target bundleno = 1 (0x1), region = 80 }

// kernel: resnet_a_forward.7
= control target key start
LH: loop header
LB: loop body
LE: loop exit
PB: predicated region body
PF: predicated region fallthrough
CT: control target
= control target key end

     0   :  { %s2771_s24 = smov 0   ;;  %s3883_s0 = inlined_call_operand.vmem [shape: bf16[4,8,512], index: 0, kind: input, shape index: {}]   ;;  %s3884_s1 = inlined_call_operand.vmem [shape: bf16[512,256], index: 1, kind: input, shape index: {}]   ;;  %s3885_s2 = inlined_call_operand.vmem [shape: bf16[3,256,256], index: 2, kind: input, shape index: {}]   ;;  %s3886_s3 = inlined_call_operand.vmem [shape: bf16[128,256], index: 3, kind: input, shape index: {}]   ;;  %s3887_s4 = inlined_call_operand.vmem [shape: f32[1,256], index: 4, kind: input, shape index: {}]   ;;  %s3888_s5 = inlined_call_operand.vmem [shape: f32[1,256], index: 5, kind: input, shape index: {}]   ;;  %s3889_s6 = inlined_call_operand.vmem [shape: f32[1,256], index: 6, kind: input, shape index: {}]   ;;  %s3890_s7 = inlined_call_operand.vmem [shape: bf16[4,8,256], index: 7, kind: output, shape index: {}]  }
   0x1 LB: > { %s1756_s25 = sadd.s32 4294967295, %s2728_s24   ;;  %p1760_p0 = scmp.ge.s32.totalorder %s2728_s24, 1  ;;  %s2728_s24 = sphi %s2771_s24, %s17_s24  }
   0x2   : > { %p237_p1 = scmp.lt.s32.totalorder %s2728_s24, 5 }
   0x4   : > { %p238_p2 = pnand %p1760_p0, %p237_p1 }
   0x5   : > { %p269_p3 = scmp.lt.s32.totalorder (!%p238_p2), %s1756_s25, 3 }
   0x6   : > { %241 = sbr.rel (%p238_p2) target bundleno = 418 (0x1a2), region = 48 }
   0xb   : > { %v1823_v0 = vld [vmem:[%s3884_s1 + $0x70] sm:$0xf]  ;;  %v2552_v1 = vld [vmem:[%s3884_s1 + $0x74] sm:$0xf0]  ;;  %v1815_v11 = vld [vmem:[%s3884_s1 + $0x60] sm:$0xf] }
   0xc   : > { %v1887_v2 = vld [vmem:[%s3884_s1 + $0xf0] sm:$0xf]  ;;  %v1824_v3 = vor.u32 %v2552_v1, %v1823_v0  ;;  %v2568_v4 = vld [vmem:[%s3884_s1 + $0xf4] sm:$0xf0]  ;;  %v2550_v13 = vld [vmem:[%s3884_s1 + $0x64] sm:$0xf0] }
   0xd   : > { %v1951_v5 = vld [vmem:[%s3884_s1 + $0x170] sm:$0xf]  ;;  %v2584_v6 = vld [vmem:[%s3884_s1 + $0x174] sm:$0xf0]  ;;  %v1888_v7 = vor.u32 %v2568_v4, %v1887_v2  ;;  %v1879_v14 = vld [vmem:[%s3884_s1 + $0xe0] sm:$0xf]  ;;  %v1816_v16 = vor.u32 %v2550_v13, %v1815_v11 }
   0xe   : > { %v1952_v8 = vor.u32 %v2584_v6, %v1951_v5  ;;  %v2015_v9 = vld [vmem:[%s3884_s1 + $0x1f0] sm:$0xf]  ;;  %v2600_v10 = vld [vmem:[%s3884_s1 + $0x1f4] sm:$0xf0]  ;;  %685 = vmatpush.bf16.msra.mxu0 %v1824_v3  ;;  %v2566_v15 = vld [vmem:[%s3884_s1 + $0xe4] sm:$0xf0] }
   0xf   : > { %v2016_v12 = vor.u32 %v2600_v10, %v2015_v9  ;;  %698 = vmatpush.bf16.msra.mxu1 %v1888_v7  ;;  %v1880_v17 = vor.u32 %v2566_v15, %v1879_v14  ;;  %v1943_v18 = vld [vmem:[%s3884_s1 + $0x160] sm:$0xf]  ;;  %v2582_v19 = vld [vmem:[%s3884_s1 + $0x164] sm:$0xf0]  ;;  %v1807_v23 = vld [vmem:[%s3884_s1 + $0x50] sm:$0xf] }
  0x10   : > { %711 = vmatpush.bf16.msra.mxu2 %v1952_v8  ;;  %v2007_v20 = vld [vmem:[%s3884_s1 + $0x1e0] sm:$0xf]  ;;  %v1944_v21 = vor.u32 %v2582_v19, %v1943_v18  ;;  %v2598_v22 = vld [vmem:[%s3884_s1 + $0x1e4] sm:$0xf0]  ;;  %v2548_v24 = vld [vmem:[%s3884_s1 + $0x54] sm:$0xf0] }
  0x11   : > { %724 = vmatpush.bf16.msra.mxu3 %v2016_v12  ;;  %v2008_v25 = vor.u32 %v2598_v22, %v2007_v20  ;;  %v1871_v26 = vld [vmem:[%s3884_s1 + $0xd0] sm:$0xf]  ;;  %v2564_v27 = vld [vmem:[%s3884_s1 + $0xd4] sm:$0xf0]  ;;  %v1808_v29 = vor.u32 %v2548_v24, %v1807_v23  ;;  %v1799_v35 = vld [vmem:[%s3884_s1 + $0x40] sm:$0xf] }
  0x12   : > { %v1935_v28 = vld [vmem:[%s3884_s1 + $0x150] sm:$0xf]  ;;  %686 = vmatpush.bf16.msra.mxu0 %v1816_v16  ;;  %v2580_v30 = vld [vmem:[%s3884_s1 + $0x154] sm:$0xf0]  ;;  %v1872_v33 = vor.u32 %v2564_v27, %v1871_v26  ;;  %v2546_v36 = vld [vmem:[%s3884_s1 + $0x44] sm:$0xf0] }
  0x13   : > { %v1999_v31 = vld [vmem:[%s3884_s1 + $0x1d0] sm:$0xf]  ;;  %v2596_v32 = vld [vmem:[%s3884_s1 + $0x1d4] sm:$0xf0]  ;;  %699 = vmatpush.bf16.msra.mxu1 %v1880_v17  ;;  %v1936_v34 = vor.u32 %v2580_v30, %v1935_v28  ;;  %v1863_v37 = vld [vmem:[%s3884_s1 + $0xc0] sm:$0xf]  ;;  %v1800_v44 = vor.u32 %v2546_v36, %v1799_v35 }
  0x14   : > { %712 = vmatpush.bf16.msra.mxu2 %v1944_v21  ;;  %v2000_v38 = vor.u32 %v2596_v32, %v1999_v31  ;;  %v2562_v39 = vld [vmem:[%s3884_s1 + $0xc4] sm:$0xf0]  ;;  %v1927_v40 = vld [vmem:[%s3884_s1 + $0x140] sm:$0xf]  ;;  %v1791_v47 = vld [vmem:[%s3884_s1 + $0x30] sm:$0xf] }
  0x15   : > { %725 = vmatpush.bf16.msra.mxu3 %v2008_v25  ;;  %v2578_v41 = vld [vmem:[%s3884_s1 + $0x144] sm:$0xf0]  ;;  %v1991_v42 = vld [vmem:[%s3884_s1 + $0x1c0] sm:$0xf]  ;;  %v1864_v45 = vor.u32 %v2562_v39, %v1863_v37  ;;  %v2544_v48 = vld [vmem:[%s3884_s1 + $0x34] sm:$0xf0] }
  0x16   : > { %v2594_v43 = vld [vmem:[%s3884_s1 + $0x1c4] sm:$0xf0]  ;;  %687 = vmatpush.bf16.msra.mxu0 %v1808_v29  ;;  %v1928_v46 = vor.u32 %v2578_v41, %v1927_v40  ;;  %v1855_v49 = vld [vmem:[%s3884_s1 + $0xb0] sm:$0xf]  ;;  %v2560_v51 = vld [vmem:[%s3884_s1 + $0xb4] sm:$0xf0]  ;;  %v1792_v56 = vor.u32 %v2544_v48, %v1791_v47 }
  0x17   : > { %700 = vmatpush.bf16.msra.mxu1 %v1872_v33  ;;  %v1992_v50 = vor.u32 %v2594_v43, %v1991_v42  ;;  %v1919_v52 = vld [vmem:[%s3884_s1 + $0x130] sm:$0xf]  ;;  %v2576_v53 = vld [vmem:[%s3884_s1 + $0x134] sm:$0xf0]  ;;  %v1856_v57 = vor.u32 %v2560_v51, %v1855_v49  ;;  %v1783_v59 = vld [vmem:[%s3884_s1 + $0x20] sm:$0xf] }
  0x18   : > { %713 = vmatpush.bf16.msra.mxu2 %v1936_v34  ;;  %v1983_v54 = vld [vmem:[%s3884_s1 + $0x1b0] sm:$0xf]  ;;  %v2592_v55 = vld [vmem:[%s3884_s1 + $0x1b4] sm:$0xf0]  ;;  %v1920_v58 = vor.u32 %v2576_v53, %v1919_v52  ;;  %v2542_v60 = vld [vmem:[%s3884_s1 + $0x24] sm:$0xf0] }
  0x19   : > { %726 = vmatpush.bf16.msra.mxu3 %v2000_v38  ;;  %v1847_v61 = vld [vmem:[%s3884_s1 + $0xa0] sm:$0xf]  ;;  %v1984_v62 = vor.u32 %v2592_v55, %v1983_v54  ;;  %v2558_v63 = vld [vmem:[%s3884_s1 + $0xa4] sm:$0xf0]  ;;  %v1784_v4 = vor.u32 %v2542_v60, %v1783_v59  ;;  %v1775_v5 = vld [vmem:[%s3884_s1 + $0x10] sm:$0xf] }
  0x1a   : > { %688 = vmatpush.bf16.msra.mxu0 %v1800_v44  ;;  %v1911_v0 = vld [vmem:[%s3884_s1 + $0x120] sm:$0xf]  ;;  %v2574_v1 = vld [vmem:[%s3884_s1 + $0x124] sm:$0xf0]  ;;  %v1848_v6 = vor.u32 %v2558_v63, %v1847_v61  ;;  %v2540_v8 = vld [vmem:[%s3884_s1 + $0x14] sm:$0xf0] }
  0x1b   : > { %701 = vmatpush.bf16.msra.mxu1 %v1864_v45  ;;  %v1975_v2 = vld [vmem:[%s3884_s1 + $0x1a0] sm:$0xf]  ;;  %v2590_v3 = vld [vmem:[%s3884_s1 + $0x1a4] sm:$0xf0]  ;;  %v1912_v7 = vor.u32 %v2574_v1, %v1911_v0  ;;  %v1839_v9 = vld [vmem:[%s3884_s1 + $0x90] sm:$0xf]  ;;  %v1776_v18 = vor.u32 %v2540_v8, %v1775_v5 }
  0x1c   : > { %714 = vmatpush.bf16.msra.mxu2 %v1928_v46  ;;  %v2556_v10 = vld [vmem:[%s3884_s1 + $0x94] sm:$0xf0]  ;;  %v1976_v11 = vor.u32 %v2590_v3, %v1975_v2  ;;  %v1903_v12 = vld [vmem:[%s3884_s1 + $0x110] sm:$0xf]  ;;  %v1767_v16 = vld [vmem:[%s3884_s1] sm:$0xf] }
  0x1d   : > { %727 = vmatpush.bf16.msra.mxu3 %v1992_v50  ;;  %v2572_v13 = vld [vmem:[%s3884_s1 + $0x114] sm:$0xf0]  ;;  %v1967_v14 = vld [vmem:[%s3884_s1 + $0x190] sm:$0xf]  ;;  %v2538_v17 = vld [vmem:[%s3884_s1 + $0x4] sm:$0xf0]  ;;  %v1840_v23 = vor.u32 %v2556_v10, %v1839_v9 }
  0x1e   : > { %689 = vmatpush.bf16.msra.mxu0 %v1792_v56  ;;  %v2588_v15 = vld [vmem:[%s3884_s1 + $0x194] sm:$0xf0]  ;;  %v1831_v19 = vld [vmem:[%s3884_s1 + $0x80] sm:$0xf]  ;;  %v2554_v20 = vld [vmem:[%s3884_s1 + $0x84] sm:$0xf0]  ;;  %v1904_v24 = vor.u32 %v2572_v13, %v1903_v12  ;;  %v1768_v33 = vor.u32 %v2538_v17, %v1767_v16 }
  0x1f   : > { %702 = vmatpush.bf16.msra.mxu1 %v1856_v57  ;;  %v1895_v21 = vld [vmem:[%s3884_s1 + $0x100] sm:$0xf]  ;;  %v2570_v22 = vld [vmem:[%s3884_s1 + $0x104] sm:$0xf0]  ;;  %v1968_v27 = vor.u32 %v2588_v15, %v1967_v14  ;;  %v2551_v28 = vld [vmem:[%s3884_s1 + $0x74] sm:$0xf]  ;;  %v1832_v37 = vor.u32 %v2554_v20, %v1831_v19 }
  0x20   : > { %715 = vmatpush.bf16.msra.mxu2 %v1920_v58  ;;  %v1959_v25 = vld [vmem:[%s3884_s1 + $0x180] sm:$0xf]  ;;  %v2586_v26 = vld [vmem:[%s3884_s1 + $0x184] sm:$0xf0]  ;;  %v1825_v29 = vld [vmem:[%s3884_s1 + $0x78] sm:$0xf0]  ;;  %v1896_v38 = vor.u32 %v2570_v22, %v1895_v21 }
  0x21   : > { %728 = vmatpush.bf16.msra.mxu3 %v1984_v62  ;;  %v2567_v30 = vld [vmem:[%s3884_s1 + $0xf4] sm:$0xf]  ;;  %v1889_v31 = vld [vmem:[%s3884_s1 + $0xf8] sm:$0xf0]  ;;  %s3892_s25 = smov (!%p269_p3, %s1756_s25), 3  ;;  %v1960_v39 = vor.u32 %v2586_v26, %v1959_v25  ;;  %v1828_v40 = vor.u32 %v2551_v28, %v1825_v29 }
  0x22   : > { %690 = vmatpush.bf16.msra.mxu0 %v1784_v4  ;;  %v2583_v32 = vld [vmem:[%s3884_s1 + $0x174] sm:$0xf]  ;;  %v1953_v34 = vld [vmem:[%s3884_s1 + $0x178] sm:$0xf0]  ;;  %s2535_s21 = sshll.u32 %s3892_s25, 4  ;;  %v1892_v43 = vor.u32 %v2567_v30, %v1889_v31 }
  0x23   : > { %703 = vmatpush.bf16.msra.mxu1 %v1848_v6  ;;  %v2599_v35 = vld [vmem:[%s3884_s1 + $0x1f4] sm:$0xf]  ;;  %v2017_v36 = vld [vmem:[%s3884_s1 + $0x1f8] sm:$0xf0]  ;;  %s273_s26 = scalar_lea.vmem %s3883_s0, %s2535_s21  ;;  %v2549_v41 = vld [vmem:[%s3884_s1 + $0x64] sm:$0xf]  ;;  %v1956_v44 = vor.u32 %v2583_v32, %v1953_v34 }
  0x24   : > { %716 = vmatpush.bf16.msra.mxu2 %v1912_v7  ;;  %v1817_v42 = vld [vmem:[%s3884_s1 + $0x68] sm:$0xf0]  ;;  %v2020_v45 = vor.u32 %v2599_v35, %v2017_v36  ;;  %v279_v47 = vld [vmem:[%s273_s26] sm:$0xff]  ;;  %v2547_v1 = vld [vmem:[%s3884_s1 + $0x54] sm:$0xf] }
  0x25   : > { %729 = vmatpush.bf16.msra.mxu3 %v1976_v11  ;;  %v280_v46 = vld [vmem:[%s273_s26 + $0x8] sm:$0xff]  ;;  %v2565_v48 = vld [vmem:[%s3884_s1 + $0xe4] sm:$0xf]  ;;  %v353_v50 = vunpack.c.l.b16 %v279_v47  ;;  %v354_v51 = vunpack.c.h.b16 %v279_v47  ;;  %v1820_v56 = vor.u32 %v2549_v41, %v1817_v42  ;;  %v1809_v2 = vld [vmem:[%s3884_s1 + $0x58] sm:$0xf0]  ;;  %s2536_s26 = sshll.u32 %s3892_s25, 3 }
  0x26   : > { %691 = vmatpush.bf16.msra.mxu0 %v1776_v18  ;;  %v355_v49 = vunpack.c.l.b16 %v280_v46  ;;  %v356_v52 = vunpack.c.h.b16 %v280_v46  ;;  %v1881_v53 = vld [vmem:[%s3884_s1 + $0xe8] sm:$0xf0]  ;;  %v2581_v54 = vld [vmem:[%s3884_s1 + $0x164] sm:$0xf]  ;;  %v2563_v3 = vld [vmem:[%s3884_s1 + $0xd4] sm:$0xf]  ;;  %v1812_v10 = vor.u32 %v2547_v1, %v1809_v2  ;;  %s278_s29 = scalar_lea.vmem %s3890_s7, %s2536_s26 }
  0x27   : > { %704 = vmatpush.bf16.msra.mxu1 %v1840_v23  ;;  %v1945_v55 = vld [vmem:[%s3884_s1 + $0x168] sm:$0xf0]  ;;  %v2597_v57 = vld [vmem:[%s3884_s1 + $0x1e4] sm:$0xf]  ;;  %v3031_v60 = vpack.c.b16 %v353_v50, %v353_v50  ;;  %v3033_v61 = vpack.c.b16 %v354_v51, %v354_v51  ;;  %v1884_v63 = vor.u32 %v2565_v48, %v1881_v53  ;;  %v1873_v5 = vld [vmem:[%s3884_s1 + $0xd8] sm:$0xf0] }
  0x28   : > { %717 = vmatpush.bf16.msra.mxu2 %v1904_v24  ;;  %v2009_v58 = vld [vmem:[%s3884_s1 + $0x1e8] sm:$0xf0]  ;;  %v3029_v59 = vpack.c.b16 %v355_v49, %v355_v49  ;;  %v3035_v62 = vpack.c.b16 %v356_v52, %v356_v52  ;;  %v1948_v0 = vor.u32 %v2581_v54, %v1945_v55  ;;  %v2579_v6 = vld [vmem:[%s3884_s1 + $0x154] sm:$0xf]  ;;  %v1937_v7 = vld [vmem:[%s3884_s1 + $0x158] sm:$0xf0]  ;;  %v1876_v11 = vor.u32 %v2563_v3, %v1873_v5 }
  0x29   : > { %730 = vmatpush.bf16.msra.mxu3 %v1968_v27  ;;  %v2012_v4 = vor.u32 %v2597_v57, %v2009_v58  ;;  %v2595_v8 = vld [vmem:[%s3884_s1 + $0x1d4] sm:$0xf]  ;;  %v2001_v9 = vld [vmem:[%s3884_s1 + $0x1d8] sm:$0xf0]  ;;  %v1940_v12 = vor.u32 %v2579_v6, %v1937_v7  ;;  %v2545_v13 = vld [vmem:[%s3884_s1 + $0x44] sm:$0xf] }
  0x2a   : > { %692 = vmatpush.bf16.msra.mxu0 %v1768_v33  ;;  %v1801_v14 = vld [vmem:[%s3884_s1 + $0x48] sm:$0xf0]  ;;  %v2561_v15 = vld [vmem:[%s3884_s1 + $0xc4] sm:$0xf]  ;;  %v2004_v16 = vor.u32 %v2595_v8, %v2001_v9  ;;  %v2543_v25 = vld [vmem:[%s3884_s1 + $0x34] sm:$0xf] }
  0x2b   : > { %705 = vmatpush.bf16.msra.mxu1 %v1832_v37  ;;  %v1865_v17 = vld [vmem:[%s3884_s1 + $0xc8] sm:$0xf0]  ;;  %v2577_v18 = vld [vmem:[%s3884_s1 + $0x144] sm:$0xf]  ;;  %v1804_v22 = vor.u32 %v2545_v13, %v1801_v14  ;;  %v1793_v26 = vld [vmem:[%s3884_s1 + $0x38] sm:$0xf0] }
  0x2c   : > { %718 = vmatpush.bf16.msra.mxu2 %v1896_v38  ;;  %v1929_v19 = vld [vmem:[%s3884_s1 + $0x148] sm:$0xf0]  ;;  %v2593_v20 = vld [vmem:[%s3884_s1 + $0x1c4] sm:$0xf]  ;;  %v1868_v23 = vor.u32 %v2561_v15, %v1865_v17  ;;  %v2559_v27 = vld [vmem:[%s3884_s1 + $0xb4] sm:$0xf]  ;;  %v1796_v34 = vor.u32 %v2543_v25, %v1793_v26 }
  0x2d   : > { %731 = vmatpush.bf16.msra.mxu3 %v1960_v39  ;;  %693 = vmatmul.bf16.vlgmr.msra.gmra.mxu0 %v3031_v60  ;;  %v1993_v21 = vld [vmem:[%s3884_s1 + $0x1c8] sm:$0xf0]  ;;  %v1932_v24 = vor.u32 %v2577_v18, %v1929_v19  ;;  %v1857_v29 = vld [vmem:[%s3884_s1 + $0xb8] sm:$0xf0]  ;;  %v2575_v30 = vld [vmem:[%s3884_s1 + $0x134] sm:$0xf] }
  0x2e   : > { %737 = vmatpush.bf16.msrb.mxu0 %v1828_v40  ;;  %706 = vmatmul.bf16.vlgmr.msra.gmra.mxu1 %v3033_v61  ;;  %v1996_v28 = vor.u32 %v2593_v20, %v1993_v21  ;;  %v1921_v31 = vld [vmem:[%s3884_s1 + $0x138] sm:$0xf0]  ;;  %v2591_v32 = vld [vmem:[%s3884_s1 + $0x1b4] sm:$0xf]  ;;  %v1860_v35 = vor.u32 %v2559_v27, %v1857_v29  ;;  %v2541_v37 = vld [vmem:[%s3884_s1 + $0x24] sm:$0xf] }
  0x2f   : > { %750 = vmatpush.bf16.msrb.mxu1 %v1892_v43  ;;  %719 = vmatmul.bf16.vlgmr.msra.gmra.mxu2 %v3029_v59  ;;  %v1985_v33 = vld [vmem:[%s3884_s1 + $0x1b8] sm:$0xf0]  ;;  %v1924_v36 = vor.u32 %v2575_v30, %v1921_v31  ;;  %v1785_v38 = vld [vmem:[%s3884_s1 + $0x28] sm:$0xf0]  ;;  %v2557_v39 = vld [vmem:[%s3884_s1 + $0xa4] sm:$0xf] }
  0x30   : > { %763 = vmatpush.bf16.msrb.mxu2 %v1956_v44  ;;  %732 = vmatmul.bf16.vlgmr.msra.gmra.mxu3 %v3035_v62  ;;  %v1988_v40 = vor.u32 %v2591_v32, %v1985_v33  ;;  %v1849_v41 = vld [vmem:[%s3884_s1 + $0xa8] sm:$0xf0]  ;;  %v2573_v42 = vld [vmem:[%s3884_s1 + $0x124] sm:$0xf]  ;;  %v1788_v46 = vor.u32 %v2541_v37, %v1785_v38  ;;  %v2539_v49 = vld [vmem:[%s3884_s1 + $0x14] sm:$0xf] }
  0x31   : > { %776 = vmatpush.bf16.msrb.mxu3 %v2020_v45  ;;  %v1913_v43 = vld [vmem:[%s3884_s1 + $0x128] sm:$0xf0]  ;;  %v2589_v44 = vld [vmem:[%s3884_s1 + $0x1a4] sm:$0xf]  ;;  %v1852_v47 = vor.u32 %v2557_v39, %v1849_v41  ;;  %v1777_v50 = vld [vmem:[%s3884_s1 + $0x18] sm:$0xf0] }
  0x32   : > { %738 = vmatpush.bf16.msrb.mxu0 %v1820_v56  ;;  %v1977_v45 = vld [vmem:[%s3884_s1 + $0x1a8] sm:$0xf0]  ;;  %v1916_v48 = vor.u32 %v2573_v42, %v1913_v43  ;;  %v2555_v51 = vld [vmem:[%s3884_s1 + $0x94] sm:$0xf]  ;;  %v1841_v53 = vld [vmem:[%s3884_s1 + $0x98] sm:$0xf0]  ;;  %v1780_v58 = vor.u32 %v2539_v49, %v1777_v50 }
  0x33   : > { %751 = vmatpush.bf16.msrb.mxu1 %v1884_v63  ;;  %v1980_v52 = vor.u32 %v2589_v44, %v1977_v45  ;;  %v2571_v54 = vld [vmem:[%s3884_s1 + $0x114] sm:$0xf]  ;;  %v1905_v55 = vld [vmem:[%s3884_s1 + $0x118] sm:$0xf0]  ;;  %v2537_v63 = vld [vmem:[%s3884_s1 + $0x4] sm:$0xf] }
  0x34   : > { %764 = vmatpush.bf16.msrb.mxu2 %v1948_v0  ;;  %v2587_v56 = vld [vmem:[%s3884_s1 + $0x194] sm:$0xf]  ;;  %v1969_v57 = vld [vmem:[%s3884_s1 + $0x198] sm:$0xf0]  ;;  %v1844_v0 = vor.u32 %v2555_v51, %v1841_v53  ;;  %v1908_v1 = vor.u32 %v2571_v54, %v1905_v55  ;;  %v1769_v2 = vld [vmem:[%s3884_s1 + $0x8] sm:$0xf0] }
  0x35   : > { %777 = vmatpush.bf16.msrb.mxu3 %v2012_v4  ;;  %v2553_v3 = vld [vmem:[%s3884_s1 + $0x84] sm:$0xf]  ;;  %v1833_v4 = vld [vmem:[%s3884_s1 + $0x88] sm:$0xf0]  ;;  %v1972_v5 = vor.u32 %v2587_v56, %v1969_v57  ;;  %v2647_v13 = vld [vmem:[%s3885_s2 + $0x174] sm:$0xf] }
  0x36   : > { %739 = vmatpush.bf16.msrb.mxu0 %v1812_v10  ;;  %v2569_v6 = vld [vmem:[%s3884_s1 + $0x104] sm:$0xf]  ;;  %v1897_v7 = vld [vmem:[%s3884_s1 + $0x108] sm:$0xf0]  ;;  %v2111_v10 = vld [vmem:[%s3885_s2 + $0x170] sm:$0xf]  ;;  %v1836_v15 = vor.u32 %v2553_v3, %v1833_v4 }
  0x37   : > { %752 = vmatpush.bf16.msrb.mxu1 %v1876_v11  ;;  %v2585_v8 = vld [vmem:[%s3884_s1 + $0x184] sm:$0xf]  ;;  %v1961_v9 = vld [vmem:[%s3884_s1 + $0x188] sm:$0xf0]  ;;  %v2648_v11 = vld [vmem:[%s3885_s2 + $0x174] sm:$0xf0] }
  0x38   : > { %765 = vmatpush.bf16.msrb.mxu2 %v1940_v12  ;;  %v1772_v12 = vor.u32 %v2537_v63, %v1769_v2  ;;  %v2113_v14 = vld [vmem:[%s3885_s2 + $0x178] sm:$0xf0]  ;;  %v1964_v17 = vor.u32 %v2585_v8, %v1961_v9  ;;  %v2112_v18 = vor.u32 %v2648_v11, %v2111_v10  ;;  %v2103_v19 = vld [vmem:[%s3885_s2 + $0x160] sm:$0xf]  ;;  %v2175_v20 = vld [vmem:[%s3885_s2 + $0x1f0] sm:$0xf] }
  0x39   : > { %778 = vmatpush.bf16.msrb.mxu3 %v2004_v16  ;;  %v1900_v16 = vor.u32 %v2569_v6, %v1897_v7  ;;  %v2664_v21 = vld [vmem:[%s3885_s2 + $0x1f4] sm:$0xf0]  ;;  %v2177_v25 = vld [vmem:[%s3885_s2 + $0x1f8] sm:$0xf0]  ;;  %v2645_v26 = vld [vmem:[%s3885_s2 + $0x164] sm:$0xf] }
  0x3a   : > { %740 = vmatpush.bf16.msrb.mxu0 %v1804_v22  ;;  %v2116_v22 = vor.u32 %v2647_v13, %v2113_v14  ;;  %v2105_v27 = vld [vmem:[%s3885_s2 + $0x168] sm:$0xf0]  ;;  %v2095_v30 = vld [vmem:[%s3885_s2 + $0x150] sm:$0xf]  ;;  %v2167_v32 = vld [vmem:[%s3885_s2 + $0x1e0] sm:$0xf] }
  0x3b   : > { %753 = vmatpush.bf16.msrb.mxu1 %v1868_v23  ;;  %v2646_v23 = vld [vmem:[%s3885_s2 + $0x164] sm:$0xf0]  ;;  %v2169_v37 = vld [vmem:[%s3885_s2 + $0x1e8] sm:$0xf0]  ;;  %v2097_v38 = vld [vmem:[%s3885_s2 + $0x158] sm:$0xf0] }
  0x3c   : > { %766 = vmatpush.bf16.msrb.mxu2 %v1932_v24  ;;  %v2663_v24 = vld [vmem:[%s3885_s2 + $0x1f4] sm:$0xf]  ;;  %v2104_v29 = vor.u32 %v2646_v23, %v2103_v19  ;;  %v2662_v33 = vld [vmem:[%s3885_s2 + $0x1e4] sm:$0xf0]  ;;  %v2087_v41 = vld [vmem:[%s3885_s2 + $0x140] sm:$0xf] }
  0x3d   : > { %779 = vmatpush.bf16.msrb.mxu3 %v1996_v28  ;;  %v2176_v28 = vor.u32 %v2664_v21, %v2175_v20  ;;  %v2180_v31 = vor.u32 %v2663_v24, %v2177_v25  ;;  %v2168_v39 = vor.u32 %v2662_v33, %v2167_v32  ;;  %v2159_v42 = vld [vmem:[%s3885_s2 + $0x1d0] sm:$0xf]  ;;  %v2660_v43 = vld [vmem:[%s3885_s2 + $0x1d4] sm:$0xf0]  ;;  %v2642_v44 = vld [vmem:[%s3885_s2 + $0x144] sm:$0xf0] }
  0x3e   : > { %741 = vmatpush.bf16.msrb.mxu0 %v1796_v34  ;;  %v2108_v34 = vor.u32 %v2645_v26, %v2105_v27  ;;  %v2659_v45 = vld [vmem:[%s3885_s2 + $0x1d4] sm:$0xf]  ;;  %v2160_v49 = vor.u32 %v2660_v43, %v2159_v42  ;;  %v2088_v50 = vor.u32 %v2642_v44, %v2087_v41  ;;  %v2079_v51 = vld [vmem:[%s3885_s2 + $0x130] sm:$0xf]  ;;  %v2151_v53 = vld [vmem:[%s3885_s2 + $0x1c0] sm:$0xf] }
  0x3f   : > { %754 = vmatpush.bf16.msrb.mxu1 %v1860_v35  ;;  %v2644_v35 = vld [vmem:[%s3885_s2 + $0x154] sm:$0xf0]  ;;  %v2658_v54 = vld [vmem:[%s3885_s2 + $0x1c4] sm:$0xf0]  ;;  %v2657_v57 = vld [vmem:[%s3885_s2 + $0x1c4] sm:$0xf] }
  0x40   : > { %767 = vmatpush.bf16.msrb.mxu2 %v1924_v36  ;;  %v2661_v36 = vld [vmem:[%s3885_s2 + $0x1e4] sm:$0xf]  ;;  %v2640_v56 = vld [vmem:[%s3885_s2 + $0x134] sm:$0xf0]  ;;  %v2639_v63 = vld [vmem:[%s3885_s2 + $0x134] sm:$0xf] }
  0x41   : > { %780 = vmatpush.bf16.msrb.mxu3 %v1988_v40  ;;  %v2096_v40 = vor.u32 %v2644_v35, %v2095_v30  ;;  %v2080_v2 = vor.u32 %v2640_v56, %v2079_v51  ;;  %v2638_v6 = vld [vmem:[%s3885_s2 + $0x124] sm:$0xf0]  ;;  %v2637_v7 = vld [vmem:[%s3885_s2 + $0x124] sm:$0xf]  ;;  %v2073_v8 = vld [vmem:[%s3885_s2 + $0x128] sm:$0xf0] }
  0x42   : > { %742 = vmatpush.bf16.msrb.mxu0 %v1788_v46  ;;  %v2161_v46 = vld [vmem:[%s3885_s2 + $0x1d8] sm:$0xf0]  ;;  %v2076_v10 = vor.u32 %v2637_v7, %v2073_v8  ;;  %v2063_v11 = vld [vmem:[%s3885_s2 + $0x110] sm:$0xf]  ;;  %v2635_v13 = vld [vmem:[%s3885_s2 + $0x114] sm:$0xf] }
  0x43   : > { %755 = vmatpush.bf16.msrb.mxu1 %v1852_v47  ;;  %v2641_v47 = vld [vmem:[%s3885_s2 + $0x144] sm:$0xf]  ;;  %v2065_v14 = vld [vmem:[%s3885_s2 + $0x118] sm:$0xf0]  ;;  %v2057_v20 = vld [vmem:[%s3885_s2 + $0x108] sm:$0xf0] }
  0x44   : > { %768 = vmatpush.bf16.msrb.mxu2 %v1916_v48  ;;  %v2089_v48 = vld [vmem:[%s3885_s2 + $0x148] sm:$0xf0]  ;;  %v2633_v19 = vld [vmem:[%s3885_s2 + $0x104] sm:$0xf]  ;;  %v2239_v21 = vld [vmem:[%s3885_s2 + $0x70] sm:$0xf] }
  0x45   : > { %781 = vmatpush.bf16.msrb.mxu3 %v1980_v52  ;;  %v2164_v52 = vor.u32 %v2659_v45, %v2161_v46  ;;  %v2092_v55 = vor.u32 %v2641_v47, %v2089_v48  ;;  %v2615_v23 = vld [vmem:[%s3885_s2 + $0x74] sm:$0xf]  ;;  %v2241_v24 = vld [vmem:[%s3885_s2 + $0x78] sm:$0xf0]  ;;  %v2060_v26 = vor.u32 %v2633_v19, %v2057_v20  ;;  %v2614_v30 = vld [vmem:[%s3885_s2 + $0x64] sm:$0xf0] }
  0x46   : > { %743 = vmatpush.bf16.msrb.mxu0 %v1780_v58  ;;  %v2153_v58 = vld [vmem:[%s3885_s2 + $0x1c8] sm:$0xf0]  ;;  %v2223_v35 = vld [vmem:[%s3885_s2 + $0x50] sm:$0xf]  ;;  %v2610_v41 = vld [vmem:[%s3885_s2 + $0x44] sm:$0xf0] }
  0x47   : > { %756 = vmatpush.bf16.msrb.mxu1 %v1844_v0  ;;  %v2081_v0 = vld [vmem:[%s3885_s2 + $0x138] sm:$0xf0]  ;;  %v2156_v3 = vor.u32 %v2657_v57, %v2153_v58  ;;  %v2233_v32 = vld [vmem:[%s3885_s2 + $0x68] sm:$0xf0]  ;;  %v2143_v44 = vld [vmem:[%s3885_s2 + $0x1b0] sm:$0xf] }
  0x48   : > { %769 = vmatpush.bf16.msrb.mxu2 %v1908_v1  ;;  %v2152_v1 = vor.u32 %v2658_v54, %v2151_v53  ;;  %v2084_v4 = vor.u32 %v2639_v63, %v2081_v0  ;;  %v2217_v42 = vld [vmem:[%s3885_s2 + $0x48] sm:$0xf0]  ;;  %v2656_v45 = vld [vmem:[%s3885_s2 + $0x1b4] sm:$0xf0]  ;;  %v2655_v47 = vld [vmem:[%s3885_s2 + $0x1b4] sm:$0xf] }
  0x49   : > { %782 = vmatpush.bf16.msrb.mxu3 %v1972_v5  ;;  %v2071_v5 = vld [vmem:[%s3885_s2 + $0x120] sm:$0xf]  ;;  %v2144_v46 = vor.u32 %v2656_v45, %v2143_v44  ;;  %v2145_v48 = vld [vmem:[%s3885_s2 + $0x1b8] sm:$0xf0]  ;;  %v2608_v51 = vld [vmem:[%s3885_s2 + $0x34] sm:$0xf0] }
  0x4a   : > { %744 = vmatpush.bf16.msrb.mxu0 %v1772_v12  ;;  %v2072_v9 = vor.u32 %v2638_v6, %v2071_v5  ;;  %v2636_v12 = vld [vmem:[%s3885_s2 + $0x114] sm:$0xf0]  ;;  %v2209_v53 = vld [vmem:[%s3885_s2 + $0x38] sm:$0xf0]  ;;  %v2135_v56 = vld [vmem:[%s3885_s2 + $0x1a0] sm:$0xf] }
  0x4b   : > { %757 = vmatpush.bf16.msrb.mxu1 %v1836_v15  ;;  %v2064_v15 = vor.u32 %v2636_v12, %v2063_v11  ;;  %v2654_v57 = vld [vmem:[%s3885_s2 + $0x1a4] sm:$0xf0]  ;;  %v2653_v63 = vld [vmem:[%s3885_s2 + $0x1a4] sm:$0xf]  ;;  %v2137_v0 = vld [vmem:[%s3885_s2 + $0x1a8] sm:$0xf0] }
  0x4c   : > { %770 = vmatpush.bf16.msrb.mxu2 %v1900_v16  ;;  %v2068_v16 = vor.u32 %v2635_v13, %v2065_v14  ;;  %v2136_v58 = vor.u32 %v2654_v57, %v2135_v56  ;;  %v2201_v5 = vld [vmem:[%s3885_s2 + $0x28] sm:$0xf0]  ;;  %v2127_v8 = vld [vmem:[%s3885_s2 + $0x190] sm:$0xf]  ;;  %v2651_v11 = vld [vmem:[%s3885_s2 + $0x194] sm:$0xf] }
  0x4d   : > { %783 = vmatpush.bf16.msrb.mxu3 %v1964_v17  ;;  %745 = vmatmul.bf16.vlgmr.msrb.gmra.mxu0 %v3031_v60  ;;  %v2643_v60 = vld [vmem:[%s3885_s2 + $0x154] sm:$0xf]  ;;  %v2055_v17 = vld [vmem:[%s3885_s2 + $0x100] sm:$0xf]  ;;  %v2129_v12 = vld [vmem:[%s3885_s2 + $0x198] sm:$0xf0] }
  0x4e   : > { %1036 = vmatpush.bf16.msra.mxu0 %v2112_v18  ;;  %758 = vmatmul.bf16.vlgmr.msrb.gmra.mxu1 %v3033_v61  ;;  %v2634_v18 = vld [vmem:[%s3885_s2 + $0x104] sm:$0xf0]  ;;  %v2191_v13 = vld [vmem:[%s3885_s2 + $0x10] sm:$0xf]  ;;  %v2132_v14 = vor.u32 %v2651_v11, %v2129_v12  ;;  %v2193_v19 = vld [vmem:[%s3885_s2 + $0x18] sm:$0xf0] }
  0x4f   : > { %771 = vmatmul.bf16.vlgmr.msrb.gmra.mxu2 %v3029_v59  ;;  %1049 = vmatpush.bf16.msra.mxu1 %v2176_v28  ;;  %v2172_v59 = vor.u32 %v2661_v36, %v2169_v37  ;;  %v2056_v25 = vor.u32 %v2634_v18, %v2055_v17  ;;  %v2244_v28 = vor.u32 %v2615_v23, %v2241_v24  ;;  %v2612_v36 = vld [vmem:[%s3885_s2 + $0x54] sm:$0xf0]  ;;  %v2611_v37 = vld [vmem:[%s3885_s2 + $0x54] sm:$0xf]  ;;  %v2730_v17 = vmov 0.0  }
  0x50   : > { %1062 = vmatpush.bf16.msra.mxu2 %v2116_v22  ;;  %784 = vmatmul.bf16.vlgmr.msrb.gmra.mxu3 %v3035_v62  ;;  %v2100_v62 = vor.u32 %v2643_v60, %v2097_v38  ;;  %v2616_v22 = vld [vmem:[%s3885_s2 + $0x74] sm:$0xf0]  ;;  %v2225_v60 = vld [vmem:[%s3885_s2 + $0x58] sm:$0xf0]  ;;  %v2224_v38 = vor.u32 %v2612_v36, %v2223_v35  ;;  %791 = vst [vmem:[#allocation2 + $0x10] sm:$0xff] %v2730_v17 }
  0x51   : > { %1075 = vmatpush.bf16.msra.mxu3 %v2180_v31  ;;  %v2240_v27 = vor.u32 %v2616_v22, %v2239_v21  ;;  %v2613_v31 = vld [vmem:[%s3885_s2 + $0x64] sm:$0xf]  ;;  %793 = vst [vmem:[#allocation2 + $0x18] sm:$0x3] %v2730_v17  ;;  %v2119_v21 = vld [vmem:[%s3885_s2 + $0x180] sm:$0xf] }
  0x52   : > { %1037 = vmatpush.bf16.msra.mxu0 %v2104_v29  ;;  %v2231_v29 = vld [vmem:[%s3885_s2 + $0x60] sm:$0xf]  ;;  %v2650_v22 = vld [vmem:[%s3885_s2 + $0x184] sm:$0xf0]  ;;  %792 = vst [vmem:[#allocation2] sm:$0xff] %v2730_v17 }
  0x53   : > { %1050 = vmatpush.bf16.msra.mxu1 %v2168_v39  ;;  %v2232_v33 = vor.u32 %v2614_v30, %v2231_v29  ;;  %v2228_v39 = vor.u32 %v2611_v37, %v2225_v60  ;;  %v2120_v23 = vor.u32 %v2650_v22, %v2119_v21  ;;  %v2649_v24 = vld [vmem:[%s3885_s2 + $0x184] sm:$0xf]  ;;  %794 = vst [vmem:[#allocation2 + $0x8] sm:$0x3] %v2730_v17  ;;  %v2303_v30 = vld [vmem:[%s3885_s2 + $0xf0] sm:$0xf] }
  0x54   : > { %1063 = vmatpush.bf16.msra.mxu2 %v2108_v34  ;;  %v2236_v34 = vor.u32 %v2613_v31, %v2233_v32  ;;  %v2632_v31 = vld [vmem:[%s3885_s2 + $0xf4] sm:$0xf0]  ;;  %v2601_v32 = vld [vmem:[%s3885_s2 + $0x4] sm:$0xf]  ;;  %v2631_v35 = vld [vmem:[%s3885_s2 + $0xf4] sm:$0xf] }
  0x55   : > { %1076 = vmatpush.bf16.msra.mxu3 %v2172_v59  ;;  %v2609_v59 = vld [vmem:[%s3885_s2 + $0x44] sm:$0xf]  ;;  %v2305_v36 = vld [vmem:[%s3885_s2 + $0xf8] sm:$0xf0]  ;;  %v2627_v44 = vld [vmem:[%s3885_s2 + $0xd4] sm:$0xf] }
  0x56   : > { %1038 = vmatpush.bf16.msra.mxu0 %v2096_v40  ;;  %v2215_v40 = vld [vmem:[%s3885_s2 + $0x40] sm:$0xf]  ;;  %v2308_v60 = vor.u32 %v2631_v35, %v2305_v36  ;;  %v2271_v56 = vld [vmem:[%s3885_s2 + $0xb0] sm:$0xf]  ;;  %v2624_v57 = vld [vmem:[%s3885_s2 + $0xb4] sm:$0xf0] }
  0x57   : > { %1051 = vmatpush.bf16.msra.mxu1 %v2160_v49  ;;  %v2216_v43 = vor.u32 %v2610_v41, %v2215_v40  ;;  %v2207_v49 = vld [vmem:[%s3885_s2 + $0x30] sm:$0xf]  ;;  %v2629_v41 = vld [vmem:[%s3885_s2 + $0xe4] sm:$0xf]  ;;  %v2391_v35 = vld [vmem:[%s3885_s2 + $0x260] sm:$0xf] }
  0x58   : > { %1064 = vmatpush.bf16.msra.mxu2 %v2100_v62  ;;  %v2220_v62 = vor.u32 %v2609_v59, %v2217_v42  ;;  %v2208_v54 = vor.u32 %v2608_v51, %v2207_v49  ;;  %v2297_v59 = vld [vmem:[%s3885_s2 + $0xe8] sm:$0xf0]  ;;  %v2626_v49 = vld [vmem:[%s3885_s2 + $0xc4] sm:$0xf0] }
  0x59   : > { %1077 = vmatpush.bf16.msra.mxu3 %v2164_v52  ;;  %v2607_v52 = vld [vmem:[%s3885_s2 + $0x34] sm:$0xf]  ;;  %v2300_v42 = vor.u32 %v2629_v41, %v2297_v59  ;;  %v2281_v51 = vld [vmem:[%s3885_s2 + $0xc8] sm:$0xf0]  ;;  %v2678_v36 = vld [vmem:[%s3885_s2 + $0x264] sm:$0xf0] }
  0x5a   : > { %1039 = vmatpush.bf16.msra.mxu0 %v2088_v50  ;;  %v2148_v50 = vor.u32 %v2655_v47, %v2145_v48  ;;  %v2279_v48 = vld [vmem:[%s3885_s2 + $0xc0] sm:$0xf] }
  0x5b   : > { %1052 = vmatpush.bf16.msra.mxu1 %v2152_v1  ;;  %v2199_v1 = vld [vmem:[%s3885_s2 + $0x20] sm:$0xf] }
  0x5c   : > { %1065 = vmatpush.bf16.msra.mxu2 %v2092_v55  ;;  %v2212_v55 = vor.u32 %v2607_v52, %v2209_v53  ;;  %v3528_v52 = vld [vmem:[%s3887_s4] sm:$0x3]  ;;  %v2280_v53 = vor.u32 %v2626_v49, %v2279_v48 }
  0x5d   : > { %1078 = vmatpush.bf16.msra.mxu3 %v2156_v3  ;;  %v2606_v3 = vld [vmem:[%s3885_s2 + $0x24] sm:$0xf0] }
  0x5e   : > { %1040 = vmatpush.bf16.msra.mxu0 %v2080_v2  ;;  %v2140_v2 = vor.u32 %v2653_v63, %v2137_v0  ;;  %v2200_v6 = vor.u32 %v2606_v3, %v2199_v1  ;;  %v2623_v63 = vld [vmem:[%s3885_s2 + $0xb4] sm:$0xf]  ;;  %v2273_v0 = vld [vmem:[%s3885_s2 + $0xb8] sm:$0xf0] }
  0x5f   : > { %1053 = vmatpush.bf16.msra.mxu1 %v2144_v46  ;;  %v2289_v46 = vld [vmem:[%s3885_s2 + $0xd8] sm:$0xf0]  ;;  %v2276_v1 = vor.u32 %v2623_v63, %v2273_v0  ;;  %v2672_v63 = vld [vmem:[%s3885_s2 + $0x234] sm:$0xf0]  ;;  %v2671_v0 = vld [vmem:[%s3885_s2 + $0x234] sm:$0xf] }
  0x60   : > { %1066 = vmatpush.bf16.msra.mxu2 %v2084_v4  ;;  %v2605_v4 = vld [vmem:[%s3885_s2 + $0x24] sm:$0xf]  ;;  %v2292_v47 = vor.u32 %v2627_v44, %v2289_v46  ;;  %v2383_v44 = vld [vmem:[%s3885_s2 + $0x250] sm:$0xf]  ;;  %v2675_v46 = vld [vmem:[%s3885_s2 + $0x254] sm:$0xf] }
  0x61   : > { %1079 = vmatpush.bf16.msra.mxu3 %v2148_v50  ;;  %v2204_v7 = vor.u32 %v2605_v4, %v2201_v5  ;;  %v2625_v50 = vld [vmem:[%s3885_s2 + $0xc4] sm:$0xf]  ;;  %v2263_v5 = vld [vmem:[%s3885_s2 + $0xa0] sm:$0xf] }
  0x62   : > { %1041 = vmatpush.bf16.msra.mxu0 %v2072_v9  ;;  %v2652_v9 = vld [vmem:[%s3885_s2 + $0x194] sm:$0xf0] }
  0x63   : > { %1054 = vmatpush.bf16.msra.mxu1 %v2136_v58  ;;  %v2272_v58 = vor.u32 %v2624_v57, %v2271_v56 }
  0x64   : > { %1067 = vmatpush.bf16.msra.mxu2 %v2076_v10  ;;  %v2128_v10 = vor.u32 %v2652_v9, %v2127_v8  ;;  %v2621_v8 = vld [vmem:[%s3885_s2 + $0xa4] sm:$0xf]  ;;  %v2265_v9 = vld [vmem:[%s3885_s2 + $0xa8] sm:$0xf0] }
  0x65   : > { %1080 = vmatpush.bf16.msra.mxu3 %v2140_v2  ;;  %v2268_v11 = vor.u32 %v2621_v8, %v2265_v9  ;;  %v2670_v8 = vld [vmem:[%s3885_s2 + $0x224] sm:$0xf0]  ;;  %v2669_v9 = vld [vmem:[%s3885_s2 + $0x224] sm:$0xf] }
  0x66   : > { %1042 = vmatpush.bf16.msra.mxu0 %v2064_v15  ;;  %v2604_v15 = vld [vmem:[%s3885_s2 + $0x14] sm:$0xf0] }
  0x67   : > { %1055 = vmatpush.bf16.msra.mxu1 %v2128_v10  ;;  %v2192_v18 = vor.u32 %v2604_v15, %v2191_v13  ;;  %v2255_v13 = vld [vmem:[%s3885_s2 + $0x90] sm:$0xf] }
  0x68   : > { %1068 = vmatpush.bf16.msra.mxu2 %v2068_v16  ;;  %v2603_v16 = vld [vmem:[%s3885_s2 + $0x14] sm:$0xf] }
  0x69   : > { %1081 = vmatpush.bf16.msra.mxu3 %v2132_v14  ;;  %v2196_v20 = vor.u32 %v2603_v16, %v2193_v19  ;;  %v2620_v14 = vld [vmem:[%s3885_s2 + $0x94] sm:$0xf0]  ;;  %v2257_v19 = vld [vmem:[%s3885_s2 + $0x98] sm:$0xf0] }
  0x6a   : > { %1043 = vmatpush.bf16.msra.mxu0 %v2056_v25  ;;  %v2121_v25 = vld [vmem:[%s3885_s2 + $0x188] sm:$0xf0]  ;;  %v2256_v17 = vor.u32 %v2620_v14, %v2255_v13  ;;  %v2351_v14 = vld [vmem:[%s3885_s2 + $0x210] sm:$0xf] }
  0x6b   : > { %1056 = vmatpush.bf16.msra.mxu1 %v2120_v23 }
  0x6c   : > { %1069 = vmatpush.bf16.msra.mxu2 %v2060_v26  ;;  %v2124_v26 = vor.u32 %v2649_v24, %v2121_v25  ;;  %v2680_v24 = vld [vmem:[%s3885_s2 + $0x274] sm:$0xf0]  ;;  %v2679_v25 = vld [vmem:[%s3885_s2 + $0x274] sm:$0xf] }
  0x6e   : > { %1248 = vmatpush.bf16.msrb.mxu0 %v2240_v27  ;;  %v2183_v27 = vld [vmem:[%s3885_s2] sm:$0xf]  ;;  %1082 = vmatpush.bf16.msra.mxu3 %v2124_v26  ;;  %v2401_v26 = vld [vmem:[%s3885_s2 + $0x278] sm:$0xf0] }
  0x70   : > { %1274 = vmatpush.bf16.msrb.mxu2 %v2244_v28  ;;  %v2602_v28 = vld [vmem:[%s3885_s2 + $0x4] sm:$0xf0] }
  0x71   : > { %v2184_v29 = vor.u32 %v2602_v28, %v2183_v27  ;;  %v2247_v28 = vld [vmem:[%s3885_s2 + $0x80] sm:$0xf] }
  0x72   : > { %1249 = vmatpush.bf16.msrb.mxu0 %v2232_v33  ;;  %v2304_v33 = vor.u32 %v2632_v31, %v2303_v30  ;;  %1287 = vmatpush.bf16.msrb.mxu3 %v2308_v60  ;;  %v2617_v31 = vld [vmem:[%s3885_s2 + $0x84] sm:$0xf] }
  0x74   : > { %1275 = vmatpush.bf16.msrb.mxu2 %v2236_v34  ;;  %v2185_v34 = vld [vmem:[%s3885_s2 + $0x8] sm:$0xf0]  ;;  %1261 = vmatpush.bf16.msrb.mxu1 %v2304_v33 }
  0x75   : > { %v2188_v37 = vor.u32 %v2601_v32, %v2185_v34  ;;  %v2249_v32 = vld [vmem:[%s3885_s2 + $0x88] sm:$0xf0]  ;;  %v2404_v34 = vor.u32 %v2679_v25, %v2401_v26  ;;  %v2666_v26 = vld [vmem:[%s3885_s2 + $0x204] sm:$0xf0] }
  0x76   : > { %1250 = vmatpush.bf16.msrb.mxu0 %v2224_v38  ;;  %v2295_v38 = vld [vmem:[%s3885_s2 + $0xe0] sm:$0xf]  ;;  %1288 = vmatpush.bf16.msrb.mxu3 %v2300_v42  ;;  %v2252_v41 = vor.u32 %v2617_v31, %v2249_v32 }
  0x78   : > { %1276 = vmatpush.bf16.msrb.mxu2 %v2228_v39  ;;  %v2630_v39 = vld [vmem:[%s3885_s2 + $0xe4] sm:$0xf0] }
  0x79   : > { %v2296_v40 = vor.u32 %v2630_v39, %v2295_v38  ;;  %v2677_v38 = vld [vmem:[%s3885_s2 + $0x264] sm:$0xf]  ;;  %v2393_v39 = vld [vmem:[%s3885_s2 + $0x268] sm:$0xf0] }
  0x7a   : > { %1251 = vmatpush.bf16.msrb.mxu0 %v2216_v43  ;;  %v2287_v43 = vld [vmem:[%s3885_s2 + $0xd0] sm:$0xf]  ;;  %1289 = vmatpush.bf16.msrb.mxu3 %v2292_v47  ;;  %v2385_v47 = vld [vmem:[%s3885_s2 + $0x258] sm:$0xf0] }
  0x7b   : > { %1262 = vmatpush.bf16.msrb.mxu1 %v2296_v40  ;;  %v2388_v49 = vor.u32 %v2675_v46, %v2385_v47  ;;  %v2693_v46 = vld [vmem:[%s3885_s2 + $0x2e4] sm:$0xf]  ;;  %v2457_v47 = vld [vmem:[%s3885_s2 + $0x2e8] sm:$0xf0] }
  0x7c   : > { %1277 = vmatpush.bf16.msrb.mxu2 %v2220_v62  ;;  %v2628_v62 = vld [vmem:[%s3885_s2 + $0xd4] sm:$0xf0] }
  0x7d   : > { %v2288_v45 = vor.u32 %v2628_v62, %v2287_v43  ;;  %v2392_v43 = vor.u32 %v2678_v36, %v2391_v35  ;;  %v2396_v62 = vor.u32 %v2677_v38, %v2393_v39  ;;  %v2695_v35 = vld [vmem:[%s3885_s2 + $0x2f4] sm:$0xf]  ;;  %v2465_v36 = vld [vmem:[%s3885_s2 + $0x2f8] sm:$0xf0] }
  0x7e   : > { %1252 = vmatpush.bf16.msrb.mxu0 %v2208_v54  ;;  %v2284_v54 = vor.u32 %v2625_v50, %v2281_v51  ;;  %v2375_v50 = vld [vmem:[%s3885_s2 + $0x240] sm:$0xf]  ;;  %v2674_v51 = vld [vmem:[%s3885_s2 + $0x244] sm:$0xf0] }
  0x7f   : > { %1263 = vmatpush.bf16.msrb.mxu1 %v2288_v45  ;;  %v2676_v45 = vld [vmem:[%s3885_s2 + $0x254] sm:$0xf0] }
  0x80   : > { %1278 = vmatpush.bf16.msrb.mxu2 %v2212_v55  ;;  %v347_v55 = vperm.slane %v3528_v52, 0  ;;  %1290 = vmatpush.bf16.msrb.mxu3 %v2284_v54  ;;  %v2384_v48 = vor.u32 %v2676_v45, %v2383_v44  ;;  %v2377_v54 = vld [vmem:[%s3885_s2 + $0x248] sm:$0xf0] }
  0x82   : > { %1253 = vmatpush.bf16.msrb.mxu0 %v2200_v6  ;;  %v2622_v6 = vld [vmem:[%s3885_s2 + $0xa4] sm:$0xf0] }
  0x83   : > { %1264 = vmatpush.bf16.msrb.mxu1 %v2280_v53  ;;  %v2673_v53 = vld [vmem:[%s3885_s2 + $0x244] sm:$0xf] }
  0x84   : > { %1279 = vmatpush.bf16.msrb.mxu2 %v2204_v7  ;;  %v2264_v7 = vor.u32 %v2622_v6, %v2263_v5  ;;  %1291 = vmatpush.bf16.msrb.mxu3 %v2276_v1  ;;  %v2380_v56 = vor.u32 %v2673_v53, %v2377_v54  ;;  %v2369_v1 = vld [vmem:[%s3885_s2 + $0x238] sm:$0xf0]  ;;  %v2359_v6 = vld [vmem:[%s3885_s2 + $0x220] sm:$0xf]  ;;  %v2710_v54 = vld [vmem:[%s3886_s3 + $0x64] sm:$0xf0] }
  0x85   : > { %v2372_v5 = vor.u32 %v2671_v0, %v2369_v1  ;;  %v2449_v0 = vld [vmem:[%s3885_s2 + $0x2d8] sm:$0xf0] }
  0x86   : > { %1254 = vmatpush.bf16.msrb.mxu0 %v2192_v18  ;;  %v2619_v18 = vld [vmem:[%s3885_s2 + $0x94] sm:$0xf] }
  0x87   : > { %1265 = vmatpush.bf16.msrb.mxu1 %v2272_v58  ;;  %v2260_v21 = vor.u32 %v2619_v18, %v2257_v19  ;;  %v2367_v58 = vld [vmem:[%s3885_s2 + $0x230] sm:$0xf]  ;;  %v2353_v18 = vld [vmem:[%s3885_s2 + $0x218] sm:$0xf0] }
  0x88   : > { %1280 = vmatpush.bf16.msrb.mxu2 %v2196_v20  ;;  %v2399_v20 = vld [vmem:[%s3885_s2 + $0x270] sm:$0xf]  ;;  %1292 = vmatpush.bf16.msrb.mxu3 %v2268_v11 }
  0x89   : > { %v2400_v33 = vor.u32 %v2680_v24, %v2399_v20 }
  0x8a   : > { %1255 = vmatpush.bf16.msrb.mxu0 %v2184_v29  ;;  %v2618_v29 = vld [vmem:[%s3885_s2 + $0x84] sm:$0xf0] }
  0x8b   : > { %1266 = vmatpush.bf16.msrb.mxu1 %v2264_v7  ;;  %v2248_v40 = vor.u32 %v2618_v29, %v2247_v28  ;;  %v2345_v28 = vld [vmem:[%s3885_s2 + $0x208] sm:$0xf0] }
  0x8c   : > { %1281 = vmatpush.bf16.msrb.mxu2 %v2188_v37  ;;  %1293 = vmatpush.bf16.msrb.mxu3 %v2260_v21 }
  0x8f   : > { %1267 = vmatpush.bf16.msrb.mxu1 %v2256_v17  ;;  %v2667_v17 = vld [vmem:[%s3885_s2 + $0x214] sm:$0xf] }
  0x90   : > { %1294 = vmatpush.bf16.msrb.mxu3 %v2252_v41  ;;  %v2356_v21 = vor.u32 %v2667_v17, %v2353_v18  ;;  %v2712_v41 = vld [vmem:[%s3886_s3 + $0x74] sm:$0xf0]  ;;  %v2433_v17 = vld [vmem:[%s3885_s2 + $0x2b8] sm:$0xf0] }
  0x93   : > { %1268 = vmatpush.bf16.msrb.mxu1 %v2248_v40  ;;  %v2527_v40 = vld [vmem:[%s3886_s3 + $0x70] sm:$0xf] }
  0xaa   : > { %v694_v2 = vpop.f32.mrf.mxu0 }
  0xab   : > { %v695_v3 = vadd.f32 %v694_v2, %v347_v55  ;;  %v707_v4 = vpop.f32.mrf.mxu1  ;;  %v2376_v55 = vor.u32 %v2674_v51, %v2375_v50  ;;  %v348_v2 = vperm.slane %v3528_v52, 1  ;;  %v2361_v52 = vld [vmem:[%s3885_s2 + $0x228] sm:$0xf0]  ;;  %v2519_v50 = vld [vmem:[%s3886_s3 + $0x60] sm:$0xf] }
  0xac   : > { %v2364_v13 = vor.u32 %v2669_v9, %v2361_v52  ;;  %v2520_v1 = vor.u32 %v2710_v54, %v2519_v50  ;;  %v2441_v9 = vld [vmem:[%s3885_s2 + $0x2c8] sm:$0xf0]  ;;  %v2698_v50 = vld [vmem:[%s3886_s3 + $0x4] sm:$0xf0] }
  0xad   : > { %v708_v10 = vadd.f32 %v707_v4, %v695_v3  ;;  %v2368_v4 = vor.u32 %v2672_v63, %v2367_v58  ;;  %v2692_v58 = vld [vmem:[%s3885_s2 + $0x2d4] sm:$0xf0]  ;;  %v2691_v63 = vld [vmem:[%s3885_s2 + $0x2d4] sm:$0xf] }
  0xb2   : > { %v720_v12 = vpop.f32.mrf.mxu2  ;;  %v696_v23 = vpop.f32.mrf.mxu0 }
  0xb3   : > { %v721_v15 = vadd.f32 %v720_v12, %v708_v10  ;;  %v733_v16 = vpop.f32.mrf.mxu3  ;;  %v709_v27 = vpop.f32.mrf.mxu1  ;;  %v2360_v12 = vor.u32 %v2670_v8, %v2359_v6  ;;  %v2439_v6 = vld [vmem:[%s3885_s2 + $0x2c0] sm:$0xf]  ;;  %v2689_v8 = vld [vmem:[%s3885_s2 + $0x2c4] sm:$0xf] }
  0xb4   : > { %v2665_v27 = vld [vmem:[%s3885_s2 + $0x204] sm:$0xf] }
  0xb5   : > { %v734_v22 = vadd.f32 %v733_v16, %v721_v15  ;;  %v2668_v16 = vld [vmem:[%s3885_s2 + $0x214] sm:$0xf0] }
  0xb6   : > { %v2352_v20 = vor.u32 %v2668_v16, %v2351_v14  ;;  %v2431_v14 = vld [vmem:[%s3885_s2 + $0x2b0] sm:$0xf]  ;;  %v2687_v16 = vld [vmem:[%s3885_s2 + $0x2b4] sm:$0xf] }
  0xb7   : > { %v789_v30 = vmax.f32 %v734_v22, 0.0  ;;  %v2343_v22 = vld [vmem:[%s3885_s2 + $0x200] sm:$0xf] }
  0xb9   : > { %v797_v37 = vrot.slane %v789_v30, 7  ;;  %v841_v60 = vpack.c.bf16 %v789_v30, %v789_v30  ;;  %v2463_v30 = vld [vmem:[%s3885_s2 + $0x2f0] sm:$0xf] }
  0xba   : > { %v722_v59 = vpop.f32.mrf.mxu2 }
  0xbb   : > { %801 = vst [vmem:[#allocation2 + $0x10] sm:$0xfe] %v797_v37  ;;  %1044 = vmatmul.bf16.vlgmr.msra.gmra.mxu0 %v841_v60  ;;  %1070 = vmatmul.bf16.vlgmr.msra.gmra.mxu2 %v841_v60  ;;  %v735_v42 = vpop.f32.mrf.mxu3  ;;  %v2348_v60 = vor.u32 %v2665_v27, %v2345_v28  ;;  %v2685_v27 = vld [vmem:[%s3885_s2 + $0x2a4] sm:$0xf]  ;;  %v2425_v28 = vld [vmem:[%s3885_s2 + $0x2a8] sm:$0xf0] }
  0xbc   : > { %803 = vst [vmem:[#allocation2 + $0x18] sm:$0x1] %v797_v37  ;;  %1505 = vmatpush.bf16.msra.mxu0 %v2400_v33  ;;  %1531 = vmatpush.bf16.msra.mxu2 %v2404_v34  ;;  %v2696_v34 = vld [vmem:[%s3885_s2 + $0x2f4] sm:$0xf0]  ;;  %v2344_v37 = vor.u32 %v2666_v26, %v2343_v22  ;;  %v2468_v42 = vor.u32 %v2695_v35, %v2465_v36  ;;  %v2686_v26 = vld [vmem:[%s3885_s2 + $0x2a4] sm:$0xf0] }
  0xbd   : > { %v2464_v59 = vor.u32 %v2696_v34, %v2463_v30  ;;  %v2487_v30 = vld [vmem:[%s3886_s3 + $0x20] sm:$0xf]  ;;  %v2415_v34 = vld [vmem:[%s3885_s2 + $0x290] sm:$0xf]  ;;  %v2684_v35 = vld [vmem:[%s3885_s2 + $0x294] sm:$0xf0] }
  0xbe   : > { %v2683_v36 = vld [vmem:[%s3885_s2 + $0x294] sm:$0xf] }
  0xc0   : > { %1506 = vmatpush.bf16.msra.mxu0 %v2392_v43  ;;  %1532 = vmatpush.bf16.msra.mxu2 %v2396_v62  ;;  %v2455_v43 = vld [vmem:[%s3885_s2 + $0x2e0] sm:$0xf]  ;;  %v2694_v62 = vld [vmem:[%s3885_s2 + $0x2e4] sm:$0xf0] }
  0xc2   : > { %v805_v57 = vld [vmem:[#allocation2 + $0x10] sm:$0xff] }
  0xc3   : > { %v807_v3 = vpack.c.bf16 %v805_v57, %v805_v57  ;;  %v1300_v31 = vld [vmem:[#allocation2 + $0x10] sm:$0xfc]  ;;  %v1302_v32 = vld [vmem:[#allocation2 + $0x18] sm:$0x3] }
  0xc4   : > { %1507 = vmatpush.bf16.msra.mxu0 %v2384_v48  ;;  %1533 = vmatpush.bf16.msra.mxu2 %v2388_v49  ;;  %v1304_v39 = vpack.c.bf16 %v1302_v32, %v1300_v31  ;;  %v2528_v49 = vor.u32 %v2712_v41, %v2527_v40  ;;  %v2447_v57 = vld [vmem:[%s3885_s2 + $0x2d0] sm:$0xf]  ;;  %v2702_v31 = vld [vmem:[%s3886_s3 + $0x24] sm:$0xf0]  ;;  %v2416_v40 = vor.u32 %v2684_v35, %v2415_v34 }
  0xc6   : > { %v1341_v53 = vrot.slane %v1304_v39, 1  ;;  %v2700_v39 = vld [vmem:[%s3886_s3 + $0x14] sm:$0xf0] }
  0xc8   : > { %1508 = vmatpush.bf16.msra.mxu0 %v2376_v55  ;;  %1534 = vmatpush.bf16.msra.mxu2 %v2380_v56  ;;  %v2456_v55 = vor.u32 %v2694_v62, %v2455_v43  ;;  %v2460_v56 = vor.u32 %v2693_v46, %v2457_v47  ;;  %v2681_v43 = vld [vmem:[%s3885_s2 + $0x284] sm:$0xf]  ;;  %v2409_v62 = vld [vmem:[%s3885_s2 + $0x288] sm:$0xf0]  ;;  %v2529_v46 = vld [vmem:[%s3886_s3 + $0x78] sm:$0xf0] }
  0xca   : > { %v746_v7 = vpop.f32.mrf.mxu0 }
  0xcb   : > { %v747_v10 = vadd.f32 %v746_v7, %v348_v2  ;;  %v759_v11 = vpop.f32.mrf.mxu1  ;;  %1256 = vmatmul.bf16.vlgmr.msrb.gmra.mxu0 %v807_v3  ;;  %1282 = vmatmul.bf16.vlgmr.msrb.gmra.mxu2 %v807_v3  ;;  %v2511_v2 = vld [vmem:[%s3886_s3 + $0x50] sm:$0xf]  ;;  %v2708_v3 = vld [vmem:[%s3886_s3 + $0x54] sm:$0xf0]  ;;  %v2690_v7 = vld [vmem:[%s3885_s2 + $0x2c4] sm:$0xf0] }
  0xcc   : > { %1509 = vmatpush.bf16.msra.mxu0 %v2368_v4  ;;  %1535 = vmatpush.bf16.msra.mxu2 %v2372_v5  ;;  %v2448_v4 = vor.u32 %v2692_v58, %v2447_v57  ;;  %v2452_v5 = vor.u32 %v2691_v63, %v2449_v0  ;;  %v2512_v52 = vor.u32 %v2708_v3, %v2511_v2  ;;  %v2709_v57 = vld [vmem:[%s3886_s3 + $0x64] sm:$0xf]  ;;  %v2521_v58 = vld [vmem:[%s3886_s3 + $0x68] sm:$0xf0]  ;;  %v2513_v2 = vld [vmem:[%s3886_s3 + $0x58] sm:$0xf0] }
  0xcd   : > { %v760_v15 = vadd.f32 %v759_v11, %v747_v10  ;;  %v2503_v10 = vld [vmem:[%s3886_s3 + $0x40] sm:$0xf]  ;;  %v2706_v11 = vld [vmem:[%s3886_s3 + $0x44] sm:$0xf0]  ;;  %v2524_v0 = vor.u32 %v2709_v57, %v2521_v58 }
  0xd0   : > { %1510 = vmatpush.bf16.msra.mxu0 %v2360_v12  ;;  %1536 = vmatpush.bf16.msra.mxu2 %v2364_v13  ;;  %v2440_v12 = vor.u32 %v2690_v7, %v2439_v6  ;;  %v2444_v13 = vor.u32 %v2689_v8, %v2441_v9  ;;  %v2703_v7 = vld [vmem:[%s3886_s3 + $0x34] sm:$0xf]  ;;  %v2497_v8 = vld [vmem:[%s3886_s3 + $0x38] sm:$0xf0] }
  0xd1   : > { %v2500_v9 = vor.u32 %v2703_v7, %v2497_v8 }
  0xd2   : > { %v772_v19 = vpop.f32.mrf.mxu2  ;;  %v748_v25 = vpop.f32.mrf.mxu0 }
  0xd3   : > { %v773_v23 = vadd.f32 %v772_v19, %v760_v15  ;;  %v785_v24 = vpop.f32.mrf.mxu3  ;;  %v761_v29 = vpop.f32.mrf.mxu1  ;;  %v2688_v15 = vld [vmem:[%s3885_s2 + $0x2b4] sm:$0xf0]  ;;  %v2504_v19 = vor.u32 %v2706_v11, %v2503_v10  ;;  %v2489_v10 = vld [vmem:[%s3886_s3 + $0x28] sm:$0xf0] }
  0xd4   : > { %1511 = vmatpush.bf16.msra.mxu0 %v2352_v20  ;;  %1537 = vmatpush.bf16.msra.mxu2 %v2356_v21  ;;  %v2495_v20 = vld [vmem:[%s3886_s3 + $0x30] sm:$0xf]  ;;  %v2704_v21 = vld [vmem:[%s3886_s3 + $0x34] sm:$0xf0]  ;;  %v2432_v22 = vor.u32 %v2688_v15, %v2431_v14  ;;  %v2697_v15 = vld [vmem:[%s3886_s3 + $0x4] sm:$0xf] }
  0xd5   : > { %v786_v33 = vadd.f32 %v785_v24, %v773_v23  ;;  %v2436_v23 = vor.u32 %v2687_v16, %v2433_v17  ;;  %v2423_v24 = vld [vmem:[%s3885_s2 + $0x2a0] sm:$0xf]  ;;  %v2496_v29 = vor.u32 %v2704_v21, %v2495_v20  ;;  %v2473_v16 = vld [vmem:[%s3886_s3 + $0x8] sm:$0xf0] }
  0xd6   : > { %v2424_v32 = vor.u32 %v2686_v26, %v2423_v24  ;;  %v2476_v17 = vor.u32 %v2697_v15, %v2473_v16 }
  0xd7   : > { %v790_v38 = vmax.f32 %v786_v33, 0.0  ;;  %v2428_v33 = vor.u32 %v2685_v27, %v2425_v28 }
  0xd8   : > { %1512 = vmatpush.bf16.msra.mxu0 %v2344_v37  ;;  %1538 = vmatpush.bf16.msra.mxu2 %v2348_v60  ;;  %v2417_v37 = vld [vmem:[%s3885_s2 + $0x298] sm:$0xf0]  ;;  %v2488_v60 = vor.u32 %v2702_v31, %v2487_v30 }
  0xd9   : > { %v798_v44 = vrot.slane %v790_v38, 7  ;;  %v842_v45 = vpack.c.bf16 %v790_v38, %v790_v38  ;;  %v2479_v38 = vld [vmem:[%s3886_s3 + $0x10] sm:$0xf]  ;;  %v2420_v41 = vor.u32 %v2683_v36, %v2417_v37 }
  0xda   : > { %v774_v48 = vpop.f32.mrf.mxu2 }
  0xdb   : > { %802 = vst [vmem:[#allocation2] sm:$0xfe] %v798_v44  ;;  %v787_v51 = vpop.f32.mrf.mxu3  ;;  %1057 = vmatmul.bf16.vlgmr.msra.gmra.mxu1 %v842_v45  ;;  %1083 = vmatmul.bf16.vlgmr.msra.gmra.mxu3 %v842_v45  ;;  %v2480_v45 = vor.u32 %v2700_v39, %v2479_v38 }
  0xdc   : > { %804 = vst [vmem:[#allocation2 + $0x8] sm:$0x1] %v798_v44  ;;  %1518 = vmatpush.bf16.msra.mxu1 %v2464_v59  ;;  %1544 = vmatpush.bf16.msra.mxu3 %v2468_v42  ;;  %v2407_v59 = vld [vmem:[%s3885_s2 + $0x280] sm:$0xf]  ;;  %v2682_v42 = vld [vmem:[%s3885_s2 + $0x284] sm:$0xf0] }
  0xdd   : > { %1513 = vmatmul.bf16.vlgmr.msra.gmra.mxu0 %v1341_v53  ;;  %1539 = vmatmul.bf16.vlgmr.msra.gmra.mxu2 %v1341_v53  ;;  %v2711_v44 = vld [vmem:[%s3886_s3 + $0x74] sm:$0xf]  ;;  %v2408_v51 = vor.u32 %v2682_v42, %v2407_v59  ;;  %v2412_v53 = vor.u32 %v2681_v43, %v2409_v62 }
  0xde   : > { %1669 = vmatpush.bf16.msrb.mxu0 %v2528_v49  ;;  %v2471_v49 = vld [vmem:[%s3886_s3] sm:$0xf]  ;;  %v2532_v54 = vor.u32 %v2711_v44, %v2529_v46 }
  0xdf   : > { %v1559_v44 = vld [vmem:[%s3888_s5] sm:$0x3] }
  0xe0   : > { %1519 = vmatpush.bf16.msra.mxu1 %v2456_v55  ;;  %1545 = vmatpush.bf16.msra.mxu3 %v2460_v56  ;;  %v2472_v56 = vor.u32 %v2698_v50, %v2471_v49 }
  0xe2   : > { %1670 = vmatpush.bf16.msrb.mxu0 %v2520_v1  ;;  %v806_v18 = vld [vmem:[#allocation2] sm:$0xff]  ;;  %v2707_v1 = vld [vmem:[%s3886_s3 + $0x54] sm:$0xf] }
  0xe3   : > { %v808_v25 = vpack.c.bf16 %v806_v18, %v806_v18  ;;  %v1301_v47 = vld [vmem:[#allocation2] sm:$0xfc]  ;;  %v1303_v48 = vld [vmem:[#allocation2 + $0x8] sm:$0x3]  ;;  %v2516_v3 = vor.u32 %v2707_v1, %v2513_v2 }
  0xe4   : > { %1520 = vmatpush.bf16.msra.mxu1 %v2448_v4  ;;  %1546 = vmatpush.bf16.msra.mxu3 %v2452_v5  ;;  %v1305_v55 = vpack.c.bf16 %v1303_v48, %v1301_v47  ;;  %v2705_v4 = vld [vmem:[%s3886_s3 + $0x44] sm:$0xf]  ;;  %v2505_v5 = vld [vmem:[%s3886_s3 + $0x48] sm:$0xf0]  ;;  %v1561_v47 = vperm.slane %v1559_v44, 0 }
  0xe5   : > { %v2508_v6 = vor.u32 %v2705_v4, %v2505_v5 }
  0xe6   : > { %1671 = vmatpush.bf16.msrb.mxu0 %v2512_v52  ;;  %v1342_v63 = vrot.slane %v1305_v55, 1  ;;  %v2701_v52 = vld [vmem:[%s3886_s3 + $0x24] sm:$0xf] }
  0xe7   : > { %v2492_v11 = vor.u32 %v2701_v52, %v2489_v10 }
  0xe8   : > { %1521 = vmatpush.bf16.msra.mxu1 %v2440_v12  ;;  %1547 = vmatpush.bf16.msra.mxu3 %v2444_v13  ;;  %v2699_v12 = vld [vmem:[%s3886_s3 + $0x14] sm:$0xf]  ;;  %v2481_v13 = vld [vmem:[%s3886_s3 + $0x18] sm:$0xf0] }
  0xe9   : > { %v2484_v14 = vor.u32 %v2699_v12, %v2481_v13 }
  0xea   : > { %1672 = vmatpush.bf16.msrb.mxu0 %v2504_v19 }
  0xeb   : > { %1269 = vmatmul.bf16.vlgmr.msrb.gmra.mxu1 %v808_v25  ;;  %1295 = vmatmul.bf16.vlgmr.msrb.gmra.mxu3 %v808_v25 }
  0xec   : > { %1522 = vmatpush.bf16.msra.mxu1 %v2432_v22  ;;  %1548 = vmatpush.bf16.msra.mxu3 %v2436_v23 }
  0xee   : > { %1673 = vmatpush.bf16.msrb.mxu0 %v2496_v29 }
  0xf0   : > { %1523 = vmatpush.bf16.msra.mxu1 %v2424_v32  ;;  %1549 = vmatpush.bf16.msra.mxu3 %v2428_v33 }
  0xf2   : > { %1674 = vmatpush.bf16.msrb.mxu0 %v2488_v60 }
  0xf4   : > { %1524 = vmatpush.bf16.msra.mxu1 %v2416_v40  ;;  %1550 = vmatpush.bf16.msra.mxu3 %v2420_v41 }
  0xf6   : > { %1675 = vmatpush.bf16.msrb.mxu0 %v2480_v45  ;;  %v1583_v45 = vld [vmem:[%s3889_s6] sm:$0x3] }
  0xf7   : > { %v1585_v50 = vperm.slane %v1583_v45, 0  ;;  %v1586_v58 = vperm.slane %v1583_v45, 1 }
  0xf8   : > { %1525 = vmatpush.bf16.msra.mxu1 %v2408_v51  ;;  %1551 = vmatpush.bf16.msra.mxu3 %v2412_v53 }
  0xfa   : > { %1676 = vmatpush.bf16.msrb.mxu0 %v2472_v56 }
  0xfb   : > { %1526 = vmatmul.bf16.vlgmr.msra.gmra.mxu1 %v1342_v63  ;;  %1552 = vmatmul.bf16.vlgmr.msra.gmra.mxu3 %v1342_v63 }
  0xfc   : > { %1682 = vmatpush.bf16.msrb.mxu1 %v2532_v54  ;;  %v1562_v54 = vperm.slane %v1559_v44, 1 }
  0xfd   : > { %1677 = vmatmul.bf16.vlgmr.msrb.gmra.mxu0 %v3033_v61 }
 0x100   : > { %1683 = vmatpush.bf16.msrb.mxu1 %v2524_v0 }
 0x104   : > { %1684 = vmatpush.bf16.msrb.mxu1 %v2516_v3 }
 0x108   : > { %1685 = vmatpush.bf16.msrb.mxu1 %v2508_v6 }
 0x10c   : > { %1686 = vmatpush.bf16.msrb.mxu1 %v2500_v9 }
 0x110   : > { %1687 = vmatpush.bf16.msrb.mxu1 %v2492_v11 }
 0x114   : > { %1688 = vmatpush.bf16.msrb.mxu1 %v2484_v14 }
 0x118   : > { %1689 = vmatpush.bf16.msrb.mxu1 %v2476_v17 }
 0x11b   : > { %1690 = vmatmul.bf16.vlgmr.msrb.gmra.mxu1 %v3033_v61 }
 0x138   : > { %v1045_v18 = vpop.f32.mrf.mxu0 }
 0x13e   : > { %v1071_v19 = vpop.f32.mrf.mxu2 }
 0x140   : > { %v1047_v20 = vpop.f32.mrf.mxu0 }
 0x146   : > { %v1073_v21 = vpop.f32.mrf.mxu2 }
 0x148   : > { %v1257_v22 = vpop.f32.mrf.mxu0 }
 0x14e   : > { %v1283_v23 = vpop.f32.mrf.mxu2 }
 0x150   : > { %v1259_v24 = vpop.f32.mrf.mxu0 }
 0x156   : > { %v1285_v26 = vpop.f32.mrf.mxu2 }
 0x158   : > { %v1058_v25 = vpop.f32.mrf.mxu1 }
 0x159   : > { %v1059_v27 = vadd.f32 %v1058_v25, %v1045_v18 }
 0x15a   : > { %v1514_v28 = vpop.f32.mrf.mxu0 }
 0x15b   : > { %v1258_v29 = vadd.f32 %v1257_v22, %v1059_v27 }
 0x15e   : > { %v1084_v30 = vpop.f32.mrf.mxu3 }
 0x15f   : > { %v1085_v43 = vadd.f32 %v1084_v30, %v1071_v19 }
 0x160   : > { %v1060_v31 = vpop.f32.mrf.mxu1  ;;  %v1540_v32 = vpop.f32.mrf.mxu2 }
 0x161   : > { %v1284_v48 = vadd.f32 %v1283_v23, %v1085_v43 }
 0x162   : > { %v1516_v33 = vpop.f32.mrf.mxu0 }
 0x166   : > { %v1086_v34 = vpop.f32.mrf.mxu3 }
 0x168   : > { %v1270_v35 = vpop.f32.mrf.mxu1  ;;  %v1542_v36 = vpop.f32.mrf.mxu2 }
 0x169   : > { %v1271_v46 = vadd.f32 %v1270_v35, %v1258_v29 }
 0x16e   : > { %v1296_v61 = vpop.f32.mrf.mxu3 }
 0x16f   : > { %v1297_v53 = vadd.f32 %v1296_v61, %v1284_v48 }
 0x170   : > { %v1272_v37 = vpop.f32.mrf.mxu1 }
 0x176   : > { %v1298_v60 = vpop.f32.mrf.mxu3 }
 0x178   : > { %v1527_v38 = vpop.f32.mrf.mxu1 }
 0x179   : > { %v1528_v62 = vadd.f32 %v1527_v38, %v1514_v28 }
 0x17a   : > { %v1678_v39 = vpop.f32.mrf.mxu0 }
 0x17b   : > { %v1557_v49 = vadd.f32 %v1528_v62, %v1271_v46  ;;  %v1679_v56 = vadd.f32 %v1678_v39, %v1585_v50 }
 0x17d   : > { %v1565_v55 = vadd.f32 %v1561_v47, %v1557_v49 }
 0x17e   : > { %v1553_v40 = vpop.f32.mrf.mxu3 }
 0x17f   : > { %v1554_v51 = vadd.f32 %v1553_v40, %v1540_v32  ;;  %v1695_v0 = vadd.f32 %v1679_v56, %v1565_v55 }
 0x180   : > { %v1529_v41 = vpop.f32.mrf.mxu1 }
 0x181   : > { %v1558_v57 = vadd.f32 %v1554_v51, %v1297_v53  ;;  %v1697_v4 = vmax.f32 %v1695_v0, 0.0 }
 0x182   : > { %v1680_v59 = vpop.f32.mrf.mxu0 }
 0x183   : > { %v1566_v1 = vadd.f32 %v1562_v54, %v1558_v57 }
 0x186   : > { %v1555_v42 = vpop.f32.mrf.mxu3 }
 0x198   : > { %v1691_v63 = vpop.f32.mrf.mxu1 }
 0x199   : > { %v1692_v2 = vadd.f32 %v1691_v63, %v1586_v58 }
 0x19b   : > { %v1696_v3 = vadd.f32 %v1692_v2, %v1566_v1 }
 0x19d   : > { %v1698_v5 = vmax.f32 %v1696_v3, 0.0 }
 0x19f   : > { %v1699_v6 = vpack.c.bf16 %v1698_v5, %v1697_v4 }
 0x1a0   : > { %v1693_v7 = vpop.f32.mrf.mxu1 }
 0x1a1   : > { %1700 = vst [vmem:[%s278_s29] sm:$0xff] %v1699_v6 }
 0x1a2 PF: > { %s17_s24 = sadd.s32 1, %s2728_s24  }
 0x1a3   : > { %p14_p4 = scmp.ge.s32.totalorder %s17_s24, 6  }
 0x1a5   :  { %16 = sbr.rel (!%p14_p4) target bundleno = 1 (0x1), region = 80 }

</bundles_post_ra>
